<compile_context>
chip_gen: v7x
topology: tpu7x:2x2x1
jax: 0.10.0
libtpu: 0.0.40
codegen_flags: <defaults>
</compile_context>

<pallas_src>
import functools

import numpy as np
import jax
import jax.numpy as jnp
from jax import lax
from jax.experimental import pallas as pl
from jax.experimental.pallas import tpu as pltpu

EPS = 1e-5
HALO = 16                     # sublane-aligned halo (>= OW+2) for shifted reads
C_IN = 3
C1, C2, C3 = 24, 48, 96
NCLS = 7
KIN = 16                      # a1 lane width: 12 im2col cols + indicator + pad
ICOL = 4 * C_IN               # 12 -> indicator ("row is a real conv output") col

# ---- conv weight slab layout (lane width 128) --------------------------------
W1_OFF = 0
W2_OFF = KIN                  # 16
W3_OFF = W2_OFF + 9 * C1      # 232
B2_ROW = W3_OFF + 9 * C2      # 664   (8-row aligned single bias rows)
B3_ROW = B2_ROW + 8           # 672
CW_ROWS = B3_ROW + 8          # 680

# ---- fc weight slab layout (lane width 144) -----------------------------------
FCL = 144
L1_OFF = 0                    # 3 branch groups x 128 rows (96 real + 32 zero)
L2_OFF = 3 * 128              # 384
L3_OFF = L2_OFF + FCL         # 528
L4_OFF = L3_OFF + FCL         # 672
G1_ROW = L4_OFF + FCL         # 816
G2_ROW = G1_ROW + 8           # 824
G3_ROW = G2_ROW + 8           # 832
B4_ROW = G3_ROW + 8           # 840
FCW_ROWS = B4_ROW + 8         # 848


# --------------------------- fused Pallas kernel ------------------------------

def _fused_forward_kernel(a1_ref, cw_ref, pool_ref, fcw_ref, o_ref, buf_ref,
                          *, mp, s):
    """One grid step == one batch element (its 3 branch images)."""
    offs = [(di - 1) * s + (dj - 1) for di in range(3) for dj in range(3)]

    # Zero ONLY the halo rows; every plane row is overwritten by the conv1 store.
    zero = jnp.zeros((HALO, 128), jnp.float32)
    buf_ref[0:HALO, :] = zero
    buf_ref[HALO + mp:HALO + mp + HALO, :] = zero

    # 1 on real conv-output rows, 0 on plane pad / tail rows.
    rowmask = a1_ref[:, ICOL:ICOL + 1]

    # ---- conv1 (2x2, s2, p1) + folded BN + ReLU.  Bias enters via the
    # indicator column, so pad rows come out exactly 0; lanes C1..127 are zero.
    y1 = jnp.dot(a1_ref[...], cw_ref[W1_OFF:W1_OFF + KIN, :],
                 preferred_element_type=jnp.float32)
    buf_ref[HALO:HALO + mp, :] = jnp.maximum(y1, 0.0)          # lane-dense store

    # ---- conv2 (3x3, p1): 9 shifted matmul-accumulates on the zero-padded plane.
    acc = None
    for k, off in enumerate(offs):
        src = buf_ref[HALO + off:HALO + off + mp, 0:C1]
        t = jnp.dot(src, cw_ref[W2_OFF + C1 * k:W2_OFF + C1 * (k + 1), :],
                    preferred_element_type=jnp.float32)
        acc = t if acc is None else acc + t
    y2 = jnp.maximum(acc + cw_ref[B2_ROW:B2_ROW + 1, :], 0.0) * rowmask
    buf_ref[HALO:HALO + mp, :] = y2

    # ---- conv3 (3x3, p1).
    acc = None
    for k, off in enumerate(offs):
        src = buf_ref[HALO + off:HALO + off + mp, 0:C2]
        t = jnp.dot(src, cw_ref[W3_OFF + C2 * k:W3_OFF + C2 * (k + 1), :],
                    preferred_element_type=jnp.float32)
        acc = t if acc is None else acc + t
    y3 = jnp.maximum(acc + cw_ref[B3_ROW:B3_ROW + 1, :], 0.0) * rowmask
    buf_ref[HALO:HALO + mp, :] = y3

    # ---- MaxPool2d(2): max over plane offsets {0, 1, s, s+1};
    # AdaptiveAvgPool2d((1,1)) + branch regroup = one matmul with a constant
    # pool matrix that picks the top-left row of every valid 2x2 window / 16.
    mx = jnp.maximum(
        jnp.maximum(buf_ref[HALO:HALO + mp, :],
                    buf_ref[HALO + 1:HALO + 1 + mp, :]),
        jnp.maximum(buf_ref[HALO + s:HALO + s + mp, :],
                    buf_ref[HALO + s + 1:HALO + s + 1 + mp, :]))
    feats = jnp.dot(pool_ref[...], mx,
                    preferred_element_type=jnp.float32)        # (8,128); rows 0..2 used

    # ---- classifier (folded BN; eval-mode dropout == identity).
    h = None
    for g in range(3):
        t = jnp.dot(feats[g:g + 1, :],
                    fcw_ref[L1_OFF + 128 * g:L1_OFF + 128 * (g + 1), :],
                    preferred_element_type=jnp.float32)
        h = t if h is None else h + t
    h = jnp.maximum(h + fcw_ref[G1_ROW:G1_ROW + 1, :], 0.0)                 # (1,144)
    h = jnp.maximum(jnp.dot(h, fcw_ref[L2_OFF:L2_OFF + FCL, :],
                            preferred_element_type=jnp.float32)
                    + fcw_ref[G2_ROW:G2_ROW + 1, :], 0.0)                   # (1,144) [72]
    h = jnp.maximum(jnp.dot(h, fcw_ref[L3_OFF:L3_OFF + FCL, :],
                            preferred_element_type=jnp.float32)
                    + fcw_ref[G3_ROW:G3_ROW + 1, :], 0.0)                   # (1,144) [14]
    out = (jnp.dot(h, fcw_ref[L4_OFF:L4_OFF + FCL, :],
                   preferred_element_type=jnp.float32)
           + fcw_ref[B4_ROW:B4_ROW + 1, :])                                 # (1,144) [7]
    o_ref[0, :, :] = jnp.broadcast_to(out[:, 0:128], (8, 128))


# ------------------------------- packing helpers ------------------------------

def bn_fold(gamma, beta, mean, var, pre_bias=None):
    """Fold eval-mode BatchNorm (+ preceding conv/linear bias) into scale/shift."""
    gamma, beta, mean, var = map(np.asarray, (gamma, beta, mean, var))
    scale = gamma / np.sqrt(var + EPS)
    shift = beta - mean * scale
    if pre_bias is not None:
        shift = shift + np.asarray(pre_bias) * scale
    return scale, shift


def conv_w_to_im2col(w_oihw):
    w = np.asarray(w_oihw)
    o, i, kh, kw = w.shape
    return np.transpose(w, (2, 3, 1, 0)).reshape(kh * kw * i, o)


def prepare_params(p):
    """One-time (outside jit): fold BN, lane-pad to 128/144 and pack everything
    into two weight slabs (2 DMAs instead of 14 separate weight/bias inputs)."""
    s1, t1 = bn_fold(p['bn1g'], p['bn1b'], p['bn1m'], p['bn1v'], p['c1b'])
    s2, t2 = bn_fold(p['bn2g'], p['bn2b'], p['bn2m'], p['bn2v'], p['c2b'])
    s3, t3 = bn_fold(p['bn3g'], p['bn3b'], p['bn3m'], p['bn3v'], p['c3b'])
    f1, g1 = bn_fold(p['fb1g'], p['fb1b'], p['fb1m'], p['fb1v'], p['l1b'])
    f2, g2 = bn_fold(p['fb2g'], p['fb2b'], p['fb2m'], p['fb2v'], p['l2b'])
    f3, g3 = bn_fold(p['fb3g'], p['fb3b'], p['fb3m'], p['fb3v'], p['l3b'])

    cw = np.zeros((CW_ROWS, 128), np.float32)
    cw[0:4 * C_IN, 0:C1] = conv_w_to_im2col(p['c1w']) * s1[None, :]
    cw[ICOL, 0:C1] = t1                                   # conv1 bias (indicator col)
    cw[W2_OFF:W2_OFF + 9 * C1, 0:C2] = conv_w_to_im2col(p['c2w']) * s2[None, :]
    cw[W3_OFF:W3_OFF + 9 * C2, 0:C3] = conv_w_to_im2col(p['c3w']) * s3[None, :]
    cw[B2_ROW, 0:C2] = t2
    cw[B3_ROW, 0:C3] = t3

    fcw = np.zeros((FCW_ROWS, FCL), np.float32)
    l1 = np.asarray(p['l1w']).T * f1[None, :]             # (288, 144)
    for g in range(3):
        fcw[L1_OFF + 128 * g:L1_OFF + 128 * g + C3, :] = l1[C3 * g:C3 * (g + 1), :]
    fcw[L2_OFF:L2_OFF + 144, 0:72] = np.asarray(p['l2w']).T * f2[None, :]
    fcw[L3_OFF:L3_OFF + 72, 0:14] = np.asarray(p['l3w']).T * f3[None, :]
    fcw[L4_OFF:L4_OFF + 14, 0:NCLS] = np.asarray(p['l4w']).T
    fcw[G1_ROW, 0:144] = g1
    fcw[G2_ROW, 0:72] = g2
    fcw[G3_ROW, 0:14] = g3
    fcw[B4_ROW, 0:NCLS] = np.asarray(p['l4b'])
    return {'cw': jnp.asarray(cw), 'fcw': jnp.asarray(fcw)}


def _pool_matrix(oh, ow, s, g_rows, mp):
    """(8, mp) constant: rows 0..2 pick the top-left plane row of each valid
    2x2 maxpool window of branch group g, scaled by 1/(PH*PW)."""
    ph, pw = oh // 2, ow // 2
    m = np.zeros((8, mp), np.float32)
    for g in range(3):
        for pi in range(ph):
            for pj in range(pw):
                m[g, g * g_rows + (2 * pi + 1) * s + (2 * pj + 1)] = 1.0 / (ph * pw)
    return m


# ------------------------------- model forward --------------------------------

def multibranch_forward(original_x, bright_x, dark_x, fp):
    """Full forward pass == one fused Pallas kernel, grid parallel over batch."""
    B, C, H, W = original_x.shape
    OH = (H + 2 - 2) // 2 + 1
    OW = (W + 2 - 2) // 2 + 1
    S = OW + 1                               # plane row stride (1 left pad col)
    G = (OH + 2) * S                         # plane rows per image
    MP = ((3 * G + 7) // 8) * 8              # plane rows per batch element (padded)
    assert C == C_IN
    assert S + 1 <= HALO and 2 * OH == H + 2 and 2 * OW == W + 2

    # Branches share weights -> batch them, batch-major so the grid splits per
    # batch element (v7x: one element per TensorCore).
    x = jnp.stack([original_x, bright_x, dark_x], axis=1).reshape(3 * B, C, H, W)
    x = jnp.transpose(x, (0, 2, 3, 1)).astype(jnp.float32)                 # NHWC
    xp = jnp.pad(x, ((0, 0), (1, 1), (1, 1), (0, 0)))                      # (3B,H+2,W+2,C)
    # conv1 im2col == space-to-depth for a 2x2 / stride-2 window.
    pch = xp.reshape(3 * B, OH, 2, OW, 2, C).transpose(0, 1, 3, 2, 4, 5)
    pch = pch.reshape(3 * B, OH, OW, 4 * C)
    a1 = jnp.concatenate(
        [pch, jnp.ones((3 * B, OH, OW, 1), jnp.float32),
         jnp.zeros((3 * B, OH, OW, KIN - 4 * C - 1), jnp.float32)], axis=-1)
    # Embed into the zero-padded conv plane (1 pad row top/bottom, 1 pad col left).
    a1 = jnp.pad(a1, ((0, 0), (1, 1), (1, 0), (0, 0)))                     # (3B,OH+2,S,KIN)
    a1 = a1.reshape(B, 3 * G, KIN)
    a1 = jnp.pad(a1, ((0, 0), (0, MP - 3 * G), (0, 0))).reshape(B * MP, KIN)

    pool = jnp.asarray(_pool_matrix(OH, OW, S, G, MP))

    flops = 2 * B * MP * 128 * (KIN + 9 * C1 + 9 * C2 + 8) + 2 * B * 6 * 144 * FCL
    bytes_accessed = 4 * (a1.size + fp['cw'].size + pool.size + fp['fcw'].size
                          + B * 8 * 128)

    kern = functools.partial(_fused_forward_kernel, mp=MP, s=S)
    out = pl.pallas_call(
        kern,
        out_shape=jax.ShapeDtypeStruct((B, 8, 128), jnp.float32),
        grid=(B,),
        in_specs=[
            pl.BlockSpec((MP, KIN), lambda i: (i, 0)),
            pl.BlockSpec((CW_ROWS, 128), lambda i: (0, 0)),
            pl.BlockSpec((8, MP), lambda i: (0, 0)),
            pl.BlockSpec((FCW_ROWS, FCL), lambda i: (0, 0)),
        ],
        out_specs=pl.BlockSpec((1, 8, 128), lambda i: (i, 0, 0)),
        scratch_shapes=[pltpu.VMEM((MP + 2 * HALO, 128), jnp.float32)],
        compiler_params=pltpu.CompilerParams(
            dimension_semantics=("parallel",)),
        cost_estimate=pl.CostEstimate(flops=int(flops), transcendentals=0,
                                      bytes_accessed=int(bytes_accessed)),
    )(a1, fp['cw'], pool, fp['fcw'])
    return out[:, 0, 0:NCLS]


# ------------------------------ pure-JAX reference -----------------------------

def ref_forward(xo, xb, xd, p):
    def bn4(x, g, be, m, v):
        return ((x - m[None, :, None, None]) /
                jnp.sqrt(v[None, :, None, None] + EPS) *
                g[None, :, None, None] + be[None, :, None, None])

    def conv(x, w, b, stride):
        y = lax.conv_general_dilated(x, w, (stride, stride), [(1, 1), (1, 1)],
                                     dimension_numbers=('NCHW', 'OIHW', 'NCHW'))
        return y + b[None, :, None, None]

    def branch(x):
        y = jnp.maximum(bn4(conv(x, p['c1w'], p['c1b'], 2),
                            p['bn1g'], p['bn1b'], p['bn1m'], p['bn1v']), 0)
        y = jnp.maximum(bn4(conv(y, p['c2w'], p['c2b'], 1),
                            p['bn2g'], p['bn2b'], p['bn2m'], p['bn2v']), 0)
        y = jnp.maximum(bn4(conv(y, p['c3w'], p['c3b'], 1),
                            p['bn3g'], p['bn3b'], p['bn3m'], p['bn3v']), 0)
        y = lax.reduce_window(y, -jnp.inf, lax.max,
                              (1, 1, 2, 2), (1, 1, 2, 2), 'VALID')
        return jnp.mean(y, axis=(2, 3))

    feat = jnp.concatenate([branch(xo), branch(xb), branch(xd)], axis=1)

    def bn1(x, g, be, m, v):
        return (x - m) / jnp.sqrt(v + EPS) * g + be

    h = jnp.maximum(bn1(feat @ p['l1w'].T + p['l1b'],
                        p['fb1g'], p['fb1b'], p['fb1m'], p['fb1v']), 0)
    h = jnp.maximum(bn1(h @ p['l2w'].T + p['l2b'],
                        p['fb2g'], p['fb2b'], p['fb2m'], p['fb2v']), 0)
    h = jnp.maximum(bn1(h @ p['l3w'].T + p['l3b'],
                        p['fb3g'], p['fb3b'], p['fb3m'], p['fb3v']), 0)
    return h @ p['l4w'].T + p['l4b']


# --------------------------------- parameters ----------------------------------

def init_params(key):
    ks = iter(jax.random.split(key, 64))

    def nrm(shape, scale=0.1):
        return jax.random.normal(next(ks), shape, jnp.float32) * scale

    def bn(n, pref):
        return {
            f'{pref}g': 1.0 + nrm((n,)),
            f'{pref}b': nrm((n,)),
            f'{pref}m': nrm((n,)),
            f'{pref}v': 1.0 + jnp.abs(nrm((n,))),
        }

    p = {}
    p['c1w'] = nrm((24, 3, 2, 2));   p['c1b'] = nrm((24,))
    p.update(bn(24, 'bn1'))
    p['c2w'] = nrm((48, 24, 3, 3));  p['c2b'] = nrm((48,))
    p.update(bn(48, 'bn2'))
    p['c3w'] = nrm((96, 48, 3, 3));  p['c3b'] = nrm((96,))
    p.update(bn(96, 'bn3'))
    p['l1w'] = nrm((144, 288));      p['l1b'] = nrm((144,))
    p.update(bn(144, 'fb1'))
    p['l2w'] = nrm((72, 144));       p['l2b'] = nrm((72,))
    p.update(bn(72, 'fb2'))
    p['l3w'] = nrm((14, 72));        p['l3b'] = nrm((14,))
    p.update(bn(14, 'fb3'))
    p['l4w'] = nrm((7, 14));         p['l4b'] = nrm((7,))
    return p


# ------------------------------------ main --------------------------------------

if __name__ == "__main__":
    key = jax.random.PRNGKey(0)
    kp, k1, k2, k3 = jax.random.split(key, 4)
    params = init_params(kp)
    folded = prepare_params(params)          # BN folding / packing once, outside jit

    B, C, H, W = 2, 3, 16, 16
    original_x = jax.random.normal(k1, (B, C, H, W), jnp.float32)
    bright_x = jax.random.normal(k2, (B, C, H, W), jnp.float32)
    dark_x = jax.random.normal(k3, (B, C, H, W), jnp.float32)

    fwd = jax.jit(multibranch_forward)
    out = jax.block_until_ready(fwd(original_x, bright_x, dark_x, folded))

    ref = jax.block_until_ready(ref_forward(original_x, bright_x, dark_x, params))

    assert out.shape == (B, NCLS), out.shape
    assert bool(jnp.all(jnp.isfinite(out)))
    assert bool(jnp.allclose(out, ref, rtol=1e-3, atol=1e-3)), (
        f"max abs diff {float(jnp.max(jnp.abs(out - ref)))}")
    print("KERNEL_OK")
</pallas_src>

<mosaic_0001>
module attributes {stable_mosaic.version = 11 : i64} {
  func.func @_fused_forward_kernel(%arg0: i32, %arg1: memref<336x16xf32, #tpu.memory_space<vmem>>, %arg2: memref<680x128xf32, #tpu.memory_space<vmem>>, %arg3: memref<8x336xf32, #tpu.memory_space<vmem>>, %arg4: memref<848x144xf32, #tpu.memory_space<vmem>>, %arg5: memref<1x8x128xf32, #tpu.memory_space<vmem>>, %arg6: memref<368x128xf32, #tpu.memory_space<vmem>>) attributes {dimension_semantics = [#tpu.dimension_semantics<parallel>], iteration_bounds = array<i64: 2>, scalar_prefetch = 0 : i64, scratch_operands = 1 : i64, tpu.core_type = #tpu.core_type<tc>, window_params = [{transform_indices = @transform_0, window_bounds = array<i64: 336, 16>}, {pipeline_mode = #tpu.pipeline_mode<synchronous>, transform_indices = @transform_1, window_bounds = array<i64: 680, 128>}, {pipeline_mode = #tpu.pipeline_mode<synchronous>, transform_indices = @transform_2, window_bounds = array<i64: 8, 336>}, {pipeline_mode = #tpu.pipeline_mode<synchronous>, transform_indices = @transform_3, window_bounds = array<i64: 848, 144>}, {transform_indices = @transform_4, window_bounds = array<i64: 1, 8, 128>}]} {
    %cst = arith.constant 0.000000e+00 : f32
    %0 = vector.broadcast %cst : f32 to vector<16x128xf32>
    %c0 = arith.constant 0 : index
    %c0_0 = arith.constant 0 : index
    %1 = vector.load %arg6[%c0, %c0_0] : memref<368x128xf32, #tpu.memory_space<vmem>>, vector<16x128xf32>
    tpu.vector_store %arg6[%c0, %c0_0], %0 {strides = array<i32>} : memref<368x128xf32, #tpu.memory_space<vmem>>, vector<16x128xf32>,
    %c352 = arith.constant 352 : index
    %c0_1 = arith.constant 0 : index
    %2 = vector.load %arg6[%c352, %c0_1] : memref<368x128xf32, #tpu.memory_space<vmem>>, vector<16x128xf32>
    tpu.vector_store %arg6[%c352, %c0_1], %0 {strides = array<i32>} : memref<368x128xf32, #tpu.memory_space<vmem>>, vector<16x128xf32>,
    %c0_2 = arith.constant 0 : index
    %c12 = arith.constant 12 : index
    %3 = vector.load %arg1[%c0_2, %c12] : memref<336x16xf32, #tpu.memory_space<vmem>>, vector<336x1xf32>
    %c0_3 = arith.constant 0 : index
    %c0_4 = arith.constant 0 : index
    %4 = vector.load %arg1[%c0_3, %c0_4] : memref<336x16xf32, #tpu.memory_space<vmem>>, vector<336x16xf32>
    %c0_5 = arith.constant 0 : index
    %c0_6 = arith.constant 0 : index
    %5 = vector.load %arg2[%c0_5, %c0_6] : memref<680x128xf32, #tpu.memory_space<vmem>>, vector<16x128xf32>
    %cst_7 = arith.constant dense<0.000000e+00> : vector<336x128xf32>
    %6 = tpu.matmul %4, %5, %cst_7 {dimension_numbers = #tpu.dot_dimension_numbers<[1], [0], [0], [1], [0, 0, 1, 1], [], []>} : vector<336x16xf32>, vector<16x128xf32>, vector<336x128xf32> -> vector<336x128xf32>
    %cst_8 = arith.constant 0.000000e+00 : f32
    %7 = vector.broadcast %cst_8 : f32 to vector<336x128xf32>
    %8 = arith.maximumf %6, %7 : vector<336x128xf32>
    %c16 = arith.constant 16 : index
    %c0_9 = arith.constant 0 : index
    %9 = vector.load %arg6[%c16, %c0_9] : memref<368x128xf32, #tpu.memory_space<vmem>>, vector<336x128xf32>
    tpu.vector_store %arg6[%c16, %c0_9], %8 {strides = array<i32>} : memref<368x128xf32, #tpu.memory_space<vmem>>, vector<336x128xf32>,
    %c5 = arith.constant 5 : index
    %c0_10 = arith.constant 0 : index
    %10 = vector.load %arg6[%c5, %c0_10] : memref<368x128xf32, #tpu.memory_space<vmem>>, vector<336x24xf32>
    %c16_11 = arith.constant 16 : index
    %c0_12 = arith.constant 0 : index
    %11 = vector.load %arg2[%c16_11, %c0_12] : memref<680x128xf32, #tpu.memory_space<vmem>>, vector<24x128xf32>
    %cst_13 = arith.constant dense<0.000000e+00> : vector<336x128xf32>
    %12 = tpu.matmul %10, %11, %cst_13 {dimension_numbers = #tpu.dot_dimension_numbers<[1], [0], [0], [1], [0, 0, 1, 1], [], []>} : vector<336x24xf32>, vector<24x128xf32>, vector<336x128xf32> -> vector<336x128xf32>
    %c6 = arith.constant 6 : index
    %c0_14 = arith.constant 0 : index
    %13 = vector.load %arg6[%c6, %c0_14] : memref<368x128xf32, #tpu.memory_space<vmem>>, vector<336x24xf32>
    %c40 = arith.constant 40 : index
    %c0_15 = arith.constant 0 : index
    %14 = vector.load %arg2[%c40, %c0_15] : memref<680x128xf32, #tpu.memory_space<vmem>>, vector<24x128xf32>
    %cst_16 = arith.constant dense<0.000000e+00> : vector<336x128xf32>
    %15 = tpu.matmul %13, %14, %cst_16 {dimension_numbers = #tpu.dot_dimension_numbers<[1], [0], [0], [1], [0, 0, 1, 1], [], []>} : vector<336x24xf32>, vector<24x128xf32>, vector<336x128xf32> -> vector<336x128xf32>
    %16 = arith.addf %12, %15 : vector<336x128xf32>
    %c7 = arith.constant 7 : index
    %c0_17 = arith.constant 0 : index
    %17 = vector.load %arg6[%c7, %c0_17] : memref<368x128xf32, #tpu.memory_space<vmem>>, vector<336x24xf32>
    %c64 = arith.constant 64 : index
    %c0_18 = arith.constant 0 : index
    %18 = vector.load %arg2[%c64, %c0_18] : memref<680x128xf32, #tpu.memory_space<vmem>>, vector<24x128xf32>
    %cst_19 = arith.constant dense<0.000000e+00> : vector<336x128xf32>
    %19 = tpu.matmul %17, %18, %cst_19 {dimension_numbers = #tpu.dot_dimension_numbers<[1], [0], [0], [1], [0, 0, 1, 1], [], []>} : vector<336x24xf32>, vector<24x128xf32>, vector<336x128xf32> -> vector<336x128xf32>
    %20 = arith.addf %16, %19 : vector<336x128xf32>
    %c15 = arith.constant 15 : index
    %c0_20 = arith.constant 0 : index
    %21 = vector.load %arg6[%c15, %c0_20] : memref<368x128xf32, #tpu.memory_space<vmem>>, vector<336x24xf32>
    %c88 = arith.constant 88 : index
    %c0_21 = arith.constant 0 : index
    %22 = vector.load %arg2[%c88, %c0_21] : memref<680x128xf32, #tpu.memory_space<vmem>>, vector<24x128xf32>
    %cst_22 = arith.constant dense<0.000000e+00> : vector<336x128xf32>
    %23 = tpu.matmul %21, %22, %cst_22 {dimension_numbers = #tpu.dot_dimension_numbers<[1], [0], [0], [1], [0, 0, 1, 1], [], []>} : vector<336x24xf32>, vector<24x128xf32>, vector<336x128xf32> -> vector<336x128xf32>
    %24 = arith.addf %20, %23 : vector<336x128xf32>
    %c16_23 = arith.constant 16 : index
    %c0_24 = arith.constant 0 : index
    %25 = vector.load %arg6[%c16_23, %c0_24] : memref<368x128xf32, #tpu.memory_space<vmem>>, vector<336x24xf32>
    %c112 = arith.constant 112 : index
    %c0_25 = arith.constant 0 : index
    %26 = vector.load %arg2[%c112, %c0_25] : memref<680x128xf32, #tpu.memory_space<vmem>>, vector<24x128xf32>
    %cst_26 = arith.constant dense<0.000000e+00> : vector<336x128xf32>
    %27 = tpu.matmul %25, %26, %cst_26 {dimension_numbers = #tpu.dot_dimension_numbers<[1], [0], [0], [1], [0, 0, 1, 1], [], []>} : vector<336x24xf32>, vector<24x128xf32>, vector<336x128xf32> -> vector<336x128xf32>
    %28 = arith.addf %24, %27 : vector<336x128xf32>
    %c17 = arith.constant 17 : index
    %c0_27 = arith.constant 0 : index
    %29 = vector.load %arg6[%c17, %c0_27] : memref<368x128xf32, #tpu.memory_space<vmem>>, vector<336x24xf32>
    %c136 = arith.constant 136 : index
    %c0_28 = arith.constant 0 : index
    %30 = vector.load %arg2[%c136, %c0_28] : memref<680x128xf32, #tpu.memory_space<vmem>>, vector<24x128xf32>
    %cst_29 = arith.constant dense<0.000000e+00> : vector<336x128xf32>
    %31 = tpu.matmul %29, %30, %cst_29 {dimension_numbers = #tpu.dot_dimension_numbers<[1], [0], [0], [1], [0, 0, 1, 1], [], []>} : vector<336x24xf32>, vector<24x128xf32>, vector<336x128xf32> -> vector<336x128xf32>
    %32 = arith.addf %28, %31 : vector<336x128xf32>
    %c25 = arith.constant 25 : index
    %c0_30 = arith.constant 0 : index
    %33 = vector.load %arg6[%c25, %c0_30] : memref<368x128xf32, #tpu.memory_space<vmem>>, vector<336x24xf32>
    %c160 = arith.constant 160 : index
    %c0_31 = arith.constant 0 : index
    %34 = vector.load %arg2[%c160, %c0_31] : memref<680x128xf32, #tpu.memory_space<vmem>>, vector<24x128xf32>
    %cst_32 = arith.constant dense<0.000000e+00> : vector<336x128xf32>
    %35 = tpu.matmul %33, %34, %cst_32 {dimension_numbers = #tpu.dot_dimension_numbers<[1], [0], [0], [1], [0, 0, 1, 1], [], []>} : vector<336x24xf32>, vector<24x128xf32>, vector<336x128xf32> -> vector<336x128xf32>
    %36 = arith.addf %32, %35 : vector<336x128xf32>
    %c26 = arith.constant 26 : index
    %c0_33 = arith.constant 0 : index
    %37 = vector.load %arg6[%c26, %c0_33] : memref<368x128xf32, #tpu.memory_space<vmem>>, vector<336x24xf32>
    %c184 = arith.constant 184 : index
    %c0_34 = arith.constant 0 : index
    %38 = vector.load %arg2[%c184, %c0_34] : memref<680x128xf32, #tpu.memory_space<vmem>>, vector<24x128xf32>
    %cst_35 = arith.constant dense<0.000000e+00> : vector<336x128xf32>
    %39 = tpu.matmul %37, %38, %cst_35 {dimension_numbers = #tpu.dot_dimension_numbers<[1], [0], [0], [1], [0, 0, 1, 1], [], []>} : vector<336x24xf32>, vector<24x128xf32>, vector<336x128xf32> -> vector<336x128xf32>
    %40 = arith.addf %36, %39 : vector<336x128xf32>
    %c27 = arith.constant 27 : index
    %c0_36 = arith.constant 0 : index
    %41 = vector.load %arg6[%c27, %c0_36] : memref<368x128xf32, #tpu.memory_space<vmem>>, vector<336x24xf32>
    %c208 = arith.constant 208 : index
    %c0_37 = arith.constant 0 : index
    %42 = vector.load %arg2[%c208, %c0_37] : memref<680x128xf32, #tpu.memory_space<vmem>>, vector<24x128xf32>
    %cst_38 = arith.constant dense<0.000000e+00> : vector<336x128xf32>
    %43 = tpu.matmul %41, %42, %cst_38 {dimension_numbers = #tpu.dot_dimension_numbers<[1], [0], [0], [1], [0, 0, 1, 1], [], []>} : vector<336x24xf32>, vector<24x128xf32>, vector<336x128xf32> -> vector<336x128xf32>
    %44 = arith.addf %40, %43 : vector<336x128xf32>
    %c664 = arith.constant 664 : index
    %c0_39 = arith.constant 0 : index
    %45 = vector.load %arg2[%c664, %c0_39] : memref<680x128xf32, #tpu.memory_space<vmem>>, vector<1x128xf32>
    %46 = vector.broadcast %45 : vector<1x128xf32> to vector<336x128xf32>
    %47 = arith.addf %44, %46 : vector<336x128xf32>
    %cst_40 = arith.constant 0.000000e+00 : f32
    %48 = vector.broadcast %cst_40 : f32 to vector<336x128xf32>
    %49 = arith.maximumf %47, %48 : vector<336x128xf32>
    %50 = vector.broadcast %3 : vector<336x1xf32> to vector<336x128xf32>
    %51 = arith.mulf %49, %50 : vector<336x128xf32>
    %c16_41 = arith.constant 16 : index
    %c0_42 = arith.constant 0 : index
    %52 = vector.load %arg6[%c16_41, %c0_42] : memref<368x128xf32, #tpu.memory_space<vmem>>, vector<336x128xf32>
    tpu.vector_store %arg6[%c16_41, %c0_42], %51 {strides = array<i32>} : memref<368x128xf32, #tpu.memory_space<vmem>>, vector<336x128xf32>,
    %c5_43 = arith.constant 5 : index
    %c0_44 = arith.constant 0 : index
    %53 = vector.load %arg6[%c5_43, %c0_44] : memref<368x128xf32, #tpu.memory_space<vmem>>, vector<336x48xf32>
    %c232 = arith.constant 232 : index
    %c0_45 = arith.constant 0 : index
    %54 = vector.load %arg2[%c232, %c0_45] : memref<680x128xf32, #tpu.memory_space<vmem>>, vector<48x128xf32>
    %cst_46 = arith.constant dense<0.000000e+00> : vector<336x128xf32>
    %55 = tpu.matmul %53, %54, %cst_46 {dimension_numbers = #tpu.dot_dimension_numbers<[1], [0], [0], [1], [0, 0, 1, 1], [], []>} : vector<336x48xf32>, vector<48x128xf32>, vector<336x128xf32> -> vector<336x128xf32>
    %c6_47 = arith.constant 6 : index
    %c0_48 = arith.constant 0 : index
    %56 = vector.load %arg6[%c6_47, %c0_48] : memref<368x128xf32, #tpu.memory_space<vmem>>, vector<336x48xf32>
    %c280 = arith.constant 280 : index
    %c0_49 = arith.constant 0 : index
    %57 = vector.load %arg2[%c280, %c0_49] : memref<680x128xf32, #tpu.memory_space<vmem>>, vector<48x128xf32>
    %cst_50 = arith.constant dense<0.000000e+00> : vector<336x128xf32>
    %58 = tpu.matmul %56, %57, %cst_50 {dimension_numbers = #tpu.dot_dimension_numbers<[1], [0], [0], [1], [0, 0, 1, 1], [], []>} : vector<336x48xf32>, vector<48x128xf32>, vector<336x128xf32> -> vector<336x128xf32>
    %59 = arith.addf %55, %58 : vector<336x128xf32>
    %c7_51 = arith.constant 7 : index
    %c0_52 = arith.constant 0 : index
    %60 = vector.load %arg6[%c7_51, %c0_52] : memref<368x128xf32, #tpu.memory_space<vmem>>, vector<336x48xf32>
    %c328 = arith.constant 328 : index
    %c0_53 = arith.constant 0 : index
    %61 = vector.load %arg2[%c328, %c0_53] : memref<680x128xf32, #tpu.memory_space<vmem>>, vector<48x128xf32>
    %cst_54 = arith.constant dense<0.000000e+00> : vector<336x128xf32>
    %62 = tpu.matmul %60, %61, %cst_54 {dimension_numbers = #tpu.dot_dimension_numbers<[1], [0], [0], [1], [0, 0, 1, 1], [], []>} : vector<336x48xf32>, vector<48x128xf32>, vector<336x128xf32> -> vector<336x128xf32>
    %63 = arith.addf %59, %62 : vector<336x128xf32>
    %c15_55 = arith.constant 15 : index
    %c0_56 = arith.constant 0 : index
    %64 = vector.load %arg6[%c15_55, %c0_56] : memref<368x128xf32, #tpu.memory_space<vmem>>, vector<336x48xf32>
    %c376 = arith.constant 376 : index
    %c0_57 = arith.constant 0 : index
    %65 = vector.load %arg2[%c376, %c0_57] : memref<680x128xf32, #tpu.memory_space<vmem>>, vector<48x128xf32>
    %cst_58 = arith.constant dense<0.000000e+00> : vector<336x128xf32>
    %66 = tpu.matmul %64, %65, %cst_58 {dimension_numbers = #tpu.dot_dimension_numbers<[1], [0], [0], [1], [0, 0, 1, 1], [], []>} : vector<336x48xf32>, vector<48x128xf32>, vector<336x128xf32> -> vector<336x128xf32>
    %67 = arith.addf %63, %66 : vector<336x128xf32>
    %c16_59 = arith.constant 16 : index
    %c0_60 = arith.constant 0 : index
    %68 = vector.load %arg6[%c16_59, %c0_60] : memref<368x128xf32, #tpu.memory_space<vmem>>, vector<336x48xf32>
    %c424 = arith.constant 424 : index
    %c0_61 = arith.constant 0 : index
    %69 = vector.load %arg2[%c424, %c0_61] : memref<680x128xf32, #tpu.memory_space<vmem>>, vector<48x128xf32>
    %cst_62 = arith.constant dense<0.000000e+00> : vector<336x128xf32>
    %70 = tpu.matmul %68, %69, %cst_62 {dimension_numbers = #tpu.dot_dimension_numbers<[1], [0], [0], [1], [0, 0, 1, 1], [], []>} : vector<336x48xf32>, vector<48x128xf32>, vector<336x128xf32> -> vector<336x128xf32>
    %71 = arith.addf %67, %70 : vector<336x128xf32>
    %c17_63 = arith.constant 17 : index
    %c0_64 = arith.constant 0 : index
    %72 = vector.load %arg6[%c17_63, %c0_64] : memref<368x128xf32, #tpu.memory_space<vmem>>, vector<336x48xf32>
    %c472 = arith.constant 472 : index
    %c0_65 = arith.constant 0 : index
    %73 = vector.load %arg2[%c472, %c0_65] : memref<680x128xf32, #tpu.memory_space<vmem>>, vector<48x128xf32>
    %cst_66 = arith.constant dense<0.000000e+00> : vector<336x128xf32>
    %74 = tpu.matmul %72, %73, %cst_66 {dimension_numbers = #tpu.dot_dimension_numbers<[1], [0], [0], [1], [0, 0, 1, 1], [], []>} : vector<336x48xf32>, vector<48x128xf32>, vector<336x128xf32> -> vector<336x128xf32>
    %75 = arith.addf %71, %74 : vector<336x128xf32>
    %c25_67 = arith.constant 25 : index
    %c0_68 = arith.constant 0 : index
    %76 = vector.load %arg6[%c25_67, %c0_68] : memref<368x128xf32, #tpu.memory_space<vmem>>, vector<336x48xf32>
    %c520 = arith.constant 520 : index
    %c0_69 = arith.constant 0 : index
    %77 = vector.load %arg2[%c520, %c0_69] : memref<680x128xf32, #tpu.memory_space<vmem>>, vector<48x128xf32>
    %cst_70 = arith.constant dense<0.000000e+00> : vector<336x128xf32>
    %78 = tpu.matmul %76, %77, %cst_70 {dimension_numbers = #tpu.dot_dimension_numbers<[1], [0], [0], [1], [0, 0, 1, 1], [], []>} : vector<336x48xf32>, vector<48x128xf32>, vector<336x128xf32> -> vector<336x128xf32>
    %79 = arith.addf %75, %78 : vector<336x128xf32>
    %c26_71 = arith.constant 26 : index
    %c0_72 = arith.constant 0 : index
    %80 = vector.load %arg6[%c26_71, %c0_72] : memref<368x128xf32, #tpu.memory_space<vmem>>, vector<336x48xf32>
    %c568 = arith.constant 568 : index
    %c0_73 = arith.constant 0 : index
    %81 = vector.load %arg2[%c568, %c0_73] : memref<680x128xf32, #tpu.memory_space<vmem>>, vector<48x128xf32>
    %cst_74 = arith.constant dense<0.000000e+00> : vector<336x128xf32>
    %82 = tpu.matmul %80, %81, %cst_74 {dimension_numbers = #tpu.dot_dimension_numbers<[1], [0], [0], [1], [0, 0, 1, 1], [], []>} : vector<336x48xf32>, vector<48x128xf32>, vector<336x128xf32> -> vector<336x128xf32>
    %83 = arith.addf %79, %82 : vector<336x128xf32>
    %c27_75 = arith.constant 27 : index
    %c0_76 = arith.constant 0 : index
    %84 = vector.load %arg6[%c27_75, %c0_76] : memref<368x128xf32, #tpu.memory_space<vmem>>, vector<336x48xf32>
    %c616 = arith.constant 616 : index
    %c0_77 = arith.constant 0 : index
    %85 = vector.load %arg2[%c616, %c0_77] : memref<680x128xf32, #tpu.memory_space<vmem>>, vector<48x128xf32>
    %cst_78 = arith.constant dense<0.000000e+00> : vector<336x128xf32>
    %86 = tpu.matmul %84, %85, %cst_78 {dimension_numbers = #tpu.dot_dimension_numbers<[1], [0], [0], [1], [0, 0, 1, 1], [], []>} : vector<336x48xf32>, vector<48x128xf32>, vector<336x128xf32> -> vector<336x128xf32>
    %87 = arith.addf %83, %86 : vector<336x128xf32>
    %c672 = arith.constant 672 : index
    %c0_79 = arith.constant 0 : index
    %88 = vector.load %arg2[%c672, %c0_79] : memref<680x128xf32, #tpu.memory_space<vmem>>, vector<1x128xf32>
    %89 = vector.broadcast %88 : vector<1x128xf32> to vector<336x128xf32>
    %90 = arith.addf %87, %89 : vector<336x128xf32>
    %cst_80 = arith.constant 0.000000e+00 : f32
    %91 = vector.broadcast %cst_80 : f32 to vector<336x128xf32>
    %92 = arith.maximumf %90, %91 : vector<336x128xf32>
    %93 = vector.broadcast %3 : vector<336x1xf32> to vector<336x128xf32>
    %94 = arith.mulf %92, %93 : vector<336x128xf32>
    %c16_81 = arith.constant 16 : index
    %c0_82 = arith.constant 0 : index
    %95 = vector.load %arg6[%c16_81, %c0_82] : memref<368x128xf32, #tpu.memory_space<vmem>>, vector<336x128xf32>
    tpu.vector_store %arg6[%c16_81, %c0_82], %94 {strides = array<i32>} : memref<368x128xf32, #tpu.memory_space<vmem>>, vector<336x128xf32>,
    %c16_83 = arith.constant 16 : index
    %c0_84 = arith.constant 0 : index
    %96 = vector.load %arg6[%c16_83, %c0_84] : memref<368x128xf32, #tpu.memory_space<vmem>>, vector<336x128xf32>
    %c17_85 = arith.constant 17 : index
    %c0_86 = arith.constant 0 : index
    %97 = vector.load %arg6[%c17_85, %c0_86] : memref<368x128xf32, #tpu.memory_space<vmem>>, vector<336x128xf32>
    %98 = arith.maximumf %96, %97 : vector<336x128xf32>
    %c26_87 = arith.constant 26 : index
    %c0_88 = arith.constant 0 : index
    %99 = vector.load %arg6[%c26_87, %c0_88] : memref<368x128xf32, #tpu.memory_space<vmem>>, vector<336x128xf32>
    %c27_89 = arith.constant 27 : index
    %c0_90 = arith.constant 0 : index
    %100 = vector.load %arg6[%c27_89, %c0_90] : memref<368x128xf32, #tpu.memory_space<vmem>>, vector<336x128xf32>
    %101 = arith.maximumf %99, %100 : vector<336x128xf32>
    %102 = arith.maximumf %98, %101 : vector<336x128xf32>
    %c0_91 = arith.constant 0 : index
    %c0_92 = arith.constant 0 : index
    %103 = vector.load %arg3[%c0_91, %c0_92] : memref<8x336xf32, #tpu.memory_space<vmem>>, vector<8x336xf32>
    %cst_93 = arith.constant dense<0.000000e+00> : vector<8x128xf32>
    %104 = tpu.matmul %103, %102, %cst_93 {dimension_numbers = #tpu.dot_dimension_numbers<[1], [0], [0], [1], [0, 0, 1, 1], [], []>} : vector<8x336xf32>, vector<336x128xf32>, vector<8x128xf32> -> vector<8x128xf32>
    %105 = vector.extract_strided_slice %104 {offsets = [0, 0], sizes = [1, 128], strides = [1, 1]} : vector<8x128xf32> to vector<1x128xf32>
    %c0_94 = arith.constant 0 : index
    %c0_95 = arith.constant 0 : index
    %106 = vector.load %arg4[%c0_94, %c0_95] : memref<848x144xf32, #tpu.memory_space<vmem>>, vector<128x144xf32>
    %cst_96 = arith.constant dense<0.000000e+00> : vector<1x144xf32>
    %107 = tpu.matmul %105, %106, %cst_96 {dimension_numbers = #tpu.dot_dimension_numbers<[1], [0], [0], [1], [0, 0, 1, 1], [], []>} : vector<1x128xf32>, vector<128x144xf32>, vector<1x144xf32> -> vector<1x144xf32>
    %108 = vector.extract_strided_slice %104 {offsets = [1, 0], sizes = [1, 128], strides = [1, 1]} : vector<8x128xf32> to vector<1x128xf32>
    %c128 = arith.constant 128 : index
    %c0_97 = arith.constant 0 : index
    %109 = vector.load %arg4[%c128, %c0_97] : memref<848x144xf32, #tpu.memory_space<vmem>>, vector<128x144xf32>
    %cst_98 = arith.constant dense<0.000000e+00> : vector<1x144xf32>
    %110 = tpu.matmul %108, %109, %cst_98 {dimension_numbers = #tpu.dot_dimension_numbers<[1], [0], [0], [1], [0, 0, 1, 1], [], []>} : vector<1x128xf32>, vector<128x144xf32>, vector<1x144xf32> -> vector<1x144xf32>
    %111 = arith.addf %107, %110 : vector<1x144xf32>
    %112 = vector.extract_strided_slice %104 {offsets = [2, 0], sizes = [1, 128], strides = [1, 1]} : vector<8x128xf32> to vector<1x128xf32>
    %c256 = arith.constant 256 : index
    %c0_99 = arith.constant 0 : index
    %113 = vector.load %arg4[%c256, %c0_99] : memref<848x144xf32, #tpu.memory_space<vmem>>, vector<128x144xf32>
    %cst_100 = arith.constant dense<0.000000e+00> : vector<1x144xf32>
    %114 = tpu.matmul %112, %113, %cst_100 {dimension_numbers = #tpu.dot_dimension_numbers<[1], [0], [0], [1], [0, 0, 1, 1], [], []>} : vector<1x128xf32>, vector<128x144xf32>, vector<1x144xf32> -> vector<1x144xf32>
    %115 = arith.addf %111, %114 : vector<1x144xf32>
    %c816 = arith.constant 816 : index
    %c0_101 = arith.constant 0 : index
    %116 = vector.load %arg4[%c816, %c0_101] : memref<848x144xf32, #tpu.memory_space<vmem>>, vector<1x144xf32>
    %117 = arith.addf %115, %116 : vector<1x144xf32>
    %cst_102 = arith.constant 0.000000e+00 : f32
    %118 = vector.broadcast %cst_102 : f32 to vector<1x144xf32>
    %119 = arith.maximumf %117, %118 : vector<1x144xf32>
    %c384 = arith.constant 384 : index
    %c0_103 = arith.constant 0 : index
    %120 = vector.load %arg4[%c384, %c0_103] : memref<848x144xf32, #tpu.memory_space<vmem>>, vector<144x144xf32>
    %cst_104 = arith.constant dense<0.000000e+00> : vector<1x144xf32>
    %121 = tpu.matmul %119, %120, %cst_104 {dimension_numbers = #tpu.dot_dimension_numbers<[1], [0], [0], [1], [0, 0, 1, 1], [], []>} : vector<1x144xf32>, vector<144x144xf32>, vector<1x144xf32> -> vector<1x144xf32>
    %c824 = arith.constant 824 : index
    %c0_105 = arith.constant 0 : index
    %122 = vector.load %arg4[%c824, %c0_105] : memref<848x144xf32, #tpu.memory_space<vmem>>, vector<1x144xf32>
    %123 = arith.addf %121, %122 : vector<1x144xf32>
    %cst_106 = arith.constant 0.000000e+00 : f32
    %124 = vector.broadcast %cst_106 : f32 to vector<1x144xf32>
    %125 = arith.maximumf %123, %124 : vector<1x144xf32>
    %c528 = arith.constant 528 : index
    %c0_107 = arith.constant 0 : index
    %126 = vector.load %arg4[%c528, %c0_107] : memref<848x144xf32, #tpu.memory_space<vmem>>, vector<144x144xf32>
    %cst_108 = arith.constant dense<0.000000e+00> : vector<1x144xf32>
    %127 = tpu.matmul %125, %126, %cst_108 {dimension_numbers = #tpu.dot_dimension_numbers<[1], [0], [0], [1], [0, 0, 1, 1], [], []>} : vector<1x144xf32>, vector<144x144xf32>, vector<1x144xf32> -> vector<1x144xf32>
    %c832 = arith.constant 832 : index
    %c0_109 = arith.constant 0 : index
    %128 = vector.load %arg4[%c832, %c0_109] : memref<848x144xf32, #tpu.memory_space<vmem>>, vector<1x144xf32>
    %129 = arith.addf %127, %128 : vector<1x144xf32>
    %cst_110 = arith.constant 0.000000e+00 : f32
    %130 = vector.broadcast %cst_110 : f32 to vector<1x144xf32>
    %131 = arith.maximumf %129, %130 : vector<1x144xf32>
    %c672_111 = arith.constant 672 : index
    %c0_112 = arith.constant 0 : index
    %132 = vector.load %arg4[%c672_111, %c0_112] : memref<848x144xf32, #tpu.memory_space<vmem>>, vector<144x144xf32>
    %cst_113 = arith.constant dense<0.000000e+00> : vector<1x144xf32>
    %133 = tpu.matmul %131, %132, %cst_113 {dimension_numbers = #tpu.dot_dimension_numbers<[1], [0], [0], [1], [0, 0, 1, 1], [], []>} : vector<1x144xf32>, vector<144x144xf32>, vector<1x144xf32> -> vector<1x144xf32>
    %c840 = arith.constant 840 : index
    %c0_114 = arith.constant 0 : index
    %134 = vector.load %arg4[%c840, %c0_114] : memref<848x144xf32, #tpu.memory_space<vmem>>, vector<1x144xf32>
    %135 = arith.addf %133, %134 : vector<1x144xf32>
    %136 = vector.extract_strided_slice %135 {offsets = [0, 0], sizes = [1, 128], strides = [1, 1]} : vector<1x144xf32> to vector<1x128xf32>
    %137 = vector.shape_cast %136 : vector<1x128xf32> to vector<1x128xf32>
    %138 = vector.broadcast %137 : vector<1x128xf32> to vector<8x128xf32>
    %c0_115 = arith.constant 0 : index
    %c0_116 = arith.constant 0 : index
    %c0_117 = arith.constant 0 : index
    %139 = vector.load %arg5[%c0_115, %c0_116, %c0_117] : memref<1x8x128xf32, #tpu.memory_space<vmem>>, vector<1x8x128xf32>
    %140 = vector.shape_cast %139 : vector<1x8x128xf32> to vector<8x128xf32>
    %141 = vector.shape_cast %138 : vector<8x128xf32> to vector<1x8x128xf32>
    tpu.vector_store %arg5[%c0_115, %c0_116, %c0_117], %141 {strides = array<i32>} : memref<1x8x128xf32, #tpu.memory_space<vmem>>, vector<1x8x128xf32>,
    return
  }
  func.func @transform_0(%arg0: i32) -> (i32, i32) {
    %c0_i32 = arith.constant 0 : i32
    %c0_i32_0 = arith.constant 0 : i32
    return %arg0, %c0_i32 : i32, i32
  }
  func.func @transform_1(%arg0: i32) -> (i32, i32) {
    %c0_i32 = arith.constant 0 : i32
    %c0_i32_0 = arith.constant 0 : i32
    %c0_i32_1 = arith.constant 0 : i32
    return %c0_i32, %c0_i32_0 : i32, i32
  }
  func.func @transform_2(%arg0: i32) -> (i32, i32) {
    %c0_i32 = arith.constant 0 : i32
    %c0_i32_0 = arith.constant 0 : i32
    %c0_i32_1 = arith.constant 0 : i32
    return %c0_i32, %c0_i32_0 : i32, i32
  }
  func.func @transform_3(%arg0: i32) -> (i32, i32) {
    %c0_i32 = arith.constant 0 : i32
    %c0_i32_0 = arith.constant 0 : i32
    %c0_i32_1 = arith.constant 0 : i32
    return %c0_i32, %c0_i32_0 : i32, i32
  }
  func.func @transform_4(%arg0: i32) -> (i32, i32, i32) {
    %c0_i32 = arith.constant 0 : i32
    %c0_i32_0 = arith.constant 0 : i32
    %c0_i32_1 = arith.constant 0 : i32
    return %arg0, %c0_i32, %c0_i32_0 : i32, i32, i32
  }
}

</mosaic_0001>

<bundles_post_ra>
// kernel: multibranch_forward.1
= control target key start
LH: loop header
LB: loop body
LE: loop exit
PB: predicated region body
PF: predicated region fallthrough
CT: control target
= control target key end

     0   :  { %s15393_s15 = smov 0   ;;  %s18690_s0 = inlined_call_operand.vmem [shape: f32[672,16], index: 0, kind: input, shape index: {}]   ;;  %s18691_s1 = inlined_call_operand.vmem [shape: f32[680,128], index: 1, kind: input, shape index: {}]   ;;  %s18692_s2 = inlined_call_operand.vmem [shape: f32[8,336], index: 2, kind: input, shape index: {}]   ;;  %s18693_s3 = inlined_call_operand.vmem [shape: f32[848,144], index: 3, kind: input, shape index: {}]   ;;  %s18694_s4 = inlined_call_operand.vmem [shape: f32[2,8,128], index: 4, kind: output, shape index: {}]  }
   0x1 LB: > { %s15399_s16 = sadd.s32 4294967295, %s15362_s15   ;;  %p11094_p0 = scmp.ge.s32.totalorder %s15362_s15, 1  ;;  %s15362_s15 = sphi %s15393_s15, %s14_s15  }
   0x2   : > { %p163_p1 = scmp.lt.s32.totalorder %s15362_s15, 3 }
   0x4   : > { %p164_p2 = pnand %p11094_p0, %p163_p1 }
   0x6   : > { %167 = sbr.rel (%p164_p2) target bundleno = 3293 (0xcdd), region = 36 }
   0xd   : > { %v244_v0 = vld [vmem:[%s18691_s1] sm:$0xff]  ;;  %v245_v1 = vld [vmem:[%s18691_s1 + $0x8] sm:$0xff]  ;;  %s188_s21 = smul.u32 42, %s15399_s16  ;;  %vm246_vm0 = vcmask 130048   ;;  %v820_v46 = vld [vmem:[%s18691_s1 + $0x30] sm:$0xff]  ;;  %v15364_v47 = vmov 0.0  }
   0xe   : > { %v14220_v2 = vpack.c.bf16 %v245_v1, %v244_v0  ;;  %v819_v45 = vld [vmem:[%s18691_s1 + $0x28] sm:$0xff]  ;;  %198 = vst [vmem:[#allocation2] sm:$0xff] %v15364_v47  ;;  %199 = vst [vmem:[#allocation2 + $0x8] sm:$0xff] %v15364_v47  ;;  %v821_v49 = vld [vmem:[%s18691_s1 + $0x38] sm:$0xff]  ;;  %vm822_vm1 = vcmask 195584   ;;  %vm5478_vm2 = vcmask 392192  }
   0xf   : > { %p189_p3 = scmp.lt.s32.totalorder %s188_s21, 83  ;;  %200 = vst [vmem:[#allocation2 + $0x160] sm:$0xff] %v15364_v47  ;;  %201 = vst [vmem:[#allocation2 + $0x168] sm:$0xff] %v15364_v47  ;;  %v14224_v48 = vpack.c.bf16 %v820_v46, %v819_v45  ;;  %v774_v51 = vld [vmem:[%s18691_s1 + $0x10] sm:$0xff]  ;;  %v775_v52 = vld [vmem:[%s18691_s1 + $0x18] sm:$0xff]  ;;  %vm15367_vm3 = vmmov 0  }
  0x10   : > { %14221 = vmatprep.subr.bf16.mxu0 %v14220_v2  ;;  %v15515_v53 = vpack.c.bf16 %v775_v52, %v774_v51  ;;  %vm10188_vm4 = vcmask 654336   ;;  %p194_p4 = scmp.lt.s32.totalorder %s15399_s16, 1 }
  0x11   : > { %14223 = vmatpush3.bf16.msra.mxu0 %v14220_v2  ;;  %s18988_s21 = smov (!%p189_p3, %s188_s21), 83  ;;  %14619 = vmatprep.subr.bf16.mxu1 %v14224_v48 }
  0x12   : > { %s11095_s22 = sshll.u32 %s18988_s21, 3  ;;  %14225 = vmatprep.subr.bf16.mxu0 %v14224_v48  ;;  %14621 = vmatpush3.bf16.msra.mxu1 %v14224_v48  ;;  %s18990_s16 = smov (!%p194_p4, %s15399_s16), 1 }
  0x13   : > { %s15413_s25 = scalar_lea.vmem %s18690_s0, %s11095_s22  ;;  %14620 = vmatprep.subr.mxu1 %v821_v49  ;;  %s11096_s13 = sshll.u32 %s18990_s16, 3 }
  0x14   : > { %v202_v3 = vld [vmem:[%s15413_s25] sm:$0xff]  ;;  %v203_v4 = vld [vmem:[%s15413_s25 + $0x8] sm:$0xff]  ;;  %v204_v5 = vld [vmem:[%s15413_s25 + $0x10] sm:$0xff]  ;;  %s197_s18 = scalar_lea.vmem %s18694_s4, %s11096_s13 }
  0x15   : > { %12838 = vmatprep.mubr.msk.f32.mxu0 %vm246_vm0, %v202_v3  ;;  %v205_v6 = vld [vmem:[%s15413_s25 + $0x18] sm:$0xff]  ;;  %v206_v7 = vld [vmem:[%s15413_s25 + $0x20] sm:$0xff]  ;;  %v207_v8 = vld [vmem:[%s15413_s25 + $0x28] sm:$0xff] }
  0x16   : > { %12839 = vmatmul.mubr.msk.f32.vlgmr.msra.gmra.mrb[0].mxu0 %vm246_vm0, %v203_v4  ;;  %v208_v9 = vld [vmem:[%s15413_s25 + $0x30] sm:$0xff]  ;;  %v209_v10 = vld [vmem:[%s15413_s25 + $0x38] sm:$0xff]  ;;  %v210_v11 = vld [vmem:[%s15413_s25 + $0x40] sm:$0xff]  ;;  %14622 = vmatpush3.msra.mxu1 %v821_v49 }
  0x17   : > { %12841 = vmatprep.mubr.msk.f32.mxu0 %vm246_vm0, %v204_v5  ;;  %v211_v12 = vld [vmem:[%s15413_s25 + $0x48] sm:$0xff]  ;;  %v212_v13 = vld [vmem:[%s15413_s25 + $0x50] sm:$0xff]  ;;  %v213_v14 = vld [vmem:[%s15413_s25 + $0x58] sm:$0xff]  ;;  %14227 = vmatpush3.bf16.msra.mxu0 %v14224_v48 }
  0x18   : > { %v214_v15 = vld [vmem:[%s15413_s25 + $0x60] sm:$0xff]  ;;  %v215_v16 = vld [vmem:[%s15413_s25 + $0x68] sm:$0xff]  ;;  %v216_v17 = vld [vmem:[%s15413_s25 + $0x70] sm:$0xff]  ;;  %12905 = vmatprep.subr.mxu0 %v821_v49  ;;  %14229 = vmatprep.subr.bf16.mxu1 %v15515_v53 }
  0x19   : > { %v217_v18 = vld [vmem:[%s15413_s25 + $0x78] sm:$0xff]  ;;  %v218_v19 = vld [vmem:[%s15413_s25 + $0x80] sm:$0xff]  ;;  %v219_v20 = vld [vmem:[%s15413_s25 + $0x88] sm:$0xff] }
  0x1a   : > { %12842 = vmatmul.mubr.msk.f32.gmra.mrb[2].mxu0 %vm246_vm0, %v205_v6  ;;  %v220_v21 = vld [vmem:[%s15413_s25 + $0x90] sm:$0xff]  ;;  %v221_v22 = vld [vmem:[%s15413_s25 + $0x98] sm:$0xff]  ;;  %v222_v23 = vld [vmem:[%s15413_s25 + $0xa0] sm:$0xff] }
  0x1b   : > { %12844 = vmatprep.mubr.msk.f32.mxu0 %vm246_vm0, %v206_v7  ;;  %v223_v24 = vld [vmem:[%s15413_s25 + $0xa8] sm:$0xff]  ;;  %v224_v25 = vld [vmem:[%s15413_s25 + $0xb0] sm:$0xff]  ;;  %v225_v26 = vld [vmem:[%s15413_s25 + $0xb8] sm:$0xff]  ;;  %12906 = vmatpush3.msra.mxu0 %v821_v49 }
  0x1c   : > { %v226_v27 = vld [vmem:[%s15413_s25 + $0xc0] sm:$0xff]  ;;  %v227_v28 = vld [vmem:[%s15413_s25 + $0xc8] sm:$0xff]  ;;  %v228_v29 = vld [vmem:[%s15413_s25 + $0xd0] sm:$0xff] }
  0x1d   : > { %v229_v30 = vld [vmem:[%s15413_s25 + $0xd8] sm:$0xff]  ;;  %v230_v31 = vld [vmem:[%s15413_s25 + $0xe0] sm:$0xff]  ;;  %v231_v32 = vld [vmem:[%s15413_s25 + $0xe8] sm:$0xff] }
  0x1e   : > { %12845 = vmatmul.mubr.msk.f32.gmra.mrb[4].mxu0 %vm246_vm0, %v207_v8  ;;  %v232_v33 = vld [vmem:[%s15413_s25 + $0xf0] sm:$0xff]  ;;  %v233_v34 = vld [vmem:[%s15413_s25 + $0xf8] sm:$0xff]  ;;  %v234_v35 = vld [vmem:[%s15413_s25 + $0x100] sm:$0xff] }
  0x1f   : > { %12847 = vmatprep.mubr.msk.f32.mxu0 %vm246_vm0, %v208_v9  ;;  %v235_v36 = vld [vmem:[%s15413_s25 + $0x108] sm:$0xff]  ;;  %v236_v37 = vld [vmem:[%s15413_s25 + $0x110] sm:$0xff]  ;;  %v237_v38 = vld [vmem:[%s15413_s25 + $0x118] sm:$0xff] }
  0x20   : > { %v238_v39 = vld [vmem:[%s15413_s25 + $0x120] sm:$0xff]  ;;  %v239_v40 = vld [vmem:[%s15413_s25 + $0x128] sm:$0xff]  ;;  %v240_v41 = vld [vmem:[%s15413_s25 + $0x130] sm:$0xff] }
  0x21   : > { %v241_v42 = vld [vmem:[%s15413_s25 + $0x138] sm:$0xff]  ;;  %v242_v43 = vld [vmem:[%s15413_s25 + $0x140] sm:$0xff]  ;;  %v243_v44 = vld [vmem:[%s15413_s25 + $0x148] sm:$0xff] }
  0x22   : > { %12848 = vmatmul.mubr.msk.f32.gmra.mrb[6].mxu0 %vm246_vm0, %v209_v10  ;;  %v777_v50 = vld [vmem:[#allocation2 + $0x6] sm:$0xff] }
  0x23   : > { %12850 = vmatprep.mubr.msk.f32.mxu0 %vm246_vm0, %v210_v11 }
  0x26   : > { %12851 = vmatmul.mubr.msk.f32.gmra.mrb[8].mxu0 %vm246_vm0, %v211_v12 }
  0x27   : > { %12853 = vmatprep.mubr.msk.f32.mxu0 %vm246_vm0, %v212_v13 }
  0x2a   : > { %12854 = vmatmul.mubr.msk.f32.gmra.mrb[10].mxu0 %vm246_vm0, %v213_v14 }
  0x2b   : > { %12856 = vmatprep.mubr.msk.f32.mxu0 %vm246_vm0, %v214_v15 }
  0x2e   : > { %12857 = vmatmul.mubr.msk.f32.gmra.mrb[12].mxu0 %vm246_vm0, %v215_v16 }
  0x2f   : > { %12859 = vmatprep.mubr.msk.f32.mxu0 %vm246_vm0, %v216_v17 }
  0x32   : > { %12860 = vmatmul.mubr.msk.f32.gmra.mrb[14].mxu0 %vm246_vm0, %v217_v18 }
  0x33   : > { %12862 = vmatprep.mubr.msk.f32.mxu0 %vm246_vm0, %v218_v19 }
  0x36   : > { %12863 = vmatmul.mubr.msk.f32.gmra.mrb[16].mxu0 %vm246_vm0, %v219_v20 }
  0x37   : > { %12865 = vmatprep.mubr.msk.f32.mxu0 %vm246_vm0, %v220_v21 }
  0x3a   : > { %12866 = vmatmul.mubr.msk.f32.gmra.mrb[18].mxu0 %vm246_vm0, %v221_v22 }
  0x3b   : > { %12868 = vmatprep.mubr.msk.f32.mxu0 %vm246_vm0, %v222_v23 }
  0x3e   : > { %12869 = vmatmul.mubr.msk.f32.gmra.mrb[20].mxu0 %vm246_vm0, %v223_v24 }
  0x3f   : > { %12871 = vmatprep.mubr.msk.f32.mxu0 %vm246_vm0, %v224_v25 }
  0x42   : > { %12872 = vmatmul.mubr.msk.f32.gmra.mrb[22].mxu0 %vm246_vm0, %v225_v26  ;;  %v776_v26 = vld [vmem:[%s18691_s1 + $0x20] sm:$0xff] }
  0x43   : > { %12874 = vmatprep.mubr.msk.f32.mxu0 %vm246_vm0, %v226_v27  ;;  %v1667_v27 = vld [vmem:[%s18691_s1 + $0x40] sm:$0xff] }
  0x46   : > { %12875 = vmatmul.mubr.msk.f32.gmra.mrb[24].mxu0 %vm246_vm0, %v227_v28 }
  0x47   : > { %12877 = vmatprep.mubr.msk.f32.mxu0 %vm246_vm0, %v228_v29 }
  0x4a   : > { %12878 = vmatmul.mubr.msk.f32.gmra.mrb[26].mxu0 %vm246_vm0, %v229_v30  ;;  %v1668_v30 = vld [vmem:[%s18691_s1 + $0x48] sm:$0xff] }
  0x4b   : > { %12880 = vmatprep.mubr.msk.f32.mxu0 %vm246_vm0, %v230_v31 }
  0x4e   : > { %12881 = vmatmul.mubr.msk.f32.gmra.mrb[28].mxu0 %vm246_vm0, %v231_v32 }
  0x4f   : > { %12883 = vmatprep.mubr.msk.f32.mxu0 %vm246_vm0, %v232_v33 }
  0x52   : > { %12884 = vmatmul.mubr.msk.f32.gmra.mrb[30].mxu0 %vm246_vm0, %v233_v34 }
  0x53   : > { %12886 = vmatprep.mubr.msk.f32.mxu0 %vm246_vm0, %v234_v35  ;;  %v15599_v35 = vpack.c.bf16 %v1668_v30, %v1667_v27 }
  0x56   : > { %12887 = vmatmul.mubr.msk.f32.gmra.mrb[32].mxu0 %vm246_vm0, %v235_v36 }
  0x57   : > { %12889 = vmatprep.mubr.msk.f32.mxu0 %vm246_vm0, %v236_v37 }
  0x5a   : > { %12890 = vmatmul.mubr.msk.f32.gmra.mrb[34].mxu0 %vm246_vm0, %v237_v38 }
  0x5b   : > { %12892 = vmatprep.mubr.msk.f32.mxu0 %vm246_vm0, %v238_v39 }
  0x5e   : > { %12893 = vmatmul.mubr.msk.f32.gmra.mrb[36].mxu0 %vm246_vm0, %v239_v40 }
  0x5f   : > { %12895 = vmatprep.mubr.msk.f32.mxu0 %vm246_vm0, %v240_v41 }
  0x62   : > { %12896 = vmatmul.mubr.msk.f32.gmra.mrb[38].mxu0 %vm246_vm0, %v241_v42 }
  0x63   : > { %12898 = vmatprep.mubr.msk.f32.mxu0 %vm246_vm0, %v242_v43 }
  0x66   : > { %12899 = vmatmul.mubr.msk.f32.gmra.mrb[40].mxu0 %vm246_vm0, %v243_v44 }
  0x67   : > { %12907 = vmatprep.mubr.msk.f32.mxu0 %vm822_vm1, %v777_v50 }
  0xe9   : > { %v12840_v54 = vpop.f32.mrb[0].mxu0 }
  0xea   : > { %v649_v55 = vmax.f32 %v12840_v54, 0.0  ;;  %v15518_v56 = vpop.f32.mrb[1].mxu0 }
  0xeb   : > { %v18733_v57 = vmax.f32 %v15518_v56, 0.0 }
  0xec   : > { %691 = vst [vmem:[#allocation2 + $0x18] sm:$0xff] %v649_v55 }
  0xed   : > { %690 = vst [vmem:[#allocation2 + $0x10] sm:$0xff] %v18733_v57  ;;  %v12843_v58 = vpop.f32.mrb[2].mxu0 }
  0xee   : > { %v651_v59 = vmax.f32 %v12843_v58, 0.0  ;;  %v449_v60 = vpop.f32.mrb[3].mxu0 }
  0xef   : > { %v650_v61 = vmax.f32 %v449_v60, 0.0 }
  0xf0   : > { %693 = vst [vmem:[#allocation2 + $0x28] sm:$0xff] %v651_v59 }
  0xf1   : > { %692 = vst [vmem:[#allocation2 + $0x20] sm:$0xff] %v650_v61  ;;  %v15523_v62 = vpop.f32.mrb[4].mxu0 }
  0xf2   : > { %v18731_v63 = vmax.f32 %v15523_v62, 0.0  ;;  %v15526_v0 = vpop.f32.mrb[5].mxu0 }
  0xf3   : > { %v18732_v1 = vmax.f32 %v15526_v0, 0.0 }
  0xf4   : > { %695 = vst [vmem:[#allocation2 + $0x38] sm:$0xff] %v18731_v63  ;;  %v778_v2 = vld [vmem:[#allocation2 + $0xe] sm:$0xff]  ;;  %v779_v3 = vld [vmem:[#allocation2 + $0x16] sm:$0xff] }
  0xf5   : > { %694 = vst [vmem:[#allocation2 + $0x30] sm:$0xff] %v18732_v1  ;;  %v15533_v4 = vpop.f32.mrb[6].mxu0  ;;  %12908 = vmatmul.mubr.msk.f32.vlgmr.msra.gmra.mrb[42].mxu0 %vm822_vm1, %v778_v2 }
  0xf6   : > { %v18729_v5 = vmax.f32 %v15533_v4, 0.0  ;;  %v15537_v6 = vpop.f32.mrb[7].mxu0  ;;  %12910 = vmatprep.mubr.msk.f32.mxu0 %vm822_vm1, %v779_v3 }
  0xf7   : > { %v18730_v7 = vmax.f32 %v15537_v6, 0.0 }
  0xf8   : > { %697 = vst [vmem:[#allocation2 + $0x48] sm:$0xff] %v18729_v5  ;;  %v780_v8 = vld [vmem:[#allocation2 + $0x1e] sm:$0xff]  ;;  %v781_v9 = vld [vmem:[#allocation2 + $0x26] sm:$0xff] }
  0xf9   : > { %696 = vst [vmem:[#allocation2 + $0x40] sm:$0xff] %v18730_v7  ;;  %v15545_v10 = vpop.f32.mrb[8].mxu0  ;;  %12911 = vmatmul.mubr.msk.f32.gmra.mrb[44].mxu0 %vm822_vm1, %v780_v8 }
  0xfa   : > { %v18727_v11 = vmax.f32 %v15545_v10, 0.0  ;;  %v15549_v12 = vpop.f32.mrb[9].mxu0  ;;  %12913 = vmatprep.mubr.msk.f32.mxu0 %vm822_vm1, %v781_v9 }
  0xfb   : > { %v18728_v13 = vmax.f32 %v15549_v12, 0.0 }
  0xfc   : > { %699 = vst [vmem:[#allocation2 + $0x58] sm:$0xff] %v18727_v11  ;;  %v782_v14 = vld [vmem:[#allocation2 + $0x2e] sm:$0xff]  ;;  %v783_v15 = vld [vmem:[#allocation2 + $0x36] sm:$0xff] }
  0xfd   : > { %698 = vst [vmem:[#allocation2 + $0x50] sm:$0xff] %v18728_v13  ;;  %v15557_v16 = vpop.f32.mrb[10].mxu0  ;;  %12914 = vmatmul.mubr.msk.f32.gmra.mrb[46].mxu0 %vm822_vm1, %v782_v14 }
  0xfe   : > { %v18725_v17 = vmax.f32 %v15557_v16, 0.0  ;;  %v15561_v18 = vpop.f32.mrb[11].mxu0  ;;  %12916 = vmatprep.mubr.msk.f32.mxu0 %vm822_vm1, %v783_v15 }
  0xff   : > { %v18726_v19 = vmax.f32 %v15561_v18, 0.0 }
 0x100   : > { %701 = vst [vmem:[#allocation2 + $0x68] sm:$0xff] %v18725_v17  ;;  %v784_v20 = vld [vmem:[#allocation2 + $0x3e] sm:$0xff]  ;;  %v785_v21 = vld [vmem:[#allocation2 + $0x46] sm:$0xff] }
 0x101   : > { %700 = vst [vmem:[#allocation2 + $0x60] sm:$0xff] %v18726_v19  ;;  %v15569_v22 = vpop.f32.mrb[12].mxu0  ;;  %12917 = vmatmul.mubr.msk.f32.gmra.mrb[48].mxu0 %vm822_vm1, %v784_v20  ;;  %12919 = vmatprep.mubr.msk.f32.mxu1 %vm822_vm1, %v785_v21 }
 0x102   : > { %v18723_v23 = vmax.f32 %v15569_v22, 0.0  ;;  %v15574_v24 = vpop.f32.mrb[13].mxu0 }
 0x103   : > { %v18724_v25 = vmax.f32 %v15574_v24, 0.0 }
 0x104   : > { %703 = vst [vmem:[#allocation2 + $0x78] sm:$0xff] %v18723_v23  ;;  %v786_v28 = vld [vmem:[#allocation2 + $0x4e] sm:$0xff]  ;;  %v787_v29 = vld [vmem:[#allocation2 + $0x56] sm:$0xff] }
 0x105   : > { %702 = vst [vmem:[#allocation2 + $0x70] sm:$0xff] %v18724_v25  ;;  %v15590_v31 = vpop.f32.mrb[14].mxu0  ;;  %12920 = vmatmul.mubr.msk.f32.vlgmr.msra.gmra.mrb[0].mxu1 %vm822_vm1, %v786_v28 }
 0x106   : > { %v18721_v32 = vmax.f32 %v15590_v31, 0.0  ;;  %v15594_v33 = vpop.f32.mrb[15].mxu0  ;;  %12922 = vmatprep.mubr.msk.f32.mxu1 %vm822_vm1, %v787_v29  ;;  %14231 = vmatpush3.bf16.msra.mxu1 %v15515_v53 }
 0x107   : > { %v18722_v34 = vmax.f32 %v15594_v33, 0.0  ;;  %12974 = vmatprep.subr.mxu1 %v776_v26 }
 0x108   : > { %705 = vst [vmem:[#allocation2 + $0x88] sm:$0xff] %v18721_v32  ;;  %v788_v36 = vld [vmem:[#allocation2 + $0x5e] sm:$0xff]  ;;  %v789_v37 = vld [vmem:[#allocation2 + $0x66] sm:$0xff] }
 0x109   : > { %704 = vst [vmem:[#allocation2 + $0x80] sm:$0xff] %v18722_v34  ;;  %v15605_v38 = vpop.f32.mrb[16].mxu0  ;;  %12923 = vmatmul.mubr.msk.f32.gmra.mrb[2].mxu1 %vm822_vm1, %v788_v36  ;;  %v15880_v32 = vld [vmem:[#allocation2 + $0x67] sm:$0xff] }
 0x10a   : > { %v18719_v39 = vmax.f32 %v15605_v38, 0.0  ;;  %v15609_v40 = vpop.f32.mrb[17].mxu0  ;;  %12925 = vmatprep.mubr.msk.f32.mxu1 %vm822_vm1, %v789_v37  ;;  %12975 = vmatpush3.msra.mxu1 %v776_v26 }
 0x10b   : > { %v18720_v41 = vmax.f32 %v15609_v40, 0.0  ;;  %14233 = vmatprep.subr.bf16.mxu1 %v15599_v35 }
 0x10c   : > { %707 = vst [vmem:[#allocation2 + $0x98] sm:$0xff] %v18719_v39  ;;  %v790_v42 = vld [vmem:[#allocation2 + $0x6e] sm:$0xff]  ;;  %v791_v43 = vld [vmem:[#allocation2 + $0x76] sm:$0xff] }
 0x10d   : > { %706 = vst [vmem:[#allocation2 + $0x90] sm:$0xff] %v18720_v41  ;;  %v15618_v44 = vpop.f32.mrb[18].mxu0  ;;  %12926 = vmatmul.mubr.msk.f32.gmra.mrb[4].mxu1 %vm822_vm1, %v790_v42  ;;  %v15864_v39 = vld [vmem:[#allocation2 + $0x47] sm:$0xff]  ;;  %v15876_v41 = vld [vmem:[#allocation2 + $0x5f] sm:$0xff]  ;;  %v15884_v34 = vld [vmem:[#allocation2 + $0x6f] sm:$0xff] }
 0x10e   : > { %v18715_v45 = vmax.f32 %v15618_v44, 0.0  ;;  %v15622_v46 = vpop.f32.mrb[19].mxu0  ;;  %12928 = vmatprep.mubr.msk.f32.mxu1 %vm822_vm1, %v791_v43  ;;  %v15888_v23 = vld [vmem:[#allocation2 + $0x77] sm:$0xff] }
 0x10f   : > { %v18718_v47 = vmax.f32 %v15622_v46, 0.0 }
 0x110   : > { %709 = vst [vmem:[#allocation2 + $0xa8] sm:$0xff] %v18715_v45  ;;  %v792_v48 = vld [vmem:[#allocation2 + $0x7e] sm:$0xff]  ;;  %v793_v49 = vld [vmem:[#allocation2 + $0x86] sm:$0xff] }
 0x111   : > { %708 = vst [vmem:[#allocation2 + $0xa0] sm:$0xff] %v18718_v47  ;;  %v15630_v50 = vpop.f32.mrb[20].mxu0  ;;  %12929 = vmatmul.mubr.msk.f32.gmra.mrb[6].mxu1 %vm822_vm1, %v792_v48  ;;  %v15855_v47 = vld [vmem:[#allocation2 + $0x37] sm:$0xff]  ;;  %v15892_v25 = vld [vmem:[#allocation2 + $0x7f] sm:$0xff]  ;;  %v15896_v17 = vld [vmem:[#allocation2 + $0x87] sm:$0xff] }
 0x112   : > { %v18711_v51 = vmax.f32 %v15630_v50, 0.0  ;;  %v15634_v52 = vpop.f32.mrb[21].mxu0  ;;  %12931 = vmatprep.mubr.msk.f32.mxu1 %vm822_vm1, %v793_v49 }
 0x113   : > { %v18713_v53 = vmax.f32 %v15634_v52, 0.0 }
 0x114   : > { %711 = vst [vmem:[#allocation2 + $0xb8] sm:$0xff] %v18711_v51  ;;  %v794_v54 = vld [vmem:[#allocation2 + $0x8e] sm:$0xff]  ;;  %v795_v55 = vld [vmem:[#allocation2 + $0x96] sm:$0xff] }
 0x115   : > { %710 = vst [vmem:[#allocation2 + $0xb0] sm:$0xff] %v18713_v53  ;;  %v15642_v58 = vpop.f32.mrb[22].mxu0  ;;  %12932 = vmatmul.mubr.msk.f32.gmra.mrb[8].mxu1 %vm822_vm1, %v794_v54  ;;  %v15900_v19 = vld [vmem:[#allocation2 + $0x8f] sm:$0xff]  ;;  %v15904_v11 = vld [vmem:[#allocation2 + $0x97] sm:$0xff] }
 0x116   : > { %18800 = vst [vmem:[#allocation3_spill] sm:$0xff] %v15642_v58  ;;  %v18707_v59 = vmax.f32 %v15642_v58, 0.0  ;;  %v15646_v60 = vpop.f32.mrb[23].mxu0  ;;  %12934 = vmatprep.mubr.msk.f32.mxu1 %vm822_vm1, %v795_v55 }
 0x117   : > { %v18709_v61 = vmax.f32 %v15646_v60, 0.0 }
 0x118   : > { %713 = vst [vmem:[#allocation2 + $0xc8] sm:$0xff] %v18707_v59  ;;  %v796_v2 = vld [vmem:[#allocation2 + $0x9e] sm:$0xff]  ;;  %v797_v3 = vld [vmem:[#allocation2 + $0xa6] sm:$0xff] }
 0x119   : > { %712 = vst [vmem:[#allocation2 + $0xc0] sm:$0xff] %v18709_v61  ;;  %v15654_v8 = vpop.f32.mrb[24].mxu0  ;;  %12935 = vmatmul.mubr.msk.f32.gmra.mrb[10].mxu1 %vm822_vm1, %v796_v2  ;;  %v15908_v13 = vld [vmem:[#allocation2 + $0x9f] sm:$0xff]  ;;  %v15912_v5 = vld [vmem:[#allocation2 + $0xa7] sm:$0xff] }
 0x11a   : > { %18801 = vst [vmem:[#allocation4_spill] sm:$0xff] %v15654_v8  ;;  %v18703_v9 = vmax.f32 %v15654_v8, 0.0  ;;  %v15658_v14 = vpop.f32.mrb[25].mxu0  ;;  %12937 = vmatprep.mubr.msk.f32.mxu1 %vm822_vm1, %v797_v3 }
 0x11b   : > { %18802 = vst [vmem:[#allocation5_spill] sm:$0xff] %v15658_v14  ;;  %v18705_v15 = vmax.f32 %v15658_v14, 0.0  ;;  %v2645_v14 = vld [vmem:[%s18691_s1 + $0x80] sm:$0xff] }
 0x11c   : > { %715 = vst [vmem:[#allocation2 + $0xd8] sm:$0xff] %v18703_v9  ;;  %v798_v20 = vld [vmem:[#allocation2 + $0xae] sm:$0xff]  ;;  %v799_v21 = vld [vmem:[#allocation2 + $0xb6] sm:$0xff] }
 0x11d   : > { %714 = vst [vmem:[#allocation2 + $0xd0] sm:$0xff] %v18705_v15  ;;  %v15666_v26 = vpop.f32.mrb[26].mxu0  ;;  %12938 = vmatmul.mubr.msk.f32.gmra.mrb[12].mxu1 %vm822_vm1, %v798_v20  ;;  %v15916_v7 = vld [vmem:[#allocation2 + $0xaf] sm:$0xff]  ;;  %v15920_v63 = vld [vmem:[#allocation2 + $0xb7] sm:$0xff] }
 0x11e   : > { %18803 = vst [vmem:[#allocation6_spill] sm:$0xff] %v15666_v26  ;;  %v18699_v27 = vmax.f32 %v15666_v26, 0.0  ;;  %v15670_v28 = vpop.f32.mrb[27].mxu0  ;;  %12940 = vmatprep.mubr.msk.f32.mxu1 %vm822_vm1, %v799_v21 }
 0x11f   : > { %18804 = vst [vmem:[#allocation7_spill] sm:$0xff] %v15670_v28  ;;  %v18701_v29 = vmax.f32 %v15670_v28, 0.0 }
 0x120   : > { %717 = vst [vmem:[#allocation2 + $0xe8] sm:$0xff] %v18699_v27  ;;  %v800_v30 = vld [vmem:[#allocation2 + $0xbe] sm:$0xff]  ;;  %v801_v36 = vld [vmem:[#allocation2 + $0xc6] sm:$0xff] }
 0x121   : > { %716 = vst [vmem:[#allocation2 + $0xe0] sm:$0xff] %v18701_v29  ;;  %v15678_v37 = vpop.f32.mrb[28].mxu0  ;;  %12941 = vmatmul.mubr.msk.f32.gmra.mrb[14].mxu1 %vm822_vm1, %v800_v30  ;;  %v15926_v57 = vld [vmem:[#allocation2 + $0xbf] sm:$0xff] }
 0x122   : > { %18805 = vst [vmem:[#allocation8_spill] sm:$0xff] %v15678_v37  ;;  %v18695_v42 = vmax.f32 %v15678_v37, 0.0  ;;  %v15682_v43 = vpop.f32.mrb[29].mxu0  ;;  %12943 = vmatprep.mubr.msk.f32.mxu1 %vm822_vm1, %v801_v36 }
 0x123   : > { %18806 = vst [vmem:[#allocation9_spill] sm:$0xff] %v15682_v43  ;;  %v18697_v48 = vmax.f32 %v15682_v43, 0.0 }
 0x124   : > { %719 = vst [vmem:[#allocation2 + $0xf8] sm:$0xff] %v18695_v42  ;;  %v802_v49 = vld [vmem:[#allocation2 + $0xce] sm:$0xff]  ;;  %v803_v54 = vld [vmem:[#allocation2 + $0xd6] sm:$0xff] }
 0x125   : > { %718 = vst [vmem:[#allocation2 + $0xf0] sm:$0xff] %v18697_v48  ;;  %v15690_v55 = vpop.f32.mrb[30].mxu0  ;;  %12944 = vmatmul.mubr.msk.f32.gmra.mrb[16].mxu1 %vm822_vm1, %v802_v49 }
 0x126   : > { %18807 = vst [vmem:[#allocation10_spill] sm:$0xff] %v15690_v55  ;;  %v18696_v2 = vmax.f32 %v15690_v55, 0.0  ;;  %v15694_v3 = vpop.f32.mrb[31].mxu0  ;;  %12946 = vmatprep.mubr.msk.f32.mxu1 %vm822_vm1, %v803_v54 }
 0x127   : > { %18808 = vst [vmem:[#allocation11_spill] sm:$0xff] %v15694_v3  ;;  %v18698_v20 = vmax.f32 %v15694_v3, 0.0 }
 0x128   : > { %721 = vst [vmem:[#allocation2 + $0x108] sm:$0xff] %v18696_v2  ;;  %v804_v21 = vld [vmem:[#allocation2 + $0xde] sm:$0xff]  ;;  %v805_v30 = vld [vmem:[#allocation2 + $0xe6] sm:$0xff] }
 0x129   : > { %720 = vst [vmem:[#allocation2 + $0x100] sm:$0xff] %v18698_v20  ;;  %v15702_v36 = vpop.f32.mrb[32].mxu0  ;;  %12947 = vmatmul.mubr.msk.f32.gmra.mrb[18].mxu1 %vm822_vm1, %v804_v21 }
 0x12a   : > { %18809 = vst [vmem:[#allocation12_spill] sm:$0xff] %v15702_v36  ;;  %v18700_v49 = vmax.f32 %v15702_v36, 0.0  ;;  %v15706_v42 = vpop.f32.mrb[33].mxu0  ;;  %12949 = vmatprep.mubr.msk.f32.mxu1 %vm822_vm1, %v805_v30 }
 0x12b   : > { %18810 = vst [vmem:[#allocation13_spill] sm:$0xff] %v15706_v42  ;;  %v18702_v54 = vmax.f32 %v15706_v42, 0.0 }
 0x12c   : > { %723 = vst [vmem:[#allocation2 + $0x118] sm:$0xff] %v18700_v49  ;;  %v806_v2 = vld [vmem:[#allocation2 + $0xee] sm:$0xff]  ;;  %v807_v48 = vld [vmem:[#allocation2 + $0xf6] sm:$0xff] }
 0x12d   : > { %722 = vst [vmem:[#allocation2 + $0x110] sm:$0xff] %v18702_v54  ;;  %v15714_v20 = vpop.f32.mrb[34].mxu0  ;;  %12950 = vmatmul.mubr.msk.f32.gmra.mrb[20].mxu1 %vm822_vm1, %v806_v2 }
 0x12e   : > { %18811 = vst [vmem:[#allocation14_spill] sm:$0xff] %v15714_v20  ;;  %v18704_v21 = vmax.f32 %v15714_v20, 0.0  ;;  %v15718_v27 = vpop.f32.mrb[35].mxu0  ;;  %12952 = vmatprep.mubr.msk.f32.mxu1 %vm822_vm1, %v807_v48 }
 0x12f   : > { %18812 = vst [vmem:[#allocation15_spill] sm:$0xff] %v15718_v27  ;;  %v18706_v30 = vmax.f32 %v15718_v27, 0.0  ;;  %v15962_v27 = vld [vmem:[#allocation2 + $0xef] sm:$0xff] }
 0x130   : > { %725 = vst [vmem:[#allocation2 + $0x128] sm:$0xff] %v18704_v21  ;;  %v808_v49 = vld [vmem:[#allocation2 + $0xfe] sm:$0xff]  ;;  %v809_v29 = vld [vmem:[#allocation2 + $0x106] sm:$0xff] }
 0x131   : > { %724 = vst [vmem:[#allocation2 + $0x120] sm:$0xff] %v18706_v30  ;;  %v15726_v54 = vpop.f32.mrb[36].mxu0  ;;  %12953 = vmatmul.mubr.msk.f32.gmra.mrb[22].mxu1 %vm822_vm1, %v808_v49  ;;  %v1657_v42 = vld [vmem:[#allocation2 + $0x107] sm:$0xff] }
 0x132   : > { %18813 = vst [vmem:[#allocation16_spill] sm:$0xff] %v15726_v54  ;;  %v18708_v2 = vmax.f32 %v15726_v54, 0.0  ;;  %v15730_v9 = vpop.f32.mrb[37].mxu0  ;;  %12955 = vmatprep.mubr.msk.f32.mxu1 %vm822_vm1, %v809_v29 }
 0x133   : > { %18814 = vst [vmem:[#allocation17_spill] sm:$0xff] %v15730_v9  ;;  %v18710_v48 = vmax.f32 %v15730_v9, 0.0  ;;  %v15950_v9 = vld [vmem:[#allocation2 + $0xdf] sm:$0xff] }
 0x134   : > { %727 = vst [vmem:[#allocation2 + $0x138] sm:$0xff] %v18708_v2  ;;  %v810_v21 = vld [vmem:[#allocation2 + $0x10e] sm:$0xff]  ;;  %v811_v15 = vld [vmem:[#allocation2 + $0x116] sm:$0xff] }
 0x135   : > { %726 = vst [vmem:[#allocation2 + $0x130] sm:$0xff] %v18710_v48  ;;  %v15738_v30 = vpop.f32.mrb[38].mxu0  ;;  %12956 = vmatmul.mubr.msk.f32.gmra.mrb[24].mxu1 %vm822_vm1, %v810_v21  ;;  %v1658_v55 = vld [vmem:[#allocation2 + $0x10f] sm:$0xff] }
 0x136   : > { %18815 = vst [vmem:[#allocation18_spill] sm:$0xff] %v15738_v30  ;;  %v18712_v49 = vmax.f32 %v15738_v30, 0.0  ;;  %v15742_v59 = vpop.f32.mrb[39].mxu0  ;;  %12958 = vmatprep.mubr.msk.f32.mxu1 %vm822_vm1, %v811_v15 }
 0x137   : > { %18816 = vst [vmem:[#allocation19_spill] sm:$0xff] %v15742_v59  ;;  %v18714_v29 = vmax.f32 %v15742_v59, 0.0  ;;  %v15938_v59 = vld [vmem:[#allocation2 + $0xcf] sm:$0xff] }
 0x138   : > { %729 = vst [vmem:[#allocation2 + $0x148] sm:$0xff] %v18712_v49  ;;  %v812_v2 = vld [vmem:[#allocation2 + $0x11e] sm:$0xff]  ;;  %v813_v61 = vld [vmem:[#allocation2 + $0x126] sm:$0xff] }
 0x139   : > { %728 = vst [vmem:[#allocation2 + $0x140] sm:$0xff] %v18714_v29  ;;  %v15750_v48 = vpop.f32.mrb[40].mxu0  ;;  %12959 = vmatmul.mubr.msk.f32.gmra.mrb[26].mxu1 %vm822_vm1, %v812_v2  ;;  %v1660_v3 = vld [vmem:[#allocation2 + $0x11f] sm:$0xff] }
 0x13a   : > { %18817 = vst [vmem:[#allocation20_spill] sm:$0xff] %v15750_v48  ;;  %v18716_v21 = vmax.f32 %v15750_v48, 0.0  ;;  %v15754_v51 = vpop.f32.mrb[41].mxu0  ;;  %12961 = vmatprep.mubr.msk.f32.mxu1 %vm822_vm1, %v813_v61  ;;  %v732_v61 = vld [vmem:[#allocation2 + $0x5] sm:$0xff] }
 0x13b   : > { %18818 = vst [vmem:[#allocation21_spill] sm:$0xff] %v15754_v51  ;;  %v18717_v15 = vmax.f32 %v15754_v51, 0.0  ;;  %v15932_v51 = vld [vmem:[#allocation2 + $0xc7] sm:$0xff] }
 0x13c   : > { %731 = vst [vmem:[#allocation2 + $0x158] sm:$0xff] %v18716_v21  ;;  %v814_v49 = vld [vmem:[#allocation2 + $0x12e] sm:$0xff]  ;;  %v815_v53 = vld [vmem:[#allocation2 + $0x136] sm:$0xff] }
 0x13d   : > { %730 = vst [vmem:[#allocation2 + $0x150] sm:$0xff] %v18717_v15  ;;  %12962 = vmatmul.mubr.msk.f32.gmra.mrb[28].mxu1 %vm822_vm1, %v814_v49  ;;  %v733_v21 = vld [vmem:[#allocation2 + $0xd] sm:$0xff]  ;;  %v735_v49 = vld [vmem:[#allocation2 + $0x1d] sm:$0xff] }
 0x13e   : > { %12964 = vmatprep.mubr.msk.f32.mxu1 %vm822_vm1, %v815_v53  ;;  %v1669_v15 = vld [vmem:[%s18691_s1 + $0x50] sm:$0xff] }
 0x13f   : > { %v734_v53 = vld [vmem:[#allocation2 + $0x15] sm:$0xff] }
 0x140   : > { %v816_v2 = vld [vmem:[#allocation2 + $0x13e] sm:$0xff]  ;;  %v817_v29 = vld [vmem:[#allocation2 + $0x146] sm:$0xff]  ;;  %v1662_v37 = vld [vmem:[#allocation2 + $0x12f] sm:$0xff] }
 0x141   : > { %12965 = vmatmul.mubr.msk.f32.gmra.mrb[30].mxu1 %vm822_vm1, %v816_v2  ;;  %v2155_v2 = vld [vmem:[%s18691_s1 + $0x58] sm:$0xff]  ;;  %v1665_v28 = vld [vmem:[#allocation2 + $0x147] sm:$0xff] }
 0x142   : > { %12967 = vmatprep.mubr.msk.f32.mxu1 %vm822_vm1, %v817_v29  ;;  %v736_v29 = vld [vmem:[#allocation2 + $0x25] sm:$0xff]  ;;  %v1663_v43 = vld [vmem:[#allocation2 + $0x137] sm:$0xff] }
 0x143   : > { %v1664_v26 = vld [vmem:[#allocation2 + $0x13f] sm:$0xff] }
 0x144   : > { %v818_v45 = vld [vmem:[#allocation2 + $0x14e] sm:$0xff] }
 0x145   : > { %12968 = vmatmul.mubr.msk.f32.gmra.mrb[32].mxu1 %vm822_vm1, %v818_v45  ;;  %v737_v45 = vld [vmem:[#allocation2 + $0x2d] sm:$0xff] }
 0x146   : > { %12976 = vmatprep.mubr.msk.f32.mxu1 %vm822_vm1, %v732_v61  ;;  %v1666_v8 = vld [vmem:[#allocation2 + $0x14f] sm:$0xff] }
 0x149   : > { %12977 = vmatmul.mubr.msk.f32.vlgmr.msra.gmra.mrb[34].mxu1 %vm822_vm1, %v733_v21  ;;  %v2156_v21 = vld [vmem:[%s18691_s1 + $0x60] sm:$0xff] }
 0x14a   : > { %12979 = vmatprep.mubr.msk.f32.mxu1 %vm822_vm1, %v734_v53  ;;  %14235 = vmatpush3.bf16.msra.mxu1 %v15599_v35  ;;  %v738_v35 = vld [vmem:[#allocation2 + $0x35] sm:$0xff]  ;;  %v15783_v61 = vpack.c.bf16 %v2156_v21, %v2155_v2  ;;  %v739_v53 = vld [vmem:[#allocation2 + $0x3d] sm:$0xff]  ;;  %v744_v2 = vld [vmem:[#allocation2 + $0x65] sm:$0xff] }
 0x14b   : > { %13043 = vmatprep.subr.mxu1 %v1669_v15  ;;  %v745_v21 = vld [vmem:[#allocation2 + $0x6d] sm:$0xff] }
 0x14d   : > { %12980 = vmatmul.mubr.msk.f32.gmra.mrb[36].mxu1 %vm822_vm1, %v735_v49  ;;  %v741_v49 = vld [vmem:[#allocation2 + $0x4d] sm:$0xff] }
 0x14e   : > { %12982 = vmatprep.mubr.msk.f32.mxu1 %vm822_vm1, %v736_v29  ;;  %13044 = vmatpush3.msra.mxu1 %v1669_v15  ;;  %v740_v15 = vld [vmem:[#allocation2 + $0x45] sm:$0xff]  ;;  %v742_v29 = vld [vmem:[#allocation2 + $0x55] sm:$0xff] }
 0x14f   : > { %14237 = vmatprep.subr.bf16.mxu1 %v15783_v61 }
 0x151   : > { %12983 = vmatmul.mubr.msk.f32.gmra.mrb[38].mxu1 %vm822_vm1, %v737_v45  ;;  %v743_v45 = vld [vmem:[#allocation2 + $0x5d] sm:$0xff] }
 0x152   : > { %12985 = vmatprep.mubr.msk.f32.mxu1 %vm822_vm1, %v738_v35  ;;  %v746_v35 = vld [vmem:[#allocation2 + $0x75] sm:$0xff] }
 0x155   : > { %12986 = vmatmul.mubr.msk.f32.gmra.mrb[40].mxu1 %vm822_vm1, %v739_v53  ;;  %v747_v53 = vld [vmem:[#allocation2 + $0x7d] sm:$0xff] }
 0x156   : > { %12988 = vmatprep.mubr.msk.f32.mxu1 %vm822_vm1, %v740_v15  ;;  %v748_v15 = vld [vmem:[#allocation2 + $0x85] sm:$0xff] }
 0x159   : > { %12989 = vmatmul.mubr.msk.f32.gmra.mrb[0].mxu1 %vm822_vm1, %v741_v49  ;;  %v749_v49 = vld [vmem:[#allocation2 + $0x8d] sm:$0xff] }
 0x15a   : > { %12991 = vmatprep.mubr.msk.f32.mxu1 %vm822_vm1, %v742_v29  ;;  %v750_v29 = vld [vmem:[#allocation2 + $0x95] sm:$0xff] }
 0x15d   : > { %12992 = vmatmul.mubr.msk.f32.gmra.mrb[2].mxu1 %vm822_vm1, %v743_v45  ;;  %v751_v45 = vld [vmem:[#allocation2 + $0x9d] sm:$0xff] }
 0x15e   : > { %12994 = vmatprep.mubr.msk.f32.mxu1 %vm822_vm1, %v744_v2  ;;  %v752_v2 = vld [vmem:[#allocation2 + $0xa5] sm:$0xff] }
 0x161   : > { %12995 = vmatmul.mubr.msk.f32.gmra.mrb[4].mxu1 %vm822_vm1, %v745_v21  ;;  %v753_v21 = vld [vmem:[#allocation2 + $0xad] sm:$0xff] }
 0x162   : > { %12997 = vmatprep.mubr.msk.f32.mxu1 %vm822_vm1, %v746_v35  ;;  %v754_v35 = vld [vmem:[#allocation2 + $0xb5] sm:$0xff] }
 0x165   : > { %12998 = vmatmul.mubr.msk.f32.gmra.mrb[6].mxu1 %vm822_vm1, %v747_v53  ;;  %v755_v53 = vld [vmem:[#allocation2 + $0xbd] sm:$0xff] }
 0x166   : > { %13000 = vmatprep.mubr.msk.f32.mxu1 %vm822_vm1, %v748_v15  ;;  %v756_v15 = vld [vmem:[#allocation2 + $0xc5] sm:$0xff] }
 0x169   : > { %13001 = vmatmul.mubr.msk.f32.gmra.mrb[8].mxu1 %vm822_vm1, %v749_v49  ;;  %v757_v49 = vld [vmem:[#allocation2 + $0xcd] sm:$0xff] }
 0x16a   : > { %13003 = vmatprep.mubr.msk.f32.mxu1 %vm822_vm1, %v750_v29  ;;  %v758_v29 = vld [vmem:[#allocation2 + $0xd5] sm:$0xff] }
 0x16d   : > { %13004 = vmatmul.mubr.msk.f32.gmra.mrb[10].mxu1 %vm822_vm1, %v751_v45  ;;  %v759_v45 = vld [vmem:[#allocation2 + $0xdd] sm:$0xff] }
 0x16e   : > { %13006 = vmatprep.mubr.msk.f32.mxu1 %vm822_vm1, %v752_v2  ;;  %v760_v2 = vld [vmem:[#allocation2 + $0xe5] sm:$0xff] }
 0x171   : > { %13007 = vmatmul.mubr.msk.f32.gmra.mrb[12].mxu1 %vm822_vm1, %v753_v21  ;;  %v761_v21 = vld [vmem:[#allocation2 + $0xed] sm:$0xff] }
 0x172   : > { %13009 = vmatprep.mubr.msk.f32.mxu1 %vm822_vm1, %v754_v35  ;;  %v762_v35 = vld [vmem:[#allocation2 + $0xf5] sm:$0xff] }
 0x175   : > { %13010 = vmatmul.mubr.msk.f32.gmra.mrb[14].mxu1 %vm822_vm1, %v755_v53  ;;  %v763_v53 = vld [vmem:[#allocation2 + $0xfd] sm:$0xff] }
 0x176   : > { %13012 = vmatprep.mubr.msk.f32.mxu1 %vm822_vm1, %v756_v15  ;;  %v764_v15 = vld [vmem:[#allocation2 + $0x105] sm:$0xff] }
 0x179   : > { %13013 = vmatmul.mubr.msk.f32.gmra.mrb[16].mxu1 %vm822_vm1, %v757_v49  ;;  %v765_v49 = vld [vmem:[#allocation2 + $0x10d] sm:$0xff] }
 0x17a   : > { %13015 = vmatprep.mubr.msk.f32.mxu1 %vm822_vm1, %v758_v29  ;;  %v766_v29 = vld [vmem:[#allocation2 + $0x115] sm:$0xff] }
 0x17d   : > { %13016 = vmatmul.mubr.msk.f32.gmra.mrb[18].mxu1 %vm822_vm1, %v759_v45  ;;  %v767_v45 = vld [vmem:[#allocation2 + $0x11d] sm:$0xff] }
 0x17e   : > { %13018 = vmatprep.mubr.msk.f32.mxu1 %vm822_vm1, %v760_v2  ;;  %v768_v2 = vld [vmem:[#allocation2 + $0x125] sm:$0xff] }
 0x181   : > { %13019 = vmatmul.mubr.msk.f32.gmra.mrb[20].mxu1 %vm822_vm1, %v761_v21  ;;  %v769_v21 = vld [vmem:[#allocation2 + $0x12d] sm:$0xff] }
 0x182   : > { %13021 = vmatprep.mubr.msk.f32.mxu1 %vm822_vm1, %v762_v35  ;;  %v770_v35 = vld [vmem:[#allocation2 + $0x135] sm:$0xff] }
 0x185   : > { %13022 = vmatmul.mubr.msk.f32.gmra.mrb[22].mxu1 %vm822_vm1, %v763_v53  ;;  %v771_v53 = vld [vmem:[#allocation2 + $0x13d] sm:$0xff] }
 0x186   : > { %13024 = vmatprep.mubr.msk.f32.mxu1 %vm822_vm1, %v764_v15  ;;  %v772_v15 = vld [vmem:[#allocation2 + $0x145] sm:$0xff] }
 0x189   : > { %13025 = vmatmul.mubr.msk.f32.gmra.mrb[24].mxu1 %vm822_vm1, %v765_v49  ;;  %v1625_v49 = vld [vmem:[#allocation2 + $0x7] sm:$0xff] }
 0x18a   : > { %13027 = vmatprep.mubr.msk.f32.mxu1 %vm822_vm1, %v766_v29  ;;  %v773_v29 = vld [vmem:[#allocation2 + $0x14d] sm:$0xff] }
 0x18d   : > { %13028 = vmatmul.mubr.msk.f32.gmra.mrb[26].mxu1 %vm822_vm1, %v767_v45  ;;  %v15823_v45 = vld [vmem:[#allocation2 + $0xf] sm:$0xff] }
 0x18e   : > { %13030 = vmatprep.mubr.msk.f32.mxu1 %vm822_vm1, %v768_v2  ;;  %v2157_v2 = vld [vmem:[%s18691_s1 + $0x68] sm:$0xff] }
 0x191   : > { %13031 = vmatmul.mubr.msk.f32.gmra.mrb[28].mxu1 %vm822_vm1, %v769_v21  ;;  %v15830_v21 = vld [vmem:[#allocation2 + $0x17] sm:$0xff] }
 0x192   : > { %13033 = vmatprep.mubr.msk.f32.mxu1 %vm822_vm1, %v770_v35  ;;  %v15835_v35 = vld [vmem:[#allocation2 + $0x1f] sm:$0xff] }
 0x195   : > { %13034 = vmatmul.mubr.msk.f32.gmra.mrb[30].mxu1 %vm822_vm1, %v771_v53  ;;  %v15839_v53 = vld [vmem:[#allocation2 + $0x27] sm:$0xff] }
 0x196   : > { %13036 = vmatprep.mubr.msk.f32.mxu1 %vm822_vm1, %v772_v15  ;;  %v2643_v15 = vld [vmem:[%s18691_s1 + $0x70] sm:$0xff] }
 0x199   : > { %13037 = vmatmul.mubr.msk.f32.gmra.mrb[32].mxu1 %vm822_vm1, %v773_v29  ;;  %v15851_v29 = vld [vmem:[#allocation2 + $0x2f] sm:$0xff] }
 0x19a   : > { %13045 = vmatprep.mubr.msk.f32.mxu1 %vm822_vm1, %v1625_v49 }
 0x19d   : > { %13046 = vmatmul.mubr.msk.f32.vlgmr.msra.gmra.mrb[34].mxu1 %vm822_vm1, %v15823_v45 }
 0x19e   : > { %13048 = vmatprep.mubr.msk.f32.mxu1 %vm822_vm1, %v15830_v21  ;;  %14239 = vmatpush3.bf16.msra.mxu1 %v15783_v61  ;;  %v2644_v61 = vld [vmem:[%s18691_s1 + $0x78] sm:$0xff] }
 0x19f   : > { %13112 = vmatprep.subr.mxu1 %v2157_v2  ;;  %v15849_v49 = vpack.c.bf16 %v2644_v61, %v2643_v15  ;;  %v15868_v15 = vld [vmem:[#allocation2 + $0x4f] sm:$0xff]  ;;  %v15872_v61 = vld [vmem:[#allocation2 + $0x57] sm:$0xff] }
 0x1a1   : > { %13049 = vmatmul.mubr.msk.f32.gmra.mrb[36].mxu1 %vm822_vm1, %v15835_v35 }
 0x1a2   : > { %13051 = vmatprep.mubr.msk.f32.mxu1 %vm822_vm1, %v15839_v53  ;;  %13113 = vmatpush3.msra.mxu1 %v2157_v2  ;;  %v15860_v2 = vld [vmem:[#allocation2 + $0x3f] sm:$0xff] }
 0x1a3   : > { %14241 = vmatprep.subr.bf16.mxu1 %v15849_v49 }
 0x1a5   : > { %13052 = vmatmul.mubr.msk.f32.gmra.mrb[38].mxu1 %vm822_vm1, %v15851_v29 }
 0x1a6   : > { %13054 = vmatprep.mubr.msk.f32.mxu1 %vm822_vm1, %v15855_v47 }
 0x1a9   : > { %13055 = vmatmul.mubr.msk.f32.gmra.mrb[40].mxu1 %vm822_vm1, %v15860_v2 }
 0x1aa   : > { %13057 = vmatprep.mubr.msk.f32.mxu1 %vm822_vm1, %v15864_v39 }
 0x1ad   : > { %13058 = vmatmul.mubr.msk.f32.gmra.mrb[0].mxu1 %vm822_vm1, %v15868_v15 }
 0x1ae   : > { %13060 = vmatprep.mubr.msk.f32.mxu1 %vm822_vm1, %v15872_v61 }
 0x1b1   : > { %13061 = vmatmul.mubr.msk.f32.gmra.mrb[2].mxu1 %vm822_vm1, %v15876_v41 }
 0x1b2   : > { %13063 = vmatprep.mubr.msk.f32.mxu1 %vm822_vm1, %v15880_v32 }
 0x1b5   : > { %13064 = vmatmul.mubr.msk.f32.gmra.mrb[4].mxu1 %vm822_vm1, %v15884_v34 }
 0x1b6   : > { %13066 = vmatprep.mubr.msk.f32.mxu1 %vm822_vm1, %v15888_v23 }
 0x1b9   : > { %13067 = vmatmul.mubr.msk.f32.gmra.mrb[6].mxu1 %vm822_vm1, %v15892_v25 }
 0x1ba   : > { %13069 = vmatprep.mubr.msk.f32.mxu1 %vm822_vm1, %v15896_v17 }
 0x1bd   : > { %13070 = vmatmul.mubr.msk.f32.gmra.mrb[8].mxu1 %vm822_vm1, %v15900_v19 }
 0x1be   : > { %13072 = vmatprep.mubr.msk.f32.mxu1 %vm822_vm1, %v15904_v11 }
 0x1c1   : > { %13073 = vmatmul.mubr.msk.f32.gmra.mrb[10].mxu1 %vm822_vm1, %v15908_v13 }
 0x1c2   : > { %13075 = vmatprep.mubr.msk.f32.mxu1 %vm822_vm1, %v15912_v5 }
 0x1c5   : > { %13076 = vmatmul.mubr.msk.f32.gmra.mrb[12].mxu1 %vm822_vm1, %v15916_v7 }
 0x1c6   : > { %13078 = vmatprep.mubr.msk.f32.mxu1 %vm822_vm1, %v15920_v63 }
 0x1c8   : > { %v15924_v1 = vpop.f32.mrb[42].mxu0 }
 0x1c9   : > { %18819 = vst [vmem:[#allocation22_spill] sm:$0xff] %v15924_v1  ;;  %v15928_v48 = vpop.f32.mrb[43].mxu0  ;;  %13079 = vmatmul.mubr.msk.f32.gmra.mrb[14].mxu1 %vm822_vm1, %v15926_v57  ;;  %v15944_v1 = vld [vmem:[#allocation2 + $0xd7] sm:$0xff] }
 0x1ca   : > { %18820 = vst [vmem:[#allocation23_spill] sm:$0xff] %v15928_v48  ;;  %13081 = vmatprep.mubr.msk.f32.mxu1 %vm822_vm1, %v15932_v51 }
 0x1cc   : > { %v15936_v30 = vpop.f32.mrb[44].mxu0 }
 0x1cd   : > { %18821 = vst [vmem:[#allocation24_spill] sm:$0xff] %v15936_v30  ;;  %v15940_v54 = vpop.f32.mrb[45].mxu0  ;;  %13082 = vmatmul.mubr.msk.f32.gmra.mrb[16].mxu1 %vm822_vm1, %v15938_v59  ;;  %v15956_v30 = vld [vmem:[#allocation2 + $0xe7] sm:$0xff] }
 0x1ce   : > { %18822 = vst [vmem:[#allocation25_spill] sm:$0xff] %v15940_v54  ;;  %13084 = vmatprep.mubr.msk.f32.mxu1 %vm822_vm1, %v15944_v1 }
 0x1d0   : > { %v15948_v48 = vpop.f32.mrb[46].mxu0 }
 0x1d1   : > { %18823 = vst [vmem:[#allocation26_spill] sm:$0xff] %v15948_v48  ;;  %v15952_v20 = vpop.f32.mrb[47].mxu0  ;;  %13085 = vmatmul.mubr.msk.f32.gmra.mrb[18].mxu1 %vm822_vm1, %v15950_v9  ;;  %v1655_v48 = vld [vmem:[#allocation2 + $0xf7] sm:$0xff] }
 0x1d2   : > { %18824 = vst [vmem:[#allocation27_spill] sm:$0xff] %v15952_v20  ;;  %13087 = vmatprep.mubr.msk.f32.mxu1 %vm822_vm1, %v15956_v30  ;;  %v1656_v20 = vld [vmem:[#allocation2 + $0xff] sm:$0xff] }
 0x1d4   : > { %v15960_v54 = vpop.f32.mrb[48].mxu0 }
 0x1d5   : > { %18825 = vst [vmem:[#allocation28_spill] sm:$0xff] %v15960_v54  ;;  %v15964_v36 = vpop.f32.mrb[49].mxu0  ;;  %13088 = vmatmul.mubr.msk.f32.gmra.mrb[20].mxu1 %vm822_vm1, %v15962_v27  ;;  %v1659_v54 = vld [vmem:[#allocation2 + $0x117] sm:$0xff] }
 0x1d6   : > { %18826 = vst [vmem:[#allocation29_spill] sm:$0xff] %v15964_v36  ;;  %13090 = vmatprep.mubr.msk.f32.mxu1 %vm822_vm1, %v1655_v48  ;;  %v1661_v36 = vld [vmem:[#allocation2 + $0x127] sm:$0xff] }
 0x1d9   : > { %13091 = vmatmul.mubr.msk.f32.gmra.mrb[22].mxu1 %vm822_vm1, %v1656_v20 }
 0x1da   : > { %13093 = vmatprep.mubr.msk.f32.mxu1 %vm822_vm1, %v1657_v42 }
 0x1dd   : > { %13094 = vmatmul.mubr.msk.f32.gmra.mrb[24].mxu1 %vm822_vm1, %v1658_v55 }
 0x1de   : > { %13096 = vmatprep.mubr.msk.f32.mxu1 %vm822_vm1, %v1659_v54 }
 0x1e1   : > { %13097 = vmatmul.mubr.msk.f32.gmra.mrb[26].mxu1 %vm822_vm1, %v1660_v3 }
 0x1e2   : > { %13099 = vmatprep.mubr.msk.f32.mxu1 %vm822_vm1, %v1661_v36 }
 0x1e5   : > { %13100 = vmatmul.mubr.msk.f32.gmra.mrb[28].mxu1 %vm822_vm1, %v1662_v37 }
 0x1e6   : > { %13102 = vmatprep.mubr.msk.f32.mxu1 %vm822_vm1, %v1663_v43 }
 0x1e9   : > { %13103 = vmatmul.mubr.msk.f32.gmra.mrb[30].mxu1 %vm822_vm1, %v1664_v26 }
 0x1ea   : > { %13105 = vmatprep.mubr.msk.f32.mxu1 %vm822_vm1, %v1665_v28 }
 0x1ed   : > { %13106 = vmatmul.mubr.msk.f32.gmra.mrb[32].mxu1 %vm822_vm1, %v1666_v8 }
 0x1ee   : > { %13114 = vmatprep.mubr.msk.f32.mxu1 %vm822_vm1, %v15823_v45  ;;  %v3131_v45 = vld [vmem:[%s18691_s1 + $0x88] sm:$0xff] }
 0x1f1   : > { %13115 = vmatmul.mubr.msk.f32.vlgmr.msra.gmra.mrb[34].mxu1 %vm822_vm1, %v15830_v21  ;;  %v3132_v21 = vld [vmem:[%s18691_s1 + $0x90] sm:$0xff] }
 0x1f2   : > { %13117 = vmatprep.mubr.msk.f32.mxu1 %vm822_vm1, %v15835_v35  ;;  %14243 = vmatpush3.bf16.msra.mxu1 %v15849_v49  ;;  %v14244_v58 = vpack.c.bf16 %v3132_v21, %v3131_v45  ;;  %v18881_v45 = vld [vmem:[#allocation21_spill] sm:$0xff] }
 0x1f3   : > { %13181 = vmatprep.subr.mxu1 %v2645_v14  ;;  %v18882_v21 = vmax.f32 %v18881_v45, 0.0  ;;  %v15322_v45 = vld [vmem:[%s15413_s25 + $0x48] sm:$0xff] }
 0x1f5   : > { %13118 = vmatmul.mubr.msk.f32.gmra.mrb[36].mxu1 %vm822_vm1, %v15839_v53  ;;  %v18875_v53 = vld [vmem:[#allocation16_spill] sm:$0xff] }
 0x1f6   : > { %13120 = vmatprep.mubr.msk.f32.mxu1 %vm822_vm1, %v15851_v29  ;;  %13182 = vmatpush3.msra.mxu1 %v2645_v14  ;;  %v18876_v49 = vmax.f32 %v18875_v53, 0.0  ;;  %v18877_v29 = vld [vmem:[#allocation19_spill] sm:$0xff]  ;;  %v15316_v53 = vld [vmem:[%s15413_s25 + $0x18] sm:$0xff] }
 0x1f7   : > { %14245 = vmatprep.subr.bf16.mxu1 %v14244_v58 }
 0x1f9   : > { %13121 = vmatmul.mubr.msk.f32.gmra.mrb[38].mxu1 %vm822_vm1, %v15855_v47  ;;  %v18851_v47 = vld [vmem:[#allocation4_spill] sm:$0xff] }
 0x1fa   : > { %13123 = vmatprep.mubr.msk.f32.mxu1 %vm822_vm1, %v15860_v2  ;;  %v18878_v2 = vmax.f32 %v18877_v29, 0.0  ;;  %v15318_v29 = vld [vmem:[%s15413_s25 + $0x28] sm:$0xff] }
 0x1fd   : > { %13124 = vmatmul.mubr.msk.f32.gmra.mrb[40].mxu1 %vm822_vm1, %v15864_v39  ;;  %v18845_v39 = vmax.f32 %v15630_v50, 0.0 }
 0x1fe   : > { %13126 = vmatprep.mubr.msk.f32.mxu1 %vm822_vm1, %v15868_v15  ;;  %v18879_v15 = vld [vmem:[#allocation18_spill] sm:$0xff] }
 0x201   : > { %13127 = vmatmul.mubr.msk.f32.gmra.mrb[0].mxu1 %vm822_vm1, %v15872_v61  ;;  %v18880_v61 = vmax.f32 %v18879_v15, 0.0  ;;  %v15320_v15 = vld [vmem:[%s15413_s25 + $0x38] sm:$0xff] }
 0x202   : > { %13129 = vmatprep.mubr.msk.f32.mxu1 %vm822_vm1, %v15876_v41 }
 0x205   : > { %13130 = vmatmul.mubr.msk.f32.gmra.mrb[2].mxu1 %vm822_vm1, %v15880_v32  ;;  %v18832_v32 = vmax.f32 %v15549_v12, 0.0  ;;  %v18837_v12 = vmax.f32 %v15569_v22, 0.0  ;;  %v18842_v22 = vmax.f32 %v15622_v46, 0.0  ;;  %v18849_v46 = vld [vmem:[#allocation5_spill] sm:$0xff] }
 0x206   : > { %13132 = vmatprep.mubr.msk.f32.mxu1 %vm822_vm1, %v15884_v34  ;;  %v18833_v34 = vmax.f32 %v15545_v10, 0.0  ;;  %v18838_v10 = vmax.f32 %v15594_v33, 0.0  ;;  %v18843_v33 = vmax.f32 %v15618_v44, 0.0  ;;  %v18850_v44 = vmax.f32 %v18849_v46, 0.0  ;;  %v16295_v46 = vld [vmem:[#allocation2 + $0xd1] sm:$0xff] }
 0x209   : > { %13133 = vmatmul.mubr.msk.f32.gmra.mrb[4].mxu1 %vm822_vm1, %v15888_v23  ;;  %v18829_v23 = vmax.f32 %v15523_v62, 0.0  ;;  %v18834_v62 = vmax.f32 %v15561_v18, 0.0  ;;  %v18839_v18 = vmax.f32 %v15590_v31, 0.0  ;;  %v18844_v31 = vmax.f32 %v15634_v52, 0.0  ;;  %v18853_v52 = vld [vmem:[#allocation7_spill] sm:$0xff] }
 0x20a   : > { %13135 = vmatprep.mubr.msk.f32.mxu1 %vm822_vm1, %v15892_v25  ;;  %v18830_v25 = vmax.f32 %v15537_v6, 0.0  ;;  %v18835_v6 = vmax.f32 %v15557_v16, 0.0  ;;  %v18840_v16 = vmax.f32 %v15609_v40, 0.0  ;;  %v18847_v40 = vld [vmem:[#allocation3_spill] sm:$0xff]  ;;  %v18854_v50 = vmax.f32 %v18853_v52, 0.0 }
 0x20b   : > { %v18848_v41 = vmax.f32 %v18847_v40, 0.0  ;;  %v16287_v40 = vld [vmem:[#allocation2 + $0xc1] sm:$0xff]  ;;  %v16311_v52 = vld [vmem:[#allocation2 + $0xf1] sm:$0xff] }
 0x20d   : > { %13136 = vmatmul.mubr.msk.f32.gmra.mrb[6].mxu1 %vm822_vm1, %v15896_v17  ;;  %v3620_v17 = vld [vmem:[%s18691_s1 + $0xa8] sm:$0xff] }
 0x20e   : > { %13138 = vmatprep.mubr.msk.f32.mxu1 %vm822_vm1, %v15900_v19 }
 0x211   : > { %13139 = vmatmul.mubr.msk.f32.gmra.mrb[8].mxu1 %vm822_vm1, %v15904_v11  ;;  %v2604_v11 = vld [vmem:[#allocation2 + $0x28] sm:$0xff] }
 0x212   : > { %13141 = vmatprep.mubr.msk.f32.mxu1 %vm822_vm1, %v15908_v13  ;;  %v18828_v13 = vmax.f32 %v15526_v0, 0.0  ;;  %v18831_v0 = vmax.f32 %v15533_v4, 0.0  ;;  %v18836_v4 = vmax.f32 %v15574_v24, 0.0  ;;  %v18841_v24 = vmax.f32 %v15605_v38, 0.0 }
 0x213   : > { %v18846_v38 = vmax.f32 %v15646_v60, 0.0  ;;  %v18857_v60 = vld [vmem:[#allocation9_spill] sm:$0xff] }
 0x215   : > { %13142 = vmatmul.mubr.msk.f32.gmra.mrb[10].mxu1 %vm822_vm1, %v15912_v5  ;;  %v3133_v5 = vld [vmem:[%s18691_s1 + $0x98] sm:$0xff] }
 0x216   : > { %13144 = vmatprep.mubr.msk.f32.mxu1 %vm822_vm1, %v15916_v7  ;;  %v2603_v7 = vld [vmem:[#allocation2 + $0x20] sm:$0xff] }
 0x219   : > { %13145 = vmatmul.mubr.msk.f32.gmra.mrb[12].mxu1 %vm822_vm1, %v15920_v63  ;;  %v18827_v63 = vmax.f32 %v15518_v56, 0.0  ;;  %v3619_v56 = vld [vmem:[%s18691_s1 + $0xa0] sm:$0xff] }
 0x21a   : > { %13147 = vmatprep.mubr.msk.f32.mxu1 %vm822_vm1, %v15926_v57  ;;  %v2154_v57 = vld [vmem:[#allocation2 + $0x157] sm:$0xff]  ;;  %v14248_v19 = vpack.c.bf16 %v3620_v17, %v3619_v56 }
 0x21b   : > { %v16206_v56 = vld [vmem:[#allocation2 + $0x31] sm:$0xff] }
 0x21c   : > { %v4107_v17 = vld [vmem:[%s18691_s1 + $0xb8] sm:$0xff] }
 0x21d   : > { %13148 = vmatmul.mubr.msk.f32.gmra.mrb[14].mxu1 %vm822_vm1, %v15932_v51  ;;  %v18852_v51 = vmax.f32 %v18851_v47, 0.0  ;;  %v16303_v47 = vld [vmem:[#allocation2 + $0xe1] sm:$0xff] }
 0x21e   : > { %13150 = vmatprep.mubr.msk.f32.mxu1 %vm822_vm1, %v15938_v59 }
 0x221   : > { %13151 = vmatmul.mubr.msk.f32.gmra.mrb[16].mxu1 %vm822_vm1, %v15944_v1  ;;  %v2602_v1 = vld [vmem:[#allocation2 + $0x18] sm:$0xff] }
 0x222   : > { %13153 = vmatprep.mubr.msk.f32.mxu1 %vm822_vm1, %v15950_v9  ;;  %v18859_v9 = vld [vmem:[#allocation8_spill] sm:$0xff] }
 0x223   : > { %v18860_v14 = vmax.f32 %v18859_v9, 0.0  ;;  %v16335_v9 = vld [vmem:[#allocation2 + $0x121] sm:$0xff] }
 0x225   : > { %13154 = vmatmul.mubr.msk.f32.gmra.mrb[18].mxu1 %vm822_vm1, %v15956_v30 }
 0x226   : > { %13156 = vmatprep.mubr.msk.f32.mxu1 %vm822_vm1, %v15962_v27 }
 0x229   : > { %13157 = vmatmul.mubr.msk.f32.gmra.mrb[20].mxu1 %vm822_vm1, %v1655_v48  ;;  %v18873_v48 = vld [vmem:[#allocation17_spill] sm:$0xff] }
 0x22a   : > { %13159 = vmatprep.mubr.msk.f32.mxu1 %vm822_vm1, %v1656_v20  ;;  %v18869_v20 = vld [vmem:[#allocation15_spill] sm:$0xff]  ;;  %v18874_v35 = vmax.f32 %v18873_v48, 0.0 }
 0x22b   : > { %v15314_v48 = vld [vmem:[%s15413_s25 + $0x10] sm:$0xff] }
 0x22d   : > { %13160 = vmatmul.mubr.msk.f32.gmra.mrb[22].mxu1 %vm822_vm1, %v1657_v42  ;;  %v18865_v42 = vld [vmem:[#allocation13_spill] sm:$0xff] }
 0x22e   : > { %13162 = vmatprep.mubr.msk.f32.mxu1 %vm822_vm1, %v1658_v55  ;;  %v18867_v55 = vld [vmem:[#allocation12_spill] sm:$0xff] }
 0x231   : > { %13163 = vmatmul.mubr.msk.f32.gmra.mrb[24].mxu1 %vm822_vm1, %v1659_v54  ;;  %v18871_v54 = vld [vmem:[#allocation14_spill] sm:$0xff] }
 0x232   : > { %13165 = vmatprep.mubr.msk.f32.mxu1 %vm822_vm1, %v1660_v3  ;;  %v18868_v3 = vmax.f32 %v18867_v55, 0.0  ;;  %v18872_v30 = vmax.f32 %v18871_v54, 0.0  ;;  %v4109_v55 = vld [vmem:[%s18691_s1 + $0xc8] sm:$0xff]  ;;  %v15365_v54 = vmov 12  }
 0x233   : > { %15311 = vset.pattern.permute.xlu0 %v15365_v54  ;;  %15312 = vset.pattern.permute.xlu1 %v15365_v54  ;;  %v15351_v54 = vld [vmem:[%s15413_s25 + $0x130] sm:$0xff] }
 0x234   : > { %5139 = vperm.xlu1 %15312, %v15314_v48   ;;  %v15352_v48 = vld [vmem:[%s15413_s25 + $0x138] sm:$0xff] }
 0x235   : > { %13166 = vmatmul.mubr.msk.f32.gmra.mrb[26].mxu1 %vm822_vm1, %v1661_v36  ;;  %v18870_v36 = vmax.f32 %v18869_v20, 0.0  ;;  %v4596_v20 = vld [vmem:[%s18691_s1 + $0xd8] sm:$0xff] }
 0x236   : > { %13168 = vmatprep.mubr.msk.f32.mxu1 %vm822_vm1, %v1662_v37 }
 0x238   : > { %5143 = vperm.xlu1 %15312, %v15316_v53   ;;  %v15353_v53 = vld [vmem:[%s15413_s25 + $0x140] sm:$0xff] }
 0x239   : > { %13169 = vmatmul.mubr.msk.f32.gmra.mrb[28].mxu1 %vm822_vm1, %v1663_v43  ;;  %v18866_v43 = vmax.f32 %v18865_v42, 0.0  ;;  %v16359_v42 = vld [vmem:[#allocation2 + $0x151] sm:$0xff] }
 0x23a   : > { %13171 = vmatprep.mubr.msk.f32.mxu1 %vm822_vm1, %v1664_v26  ;;  %v18861_v26 = vld [vmem:[#allocation11_spill] sm:$0xff] }
 0x23b   : > { %v18862_v27 = vmax.f32 %v18861_v26, 0.0  ;;  %v16343_v26 = vld [vmem:[#allocation2 + $0x131] sm:$0xff] }
 0x23c   : > { %5151 = vperm.xlu1 %15312, %v15318_v29   ;;  %v15354_v29 = vld [vmem:[%s15413_s25 + $0x148] sm:$0xff] }
 0x23d   : > { %13172 = vmatmul.mubr.msk.f32.gmra.mrb[30].mxu1 %vm822_vm1, %v1665_v28  ;;  %v18863_v28 = vld [vmem:[#allocation10_spill] sm:$0xff] }
 0x23e   : > { %13174 = vmatprep.mubr.msk.f32.mxu1 %vm822_vm1, %v1666_v8  ;;  %v18858_v8 = vmax.f32 %v18857_v60, 0.0  ;;  %v18864_v37 = vmax.f32 %v18863_v28, 0.0  ;;  %v16327_v60 = vld [vmem:[#allocation2 + $0x111] sm:$0xff]  ;;  %v16351_v28 = vld [vmem:[#allocation2 + $0x141] sm:$0xff] }
 0x240   : > { %5159 = vperm.xlu1 %15312, %v15320_v15   ;;  %v4092_v15 = vld [vmem:[#allocation2 + $0xf2] sm:$0xff] }
 0x241   : > { %13175 = vmatmul.mubr.msk.f32.gmra.mrb[32].mxu1 %vm822_vm1, %v2154_v57  ;;  %v18883_v57 = vld [vmem:[#allocation20_spill] sm:$0xff] }
 0x242   : > { %13183 = vmatprep.mubr.msk.f32.mxu1 %vm822_vm1, %v18827_v63  ;;  %v18884_v63 = vmax.f32 %v18883_v57, 0.0  ;;  %v15324_v57 = vld [vmem:[%s15413_s25 + $0x58] sm:$0xff] }
 0x244   : > { %5167 = vperm.xlu1 %15312, %v15322_v45   ;;  %v4094_v45 = vld [vmem:[#allocation2 + $0x102] sm:$0xff] }
 0x245   : > { %13184 = vmatmul.mubr.msk.f32.vlgmr.msra.gmra.mrb[34].mxu1 %vm822_vm1, %v2602_v1  ;;  %v3089_v1 = vld [vmem:[#allocation2 + $0x11] sm:$0xff] }
 0x246   : > { %13186 = vmatprep.mubr.msk.f32.mxu1 %vm822_vm1, %v2603_v7  ;;  %14247 = vmatpush3.bf16.msra.mxu1 %v14244_v58  ;;  %v18855_v58 = vld [vmem:[#allocation6_spill] sm:$0xff]  ;;  %v3621_v7 = vld [vmem:[%s18691_s1 + $0xb0] sm:$0xff] }
 0x247   : > { %13250 = vmatprep.subr.mxu1 %v3133_v5  ;;  %v18856_v59 = vmax.f32 %v18855_v58, 0.0  ;;  %v16319_v58 = vld [vmem:[#allocation2 + $0x101] sm:$0xff] }
 0x248   : > { %5175 = vperm.xlu1 %15312, %v15324_v57   ;;  %v4096_v57 = vld [vmem:[#allocation2 + $0x112] sm:$0xff] }
 0x249   : > { %13187 = vmatmul.mubr.msk.f32.gmra.mrb[36].mxu1 %vm822_vm1, %v2604_v11  ;;  %v16198_v11 = vld [vmem:[#allocation2 + $0x21] sm:$0xff] }
 0x24a   : > { %13189 = vmatprep.mubr.msk.f32.mxu1 %vm822_vm1, %v18828_v13  ;;  %13251 = vmatpush3.msra.mxu1 %v3133_v5  ;;  %v16191_v5 = vld [vmem:[#allocation2 + $0x19] sm:$0xff]  ;;  %v16202_v13 = vld [vmem:[#allocation2 + $0x29] sm:$0xff] }
 0x24b   : > { %14249 = vmatprep.subr.bf16.mxu1 %v14248_v19 }
 0x24d   : > { %13190 = vmatmul.mubr.msk.f32.gmra.mrb[38].mxu1 %vm822_vm1, %v18829_v23 }
 0x24e   : > { %13192 = vmatprep.mubr.msk.f32.mxu1 %vm822_vm1, %v18830_v25  ;;  %v16218_v25 = vld [vmem:[#allocation2 + $0x39] sm:$0xff] }
 0x251   : > { %13193 = vmatmul.mubr.msk.f32.gmra.mrb[40].mxu1 %vm822_vm1, %v18831_v0  ;;  %v16222_v0 = vld [vmem:[#allocation2 + $0x41] sm:$0xff] }
 0x252   : > { %13195 = vmatprep.mubr.msk.f32.mxu1 %vm822_vm1, %v18832_v32  ;;  %v16227_v32 = vld [vmem:[#allocation2 + $0x49] sm:$0xff] }
 0x255   : > { %13196 = vmatmul.mubr.msk.f32.gmra.mrb[0].mxu1 %vm822_vm1, %v18833_v34  ;;  %v16231_v34 = vld [vmem:[#allocation2 + $0x51] sm:$0xff] }
 0x256   : > { %13198 = vmatprep.mubr.msk.f32.mxu1 %vm822_vm1, %v18834_v62  ;;  %v16235_v62 = vld [vmem:[#allocation2 + $0x59] sm:$0xff] }
 0x259   : > { %13199 = vmatmul.mubr.msk.f32.gmra.mrb[2].mxu1 %vm822_vm1, %v18835_v6  ;;  %v16239_v6 = vld [vmem:[#allocation2 + $0x61] sm:$0xff] }
 0x25a   : > { %13201 = vmatprep.mubr.msk.f32.mxu1 %vm822_vm1, %v18836_v4  ;;  %v16243_v4 = vld [vmem:[#allocation2 + $0x69] sm:$0xff] }
 0x25d   : > { %13202 = vmatmul.mubr.msk.f32.gmra.mrb[4].mxu1 %vm822_vm1, %v18837_v12  ;;  %v16247_v12 = vld [vmem:[#allocation2 + $0x71] sm:$0xff] }
 0x25e   : > { %13204 = vmatprep.mubr.msk.f32.mxu1 %vm822_vm1, %v18838_v10  ;;  %v16251_v10 = vld [vmem:[#allocation2 + $0x79] sm:$0xff] }
 0x261   : > { %13205 = vmatmul.mubr.msk.f32.gmra.mrb[6].mxu1 %vm822_vm1, %v18839_v18  ;;  %v16255_v18 = vld [vmem:[#allocation2 + $0x81] sm:$0xff] }
 0x262   : > { %13207 = vmatprep.mubr.msk.f32.mxu1 %vm822_vm1, %v18840_v16  ;;  %v16259_v16 = vld [vmem:[#allocation2 + $0x89] sm:$0xff] }
 0x265   : > { %13208 = vmatmul.mubr.msk.f32.gmra.mrb[8].mxu1 %vm822_vm1, %v18841_v24  ;;  %v16263_v24 = vld [vmem:[#allocation2 + $0x91] sm:$0xff] }
 0x266   : > { %13210 = vmatprep.mubr.msk.f32.mxu1 %vm822_vm1, %v18842_v22  ;;  %v16267_v22 = vld [vmem:[#allocation2 + $0x99] sm:$0xff] }
 0x269   : > { %13211 = vmatmul.mubr.msk.f32.gmra.mrb[10].mxu1 %vm822_vm1, %v18843_v33  ;;  %v16271_v33 = vld [vmem:[#allocation2 + $0xa1] sm:$0xff] }
 0x26a   : > { %13213 = vmatprep.mubr.msk.f32.mxu1 %vm822_vm1, %v18844_v31  ;;  %v16275_v31 = vld [vmem:[#allocation2 + $0xa9] sm:$0xff] }
 0x26d   : > { %13214 = vmatmul.mubr.msk.f32.gmra.mrb[12].mxu1 %vm822_vm1, %v18845_v39  ;;  %v16279_v39 = vld [vmem:[#allocation2 + $0xb1] sm:$0xff] }
 0x26e   : > { %13216 = vmatprep.mubr.msk.f32.mxu1 %vm822_vm1, %v18846_v38  ;;  %v16283_v38 = vld [vmem:[#allocation2 + $0xb9] sm:$0xff] }
 0x271   : > { %13217 = vmatmul.mubr.msk.f32.gmra.mrb[14].mxu1 %vm822_vm1, %v18848_v41  ;;  %v16291_v41 = vld [vmem:[#allocation2 + $0xc9] sm:$0xff] }
 0x272   : > { %13219 = vmatprep.mubr.msk.f32.mxu1 %vm822_vm1, %v18850_v44  ;;  %v16299_v44 = vld [vmem:[#allocation2 + $0xd9] sm:$0xff] }
 0x275   : > { %13220 = vmatmul.mubr.msk.f32.gmra.mrb[16].mxu1 %vm822_vm1, %v18852_v51  ;;  %v16307_v51 = vld [vmem:[#allocation2 + $0xe9] sm:$0xff] }
 0x276   : > { %13222 = vmatprep.mubr.msk.f32.mxu1 %vm822_vm1, %v18854_v50  ;;  %v16315_v50 = vld [vmem:[#allocation2 + $0xf9] sm:$0xff] }
 0x279   : > { %13223 = vmatmul.mubr.msk.f32.gmra.mrb[18].mxu1 %vm822_vm1, %v18856_v59  ;;  %v16323_v59 = vld [vmem:[#allocation2 + $0x109] sm:$0xff] }
 0x27a   : > { %13225 = vmatprep.mubr.msk.f32.mxu1 %vm822_vm1, %v18858_v8  ;;  %v16331_v8 = vld [vmem:[#allocation2 + $0x119] sm:$0xff] }
 0x27d   : > { %13226 = vmatmul.mubr.msk.f32.gmra.mrb[20].mxu1 %vm822_vm1, %v18860_v14  ;;  %v16339_v14 = vld [vmem:[#allocation2 + $0x129] sm:$0xff] }
 0x27e   : > { %13228 = vmatprep.mubr.msk.f32.mxu1 %vm822_vm1, %v18862_v27  ;;  %v16347_v27 = vld [vmem:[#allocation2 + $0x139] sm:$0xff] }
 0x281   : > { %13229 = vmatmul.mubr.msk.f32.gmra.mrb[22].mxu1 %vm822_vm1, %v18864_v37  ;;  %v16355_v37 = vld [vmem:[#allocation2 + $0x149] sm:$0xff] }
 0x282   : > { %13231 = vmatprep.mubr.msk.f32.mxu1 %vm822_vm1, %v18866_v43  ;;  %v16363_v43 = vld [vmem:[#allocation2 + $0x159] sm:$0xff] }
 0x285   : > { %13232 = vmatmul.mubr.msk.f32.gmra.mrb[24].mxu1 %vm822_vm1, %v18868_v3  ;;  %v4595_v3 = vld [vmem:[%s18691_s1 + $0xd0] sm:$0xff] }
 0x286   : > { %13234 = vmatprep.mubr.msk.f32.mxu1 %vm822_vm1, %v18870_v36  ;;  %v16387_v36 = vpack.c.bf16 %v4596_v20, %v4595_v3  ;;  %v4086_v3 = vld [vmem:[#allocation2 + $0xc2] sm:$0xff] }
 0x287   : > { %v15350_v20 = vld [vmem:[%s15413_s25 + $0x128] sm:$0xff] }
 0x289   : > { %13235 = vmatmul.mubr.msk.f32.gmra.mrb[26].mxu1 %vm822_vm1, %v18872_v30  ;;  %v15313_v30 = vld [vmem:[%s15413_s25] sm:$0xff] }
 0x28a   : > { %13237 = vmatprep.mubr.msk.f32.mxu1 %vm822_vm1, %v18874_v35  ;;  %5131 = vperm.xlu0 %15311, %v15313_v30   ;;  %v15315_v35 = vld [vmem:[%s15413_s25 + $0x8] sm:$0xff]  ;;  %v4088_v30 = vld [vmem:[#allocation2 + $0xd2] sm:$0xff] }
 0x28d   : > { %13238 = vmatmul.mubr.msk.f32.gmra.mrb[28].mxu1 %vm822_vm1, %v18876_v49  ;;  %v15317_v49 = vld [vmem:[%s15413_s25 + $0x20] sm:$0xff] }
 0x28e   : > { %13240 = vmatprep.mubr.msk.f32.mxu1 %vm822_vm1, %v18878_v2  ;;  %5135 = vperm.xlu0 %15311, %v15315_v35   ;;  %v15319_v2 = vld [vmem:[%s15413_s25 + $0x30] sm:$0xff]  ;;  %v4089_v35 = vld [vmem:[#allocation2 + $0xda] sm:$0xff] }
 0x291   : > { %13241 = vmatmul.mubr.msk.f32.gmra.mrb[30].mxu1 %vm822_vm1, %v18880_v61  ;;  %v15321_v61 = vld [vmem:[%s15413_s25 + $0x40] sm:$0xff] }
 0x292   : > { %13243 = vmatprep.mubr.msk.f32.mxu1 %vm822_vm1, %v18882_v21  ;;  %5147 = vperm.xlu0 %15311, %v15317_v49   ;;  %v15323_v21 = vld [vmem:[%s15413_s25 + $0x50] sm:$0xff]  ;;  %v4090_v49 = vld [vmem:[#allocation2 + $0xe2] sm:$0xff] }
 0x295   : > { %13244 = vmatmul.mubr.msk.f32.gmra.mrb[32].mxu1 %vm822_vm1, %v18884_v63  ;;  %v15325_v63 = vld [vmem:[%s15413_s25 + $0x60] sm:$0xff] }
 0x296   : > { %13252 = vmatprep.mubr.msk.f32.mxu1 %vm822_vm1, %v3089_v1  ;;  %5155 = vperm.xlu0 %15311, %v15319_v2   ;;  %v15326_v1 = vld [vmem:[%s15413_s25 + $0x68] sm:$0xff] }
 0x297   : > { %5183 = vperm.xlu1 %15312, %v15326_v1   ;;  %v4091_v2 = vld [vmem:[#allocation2 + $0xea] sm:$0xff]  ;;  %v4098_v1 = vld [vmem:[#allocation2 + $0x122] sm:$0xff] }
 0x299   : > { %13253 = vmatmul.mubr.msk.f32.vlgmr.msra.gmra.mrb[34].mxu1 %vm822_vm1, %v16191_v5 }
 0x29a   : > { %13255 = vmatprep.mubr.msk.f32.mxu1 %vm822_vm1, %v16198_v11  ;;  %14251 = vmatpush3.bf16.msra.mxu1 %v14248_v19  ;;  %v4108_v19 = vld [vmem:[%s18691_s1 + $0xc0] sm:$0xff] }
 0x29b   : > { %13319 = vmatprep.subr.mxu1 %v3621_v7  ;;  %v16216_v23 = vpack.c.bf16 %v4108_v19, %v4107_v17  ;;  %5163 = vperm.xlu0 %15311, %v15321_v61   ;;  %v4066_v17 = vld [vmem:[#allocation2 + $0x22] sm:$0xff]  ;;  %v4093_v61 = vld [vmem:[#allocation2 + $0xfa] sm:$0xff] }
 0x29c   : > { %v4597_v19 = vld [vmem:[%s18691_s1 + $0xe0] sm:$0xff] }
 0x29d   : > { %13256 = vmatmul.mubr.msk.f32.gmra.mrb[36].mxu1 %vm822_vm1, %v16202_v13 }
 0x29e   : > { %13258 = vmatprep.mubr.msk.f32.mxu1 %vm822_vm1, %v16206_v56  ;;  %13320 = vmatpush3.msra.mxu1 %v3621_v7  ;;  %v15327_v7 = vld [vmem:[%s15413_s25 + $0x70] sm:$0xff] }
 0x29f   : > { %14253 = vmatprep.subr.bf16.mxu1 %v16216_v23  ;;  %5171 = vperm.xlu0 %15311, %v15323_v21   ;;  %v4095_v21 = vld [vmem:[#allocation2 + $0x10a] sm:$0xff] }
 0x2a1   : > { %13259 = vmatmul.mubr.msk.f32.gmra.mrb[38].mxu1 %vm822_vm1, %v16218_v25 }
 0x2a2   : > { %13261 = vmatprep.mubr.msk.f32.mxu1 %vm822_vm1, %v16222_v0 }
 0x2a3   : > { %5179 = vperm.xlu0 %15311, %v15325_v63   ;;  %v4097_v63 = vld [vmem:[#allocation2 + $0x11a] sm:$0xff] }
 0x2a5   : > { %13262 = vmatmul.mubr.msk.f32.gmra.mrb[40].mxu1 %vm822_vm1, %v16227_v32 }
 0x2a6   : > { %13264 = vmatprep.mubr.msk.f32.mxu1 %vm822_vm1, %v16231_v34 }
 0x2a7   : > { %5187 = vperm.xlu0 %15311, %v15327_v7   ;;  %v4100_v7 = vld [vmem:[#allocation2 + $0x132] sm:$0xff] }
 0x2a9   : > { %13265 = vmatmul.mubr.msk.f32.gmra.mrb[0].mxu1 %vm822_vm1, %v16235_v62 }
 0x2aa   : > { %13267 = vmatprep.mubr.msk.f32.mxu1 %vm822_vm1, %v16239_v6 }
 0x2ad   : > { %13268 = vmatmul.mubr.msk.f32.gmra.mrb[2].mxu1 %vm822_vm1, %v16243_v4 }
 0x2ae   : > { %13270 = vmatprep.mubr.msk.f32.mxu1 %vm822_vm1, %v16247_v12 }
 0x2b1   : > { %13271 = vmatmul.mubr.msk.f32.gmra.mrb[4].mxu1 %vm822_vm1, %v16251_v10 }
 0x2b2   : > { %13273 = vmatprep.mubr.msk.f32.mxu1 %vm822_vm1, %v16255_v18 }
 0x2b5   : > { %13274 = vmatmul.mubr.msk.f32.gmra.mrb[6].mxu1 %vm822_vm1, %v16259_v16 }
 0x2b6   : > { %13276 = vmatprep.mubr.msk.f32.mxu1 %vm822_vm1, %v16263_v24 }
 0x2b9   : > { %13277 = vmatmul.mubr.msk.f32.gmra.mrb[8].mxu1 %vm822_vm1, %v16267_v22 }
 0x2ba   : > { %13279 = vmatprep.mubr.msk.f32.mxu1 %vm822_vm1, %v16271_v33 }
 0x2bd   : > { %13280 = vmatmul.mubr.msk.f32.gmra.mrb[10].mxu1 %vm822_vm1, %v16275_v31 }
 0x2be   : > { %13282 = vmatprep.mubr.msk.f32.mxu1 %vm822_vm1, %v16279_v39 }
 0x2c1   : > { %13283 = vmatmul.mubr.msk.f32.gmra.mrb[12].mxu1 %vm822_vm1, %v16283_v38 }
 0x2c2   : > { %13285 = vmatprep.mubr.msk.f32.mxu1 %vm822_vm1, %v16287_v40 }
 0x2c5   : > { %13286 = vmatmul.mubr.msk.f32.gmra.mrb[14].mxu1 %vm822_vm1, %v16291_v41 }
 0x2c6   : > { %13288 = vmatprep.mubr.msk.f32.mxu1 %vm822_vm1, %v16295_v46 }
 0x2c9   : > { %13289 = vmatmul.mubr.msk.f32.gmra.mrb[16].mxu1 %vm822_vm1, %v16299_v44 }
 0x2ca   : > { %13291 = vmatprep.mubr.msk.f32.mxu1 %vm822_vm1, %v16303_v47 }
 0x2cd   : > { %13292 = vmatmul.mubr.msk.f32.gmra.mrb[18].mxu1 %vm822_vm1, %v16307_v51 }
 0x2ce   : > { %13294 = vmatprep.mubr.msk.f32.mxu1 %vm822_vm1, %v16311_v52 }
 0x2d1   : > { %13295 = vmatmul.mubr.msk.f32.gmra.mrb[20].mxu1 %vm822_vm1, %v16315_v50 }
 0x2d2   : > { %13297 = vmatprep.mubr.msk.f32.mxu1 %vm822_vm1, %v16319_v58 }
 0x2d5   : > { %13298 = vmatmul.mubr.msk.f32.gmra.mrb[22].mxu1 %vm822_vm1, %v16323_v59 }
 0x2d6   : > { %13300 = vmatprep.mubr.msk.f32.mxu1 %vm822_vm1, %v16327_v60 }
 0x2d9   : > { %13301 = vmatmul.mubr.msk.f32.gmra.mrb[24].mxu1 %vm822_vm1, %v16331_v8 }
 0x2da   : > { %13303 = vmatprep.mubr.msk.f32.mxu1 %vm822_vm1, %v16335_v9 }
 0x2dd   : > { %13304 = vmatmul.mubr.msk.f32.gmra.mrb[26].mxu1 %vm822_vm1, %v16339_v14 }
 0x2de   : > { %13306 = vmatprep.mubr.msk.f32.mxu1 %vm822_vm1, %v16343_v26 }
 0x2e1   : > { %13307 = vmatmul.mubr.msk.f32.gmra.mrb[28].mxu1 %vm822_vm1, %v16347_v27 }
 0x2e2   : > { %13309 = vmatprep.mubr.msk.f32.mxu1 %vm822_vm1, %v16351_v28 }
 0x2e5   : > { %13310 = vmatmul.mubr.msk.f32.gmra.mrb[30].mxu1 %vm822_vm1, %v16355_v37 }
 0x2e6   : > { %13312 = vmatprep.mubr.msk.f32.mxu1 %vm822_vm1, %v16359_v42 }
 0x2e9   : > { %13313 = vmatmul.mubr.msk.f32.gmra.mrb[32].mxu1 %vm822_vm1, %v16363_v43 }
 0x2ea   : > { %13321 = vmatprep.mubr.msk.f32.mxu1 %vm822_vm1, %v16191_v5  ;;  %v3618_v5 = vld [vmem:[#allocation2 + $0x161] sm:$0xff] }
 0x2ed   : > { %13322 = vmatmul.mubr.msk.f32.vlgmr.msra.gmra.mrb[34].mxu1 %vm822_vm1, %v16198_v11  ;;  %v15328_v11 = vld [vmem:[%s15413_s25 + $0x78] sm:$0xff] }
 0x2ee   : > { %13324 = vmatprep.mubr.msk.f32.mxu1 %vm822_vm1, %v16202_v13  ;;  %14255 = vmatpush3.bf16.msra.mxu1 %v16216_v23  ;;  %v4065_v13 = vld [vmem:[#allocation2 + $0x1a] sm:$0xff]  ;;  %v15330_v23 = vld [vmem:[%s15413_s25 + $0x88] sm:$0xff] }
 0x2ef   : > { %13388 = vmatprep.subr.mxu1 %v4109_v55  ;;  %5191 = vperm.xlu1 %15312, %v15328_v11   ;;  %v4101_v11 = vld [vmem:[#allocation2 + $0x13a] sm:$0xff] }
 0x2f1   : > { %13325 = vmatmul.mubr.msk.f32.gmra.mrb[36].mxu1 %vm822_vm1, %v16206_v56  ;;  %v15329_v56 = vld [vmem:[%s15413_s25 + $0x80] sm:$0xff] }
 0x2f2   : > { %13327 = vmatprep.mubr.msk.f32.mxu1 %vm822_vm1, %v16218_v25  ;;  %13389 = vmatpush3.msra.mxu1 %v4109_v55  ;;  %v4067_v25 = vld [vmem:[#allocation2 + $0x2a] sm:$0xff]  ;;  %v15349_v55 = vld [vmem:[%s15413_s25 + $0x120] sm:$0xff] }
 0x2f3   : > { %14257 = vmatprep.subr.bf16.mxu1 %v16387_v36  ;;  %5195 = vperm.xlu0 %15311, %v15329_v56   ;;  %v4103_v56 = vld [vmem:[#allocation2 + $0x14a] sm:$0xff] }
 0x2f4   : > { %5199 = vperm.xlu1 %15312, %v15330_v23   ;;  %v4106_v23 = vld [vmem:[#allocation2 + $0x162] sm:$0xff] }
 0x2f5   : > { %13328 = vmatmul.mubr.msk.f32.gmra.mrb[38].mxu1 %vm822_vm1, %v16222_v0  ;;  %v15331_v0 = vld [vmem:[%s15413_s25 + $0x90] sm:$0xff] }
 0x2f6   : > { %13330 = vmatprep.mubr.msk.f32.mxu1 %vm822_vm1, %v16227_v32  ;;  %v4068_v32 = vld [vmem:[#allocation2 + $0x32] sm:$0xff] }
 0x2f7   : > { %5203 = vperm.xlu0 %15311, %v15331_v0   ;;  %v4554_v0 = vld [vmem:[#allocation2 + $0x23] sm:$0xff] }
 0x2f9   : > { %13331 = vmatmul.mubr.msk.f32.gmra.mrb[40].mxu1 %vm822_vm1, %v16231_v34  ;;  %v15332_v34 = vld [vmem:[%s15413_s25 + $0x98] sm:$0xff] }
 0x2fa   : > { %13333 = vmatprep.mubr.msk.f32.mxu1 %vm822_vm1, %v16235_v62  ;;  %5207 = vperm.xlu1 %15312, %v15332_v34   ;;  %v4069_v62 = vld [vmem:[#allocation2 + $0x3a] sm:$0xff] }
 0x2fb   : > { %v4556_v34 = vld [vmem:[#allocation2 + $0x33] sm:$0xff] }
 0x2fd   : > { %13334 = vmatmul.mubr.msk.f32.gmra.mrb[0].mxu1 %vm822_vm1, %v16239_v6  ;;  %v15333_v6 = vld [vmem:[%s15413_s25 + $0xa0] sm:$0xff] }
 0x2fe   : > { %13336 = vmatprep.mubr.msk.f32.mxu1 %vm822_vm1, %v16243_v4  ;;  %5211 = vperm.xlu0 %15311, %v15333_v6   ;;  %v4070_v4 = vld [vmem:[#allocation2 + $0x42] sm:$0xff] }
 0x2ff   : > { %v4558_v6 = vld [vmem:[#allocation2 + $0x43] sm:$0xff] }
 0x301   : > { %13337 = vmatmul.mubr.msk.f32.gmra.mrb[2].mxu1 %vm822_vm1, %v16247_v12  ;;  %v15334_v12 = vld [vmem:[%s15413_s25 + $0xa8] sm:$0xff] }
 0x302   : > { %13339 = vmatprep.mubr.msk.f32.mxu1 %vm822_vm1, %v16251_v10  ;;  %5215 = vperm.xlu1 %15312, %v15334_v12   ;;  %v4071_v10 = vld [vmem:[#allocation2 + $0x4a] sm:$0xff]  ;;  %v4560_v12 = vld [vmem:[#allocation2 + $0x53] sm:$0xff] }
 0x305   : > { %13340 = vmatmul.mubr.msk.f32.gmra.mrb[4].mxu1 %vm822_vm1, %v16255_v18  ;;  %v15335_v18 = vld [vmem:[%s15413_s25 + $0xb0] sm:$0xff] }
 0x306   : > { %13342 = vmatprep.mubr.msk.f32.mxu1 %vm822_vm1, %v16259_v16  ;;  %5219 = vperm.xlu0 %15311, %v15335_v18   ;;  %v4072_v16 = vld [vmem:[#allocation2 + $0x52] sm:$0xff]  ;;  %v4562_v18 = vld [vmem:[#allocation2 + $0x63] sm:$0xff] }
 0x309   : > { %13343 = vmatmul.mubr.msk.f32.gmra.mrb[6].mxu1 %vm822_vm1, %v16263_v24  ;;  %v15336_v24 = vld [vmem:[%s15413_s25 + $0xb8] sm:$0xff] }
 0x30a   : > { %13345 = vmatprep.mubr.msk.f32.mxu1 %vm822_vm1, %v16267_v22  ;;  %5223 = vperm.xlu1 %15312, %v15336_v24   ;;  %v4073_v22 = vld [vmem:[#allocation2 + $0x5a] sm:$0xff] }
 0x30b   : > { %v4564_v24 = vld [vmem:[#allocation2 + $0x73] sm:$0xff] }
 0x30d   : > { %13346 = vmatmul.mubr.msk.f32.gmra.mrb[8].mxu1 %vm822_vm1, %v16271_v33  ;;  %v15337_v33 = vld [vmem:[%s15413_s25 + $0xc0] sm:$0xff] }
 0x30e   : > { %13348 = vmatprep.mubr.msk.f32.mxu1 %vm822_vm1, %v16275_v31  ;;  %5227 = vperm.xlu0 %15311, %v15337_v33   ;;  %v4074_v31 = vld [vmem:[#allocation2 + $0x62] sm:$0xff] }
 0x30f   : > { %v4566_v33 = vld [vmem:[#allocation2 + $0x83] sm:$0xff] }
 0x311   : > { %13349 = vmatmul.mubr.msk.f32.gmra.mrb[10].mxu1 %vm822_vm1, %v16279_v39  ;;  %v15338_v39 = vld [vmem:[%s15413_s25 + $0xc8] sm:$0xff] }
 0x312   : > { %13351 = vmatprep.mubr.msk.f32.mxu1 %vm822_vm1, %v16283_v38  ;;  %5231 = vperm.xlu1 %15312, %v15338_v39   ;;  %v4075_v38 = vld [vmem:[#allocation2 + $0x6a] sm:$0xff]  ;;  %v4568_v39 = vld [vmem:[#allocation2 + $0x93] sm:$0xff] }
 0x315   : > { %13352 = vmatmul.mubr.msk.f32.gmra.mrb[12].mxu1 %vm822_vm1, %v16287_v40  ;;  %v15339_v40 = vld [vmem:[%s15413_s25 + $0xd0] sm:$0xff] }
 0x316   : > { %13354 = vmatprep.mubr.msk.f32.mxu1 %vm822_vm1, %v16291_v41  ;;  %5235 = vperm.xlu0 %15311, %v15339_v40   ;;  %v4076_v41 = vld [vmem:[#allocation2 + $0x72] sm:$0xff]  ;;  %v4570_v40 = vld [vmem:[#allocation2 + $0xa3] sm:$0xff] }
 0x319   : > { %13355 = vmatmul.mubr.msk.f32.gmra.mrb[14].mxu1 %vm822_vm1, %v16295_v46  ;;  %v15340_v46 = vld [vmem:[%s15413_s25 + $0xd8] sm:$0xff] }
 0x31a   : > { %13357 = vmatprep.mubr.msk.f32.mxu1 %vm822_vm1, %v16299_v44  ;;  %5239 = vperm.xlu1 %15312, %v15340_v46   ;;  %v4077_v44 = vld [vmem:[#allocation2 + $0x7a] sm:$0xff] }
 0x31b   : > { %v4572_v46 = vld [vmem:[#allocation2 + $0xb3] sm:$0xff] }
 0x31d   : > { %13358 = vmatmul.mubr.msk.f32.gmra.mrb[16].mxu1 %vm822_vm1, %v16303_v47  ;;  %v15341_v47 = vld [vmem:[%s15413_s25 + $0xe0] sm:$0xff] }
 0x31e   : > { %13360 = vmatprep.mubr.msk.f32.mxu1 %vm822_vm1, %v16307_v51  ;;  %5243 = vperm.xlu0 %15311, %v15341_v47   ;;  %v4078_v51 = vld [vmem:[#allocation2 + $0x82] sm:$0xff] }
 0x31f   : > { %v4574_v47 = vld [vmem:[#allocation2 + $0xc3] sm:$0xff] }
 0x321   : > { %13361 = vmatmul.mubr.msk.f32.gmra.mrb[18].mxu1 %vm822_vm1, %v16311_v52  ;;  %v15342_v52 = vld [vmem:[%s15413_s25 + $0xe8] sm:$0xff] }
 0x322   : > { %13363 = vmatprep.mubr.msk.f32.mxu1 %vm822_vm1, %v16315_v50  ;;  %5247 = vperm.xlu1 %15312, %v15342_v52   ;;  %v4079_v50 = vld [vmem:[#allocation2 + $0x8a] sm:$0xff]  ;;  %v4576_v52 = vld [vmem:[#allocation2 + $0xd3] sm:$0xff] }
 0x325   : > { %13364 = vmatmul.mubr.msk.f32.gmra.mrb[20].mxu1 %vm822_vm1, %v16319_v58  ;;  %v15343_v58 = vld [vmem:[%s15413_s25 + $0xf0] sm:$0xff] }
 0x326   : > { %13366 = vmatprep.mubr.msk.f32.mxu1 %vm822_vm1, %v16323_v59  ;;  %5251 = vperm.xlu0 %15311, %v15343_v58   ;;  %v4080_v59 = vld [vmem:[#allocation2 + $0x92] sm:$0xff]  ;;  %v4578_v58 = vld [vmem:[#allocation2 + $0xe3] sm:$0xff] }
 0x329   : > { %13367 = vmatmul.mubr.msk.f32.gmra.mrb[22].mxu1 %vm822_vm1, %v16327_v60  ;;  %v15344_v60 = vld [vmem:[%s15413_s25 + $0xf8] sm:$0xff] }
 0x32a   : > { %13369 = vmatprep.mubr.msk.f32.mxu1 %vm822_vm1, %v16331_v8  ;;  %5255 = vperm.xlu1 %15312, %v15344_v60   ;;  %v4081_v8 = vld [vmem:[#allocation2 + $0x9a] sm:$0xff] }
 0x32b   : > { %v4580_v60 = vld [vmem:[#allocation2 + $0xf3] sm:$0xff] }
 0x32d   : > { %13370 = vmatmul.mubr.msk.f32.gmra.mrb[24].mxu1 %vm822_vm1, %v16335_v9  ;;  %v15345_v9 = vld [vmem:[%s15413_s25 + $0x100] sm:$0xff] }
 0x32e   : > { %13372 = vmatprep.mubr.msk.f32.mxu1 %vm822_vm1, %v16339_v14  ;;  %5259 = vperm.xlu0 %15311, %v15345_v9   ;;  %v4082_v14 = vld [vmem:[#allocation2 + $0xa2] sm:$0xff] }
 0x32f   : > { %v4582_v9 = vld [vmem:[#allocation2 + $0x103] sm:$0xff] }
 0x331   : > { %13373 = vmatmul.mubr.msk.f32.gmra.mrb[26].mxu1 %vm822_vm1, %v16343_v26  ;;  %v15346_v26 = vld [vmem:[%s15413_s25 + $0x108] sm:$0xff] }
 0x332   : > { %13375 = vmatprep.mubr.msk.f32.mxu1 %vm822_vm1, %v16347_v27  ;;  %5263 = vperm.xlu1 %15312, %v15346_v26   ;;  %v4083_v27 = vld [vmem:[#allocation2 + $0xaa] sm:$0xff]  ;;  %v4584_v26 = vld [vmem:[#allocation2 + $0x113] sm:$0xff] }
 0x335   : > { %13376 = vmatmul.mubr.msk.f32.gmra.mrb[28].mxu1 %vm822_vm1, %v16351_v28  ;;  %v15347_v28 = vld [vmem:[%s15413_s25 + $0x110] sm:$0xff] }
 0x336   : > { %13378 = vmatprep.mubr.msk.f32.mxu1 %vm822_vm1, %v16355_v37  ;;  %5267 = vperm.xlu0 %15311, %v15347_v28   ;;  %v4084_v37 = vld [vmem:[#allocation2 + $0xb2] sm:$0xff]  ;;  %v4586_v28 = vld [vmem:[#allocation2 + $0x123] sm:$0xff] }
 0x339   : > { %13379 = vmatmul.mubr.msk.f32.gmra.mrb[30].mxu1 %vm822_vm1, %v16359_v42  ;;  %v15348_v42 = vld [vmem:[%s15413_s25 + $0x118] sm:$0xff] }
 0x33a   : > { %13381 = vmatprep.mubr.msk.f32.mxu1 %vm822_vm1, %v16363_v43  ;;  %5271 = vperm.xlu1 %15312, %v15348_v42   ;;  %v4085_v43 = vld [vmem:[#allocation2 + $0xba] sm:$0xff] }
 0x33b   : > { %5275 = vperm.xlu0 %15311, %v15349_v55   ;;  %v4588_v42 = vld [vmem:[#allocation2 + $0x133] sm:$0xff]  ;;  %v4590_v55 = vld [vmem:[#allocation2 + $0x143] sm:$0xff] }
 0x33d   : > { %13382 = vmatmul.mubr.msk.f32.gmra.mrb[32].mxu1 %vm822_vm1, %v3618_v5  ;;  %v4099_v5 = vld [vmem:[#allocation2 + $0x12a] sm:$0xff] }
 0x33e   : > { %13390 = vmatprep.mubr.msk.f32.mxu1 %vm822_vm1, %v4065_v13  ;;  %5279 = vperm.xlu1 %15312, %v15350_v20   ;;  %v4102_v13 = vld [vmem:[#allocation2 + $0x142] sm:$0xff]  ;;  %v4592_v20 = vld [vmem:[#allocation2 + $0x153] sm:$0xff] }
 0x33f   : > { %5283 = vperm.xlu0 %15311, %v15351_v54   ;;  %v4594_v54 = vld [vmem:[#allocation2 + $0x163] sm:$0xff] }
 0x341   : > { %13391 = vmatmul.mubr.msk.f32.vlgmr.msra.gmra.mrb[34].mxu1 %vm822_vm1, %v4066_v17  ;;  %v4104_v17 = vld [vmem:[#allocation2 + $0x152] sm:$0xff] }
 0x342   : > { %13393 = vmatprep.mubr.msk.f32.mxu1 %vm822_vm1, %v4067_v25  ;;  %14259 = vmatpush3.bf16.msra.mxu1 %v16387_v36  ;;  %v4087_v36 = vld [vmem:[#allocation2 + $0xca] sm:$0xff]  ;;  %v4553_v25 = vld [vmem:[#allocation2 + $0x1b] sm:$0xff] }
 0x343   : > { %13457 = vmatprep.subr.mxu1 %v4597_v19  ;;  %5287 = vperm.xlu1 %15312, %v15352_v48   ;;  %v5473_v48 = vld [vmem:[%s18691_s1 + $0x120] sm:$0xff] }
 0x344   : > { %5291 = vperm.xlu0 %15311, %v15353_v53   ;;  %v5474_v53 = vld [vmem:[%s18691_s1 + $0x128] sm:$0xff] }
 0x345   : > { %13394 = vmatmul.mubr.msk.f32.gmra.mrb[36].mxu1 %vm822_vm1, %v4068_v32  ;;  %v4555_v32 = vld [vmem:[#allocation2 + $0x2b] sm:$0xff] }
 0x346   : > { %13396 = vmatprep.mubr.msk.f32.mxu1 %vm822_vm1, %v4069_v62  ;;  %13458 = vmatpush3.msra.mxu1 %v4597_v19  ;;  %v4105_v19 = vld [vmem:[#allocation2 + $0x15a] sm:$0xff] }
 0x347   : > { %5295 = vperm.xlu1 %15312, %v15354_v29   ;;  %v4557_v62 = vld [vmem:[#allocation2 + $0x3b] sm:$0xff] }
 0x349   : > { %13397 = vmatmul.mubr.msk.f32.gmra.mrb[38].mxu1 %vm822_vm1, %v4070_v4  ;;  %v4559_v4 = vld [vmem:[#allocation2 + $0x4b] sm:$0xff] }
 0x34a   : > { %13399 = vmatprep.mubr.msk.f32.mxu1 %vm822_vm1, %v4071_v10  ;;  %v4561_v10 = vld [vmem:[#allocation2 + $0x5b] sm:$0xff] }
 0x34d   : > { %13400 = vmatmul.mubr.msk.f32.gmra.mrb[40].mxu1 %vm822_vm1, %v4072_v16  ;;  %v4563_v16 = vld [vmem:[#allocation2 + $0x6b] sm:$0xff] }
 0x34e   : > { %13402 = vmatprep.mubr.msk.f32.mxu1 %vm822_vm1, %v4073_v22  ;;  %v4565_v22 = vld [vmem:[#allocation2 + $0x7b] sm:$0xff] }
 0x351   : > { %13403 = vmatmul.mubr.msk.f32.gmra.mrb[0].mxu1 %vm822_vm1, %v4074_v31  ;;  %v4567_v31 = vld [vmem:[#allocation2 + $0x8b] sm:$0xff] }
 0x352   : > { %13405 = vmatprep.mubr.msk.f32.mxu1 %vm822_vm1, %v4075_v38  ;;  %v4569_v38 = vld [vmem:[#allocation2 + $0x9b] sm:$0xff] }
 0x355   : > { %13406 = vmatmul.mubr.msk.f32.gmra.mrb[2].mxu1 %vm822_vm1, %v4076_v41  ;;  %v4571_v41 = vld [vmem:[#allocation2 + $0xab] sm:$0xff] }
 0x356   : > { %13408 = vmatprep.mubr.msk.f32.mxu1 %vm822_vm1, %v4077_v44  ;;  %v4573_v44 = vld [vmem:[#allocation2 + $0xbb] sm:$0xff] }
 0x359   : > { %13409 = vmatmul.mubr.msk.f32.gmra.mrb[4].mxu1 %vm822_vm1, %v4078_v51  ;;  %v4575_v51 = vld [vmem:[#allocation2 + $0xcb] sm:$0xff] }
 0x35a   : > { %13411 = vmatprep.mubr.msk.f32.mxu1 %vm822_vm1, %v4079_v50  ;;  %v4577_v50 = vld [vmem:[#allocation2 + $0xdb] sm:$0xff] }
 0x35d   : > { %13412 = vmatmul.mubr.msk.f32.gmra.mrb[6].mxu1 %vm822_vm1, %v4080_v59  ;;  %v4579_v59 = vld [vmem:[#allocation2 + $0xeb] sm:$0xff] }
 0x35e   : > { %13414 = vmatprep.mubr.msk.f32.mxu1 %vm822_vm1, %v4081_v8  ;;  %v4581_v8 = vld [vmem:[#allocation2 + $0xfb] sm:$0xff] }
 0x361   : > { %13415 = vmatmul.mubr.msk.f32.gmra.mrb[8].mxu1 %vm822_vm1, %v4082_v14  ;;  %v4583_v14 = vld [vmem:[#allocation2 + $0x10b] sm:$0xff] }
 0x362   : > { %13417 = vmatprep.mubr.msk.f32.mxu1 %vm822_vm1, %v4083_v27  ;;  %v4585_v27 = vld [vmem:[#allocation2 + $0x11b] sm:$0xff] }
 0x365   : > { %13418 = vmatmul.mubr.msk.f32.gmra.mrb[10].mxu1 %vm822_vm1, %v4084_v37  ;;  %v4587_v37 = vld [vmem:[#allocation2 + $0x12b] sm:$0xff] }
 0x366   : > { %13420 = vmatprep.mubr.msk.f32.mxu1 %vm822_vm1, %v4085_v43  ;;  %v4589_v43 = vld [vmem:[#allocation2 + $0x13b] sm:$0xff] }
 0x369   : > { %13421 = vmatmul.mubr.msk.f32.gmra.mrb[12].mxu1 %vm822_vm1, %v4086_v3  ;;  %v4591_v3 = vld [vmem:[#allocation2 + $0x14b] sm:$0xff] }
 0x36a   : > { %13423 = vmatprep.mubr.msk.f32.mxu1 %vm822_vm1, %v4087_v36  ;;  %v4593_v36 = vld [vmem:[#allocation2 + $0x15b] sm:$0xff] }
 0x36d   : > { %13424 = vmatmul.mubr.msk.f32.gmra.mrb[14].mxu1 %vm822_vm1, %v4088_v30  ;;  %v5472_v30 = vld [vmem:[%s18691_s1 + $0x118] sm:$0xff] }
 0x36e   : > { %13426 = vmatprep.mubr.msk.f32.mxu1 %vm822_vm1, %v4089_v35  ;;  %v14260_v35 = vpack.c.bf16 %v5473_v48, %v5472_v30 }
 0x370   : > { %14261 = vmatprep.subr.bf16.mxu0 %v14260_v35 }
 0x371   : > { %13427 = vmatmul.mubr.msk.f32.gmra.mrb[16].mxu1 %vm822_vm1, %v4090_v49  ;;  %14263 = vmatpush3.bf16.msra.mxu0 %v14260_v35  ;;  %v5475_v49 = vld [vmem:[%s18691_s1 + $0x130] sm:$0xff]  ;;  %v18909_v35 = vld [vmem:[#allocation28_spill] sm:$0xff] }
 0x372   : > { %13429 = vmatprep.mubr.msk.f32.mxu1 %vm822_vm1, %v4091_v2  ;;  %v14264_v29 = vpack.c.bf16 %v5475_v49, %v5474_v53  ;;  %v5476_v2 = vld [vmem:[%s18691_s1 + $0x138] sm:$0xff] }
 0x374   : > { %14265 = vmatprep.subr.bf16.mxu0 %v14264_v29 }
 0x375   : > { %13430 = vmatmul.mubr.msk.f32.gmra.mrb[18].mxu1 %vm822_vm1, %v4092_v15  ;;  %14267 = vmatpush3.bf16.msra.mxu0 %v14264_v29  ;;  %v5477_v15 = vld [vmem:[%s18691_s1 + $0x140] sm:$0xff]  ;;  %v5426_v29 = vld [vmem:[%s18691_s1 + $0xf8] sm:$0xff] }
 0x376   : > { %13432 = vmatprep.mubr.msk.f32.mxu1 %vm822_vm1, %v4093_v61  ;;  %v14268_v61 = vpack.c.bf16 %v5477_v15, %v5476_v2  ;;  %v5427_v2 = vld [vmem:[%s18691_s1 + $0x100] sm:$0xff] }
 0x378   : > { %14269 = vmatprep.subr.bf16.mxu0 %v14268_v61 }
 0x379   : > { %13433 = vmatmul.mubr.msk.f32.gmra.mrb[20].mxu1 %vm822_vm1, %v4094_v45  ;;  %v5430_v45 = vld [vmem:[#allocation2 + $0x6] sm:$0xff]  ;;  %14271 = vmatpush3.bf16.msra.mxu0 %v14268_v61 }
 0x37a   : > { %13435 = vmatprep.mubr.msk.f32.mxu1 %vm822_vm1, %v4095_v21  ;;  %13534 = vmatprep.mubr.msk.f32.mxu0 %vm5478_vm2, %v5430_v45  ;;  %v5424_v21 = vld [vmem:[%s18691_s1 + $0xe8] sm:$0xff]  ;;  %v18910_v61 = vld [vmem:[#allocation29_spill] sm:$0xff] }
 0x37d   : > { %13436 = vmatmul.mubr.msk.f32.gmra.mrb[22].mxu1 %vm822_vm1, %v4096_v57  ;;  %v5425_v57 = vld [vmem:[%s18691_s1 + $0xf0] sm:$0xff] }
 0x37e   : > { %13438 = vmatprep.mubr.msk.f32.mxu1 %vm822_vm1, %v4097_v63  ;;  %v16618_v63 = vpack.c.bf16 %v5425_v57, %v5424_v21 }
 0x380   : > { %14273 = vmatprep.subr.bf16.mxu0 %v16618_v63 }
 0x381   : > { %13439 = vmatmul.mubr.msk.f32.gmra.mrb[24].mxu1 %vm822_vm1, %v4098_v1  ;;  %v16621_v1 = vpop.permute.xlu1 %5139 }
 0x382   : > { %13441 = vmatprep.mubr.msk.f32.mxu1 %vm822_vm1, %v4099_v5  ;;  %18885 = vst [vmem:[#allocation3_spill] sm:$0xff] %v16621_v1  ;;  %v16623_v5 = vpop.permute.xlu0 %5131 }
 0x383   : > { %18886 = vst [vmem:[#allocation5_spill] sm:$0xff] %v16623_v5 }
 0x385   : > { %13442 = vmatmul.mubr.msk.f32.gmra.mrb[26].mxu1 %vm822_vm1, %v4100_v7  ;;  %v16625_v7 = vpop.permute.xlu1 %5143 }
 0x386   : > { %13444 = vmatprep.mubr.msk.f32.mxu1 %vm822_vm1, %v4101_v11  ;;  %18887 = vst [vmem:[#allocation4_spill] sm:$0xff] %v16625_v7  ;;  %v16627_v11 = vpop.permute.xlu0 %5135 }
 0x387   : > { %18888 = vst [vmem:[#allocation7_spill] sm:$0xff] %v16627_v11 }
 0x389   : > { %13445 = vmatmul.mubr.msk.f32.gmra.mrb[28].mxu1 %vm822_vm1, %v4102_v13  ;;  %v16629_v13 = vpop.permute.xlu1 %5151 }
 0x38a   : > { %13447 = vmatprep.mubr.msk.f32.mxu1 %vm822_vm1, %v4103_v56  ;;  %18889 = vst [vmem:[#allocation6_spill] sm:$0xff] %v16629_v13  ;;  %v16631_v56 = vpop.permute.xlu0 %5147 }
 0x38b   : > { %18890 = vst [vmem:[#allocation9_spill] sm:$0xff] %v16631_v56 }
 0x38d   : > { %13448 = vmatmul.mubr.msk.f32.gmra.mrb[30].mxu1 %vm822_vm1, %v4104_v17  ;;  %v16633_v17 = vpop.permute.xlu1 %5159 }
 0x38e   : > { %13450 = vmatprep.mubr.msk.f32.mxu1 %vm822_vm1, %v4105_v19  ;;  %18891 = vst [vmem:[#allocation8_spill] sm:$0xff] %v16633_v17  ;;  %v16635_v19 = vpop.permute.xlu0 %5155 }
 0x38f   : > { %18892 = vst [vmem:[#allocation11_spill] sm:$0xff] %v16635_v19 }
 0x391   : > { %13451 = vmatmul.mubr.msk.f32.gmra.mrb[32].mxu1 %vm822_vm1, %v4106_v23  ;;  %v16637_v23 = vpop.permute.xlu1 %5167 }
 0x392   : > { %13459 = vmatprep.mubr.msk.f32.mxu1 %vm822_vm1, %v4553_v25  ;;  %18893 = vst [vmem:[#allocation10_spill] sm:$0xff] %v16637_v23  ;;  %v16639_v25 = vpop.permute.xlu0 %5163 }
 0x393   : > { %18894 = vst [vmem:[#allocation13_spill] sm:$0xff] %v16639_v25 }
 0x395   : > { %13460 = vmatmul.mubr.msk.f32.vlgmr.msra.gmra.mrb[34].mxu1 %vm822_vm1, %v4554_v0  ;;  %v16641_v0 = vpop.permute.xlu1 %5175 }
 0x396   : > { %13462 = vmatprep.mubr.msk.f32.mxu1 %vm822_vm1, %v4555_v32  ;;  %18895 = vst [vmem:[#allocation12_spill] sm:$0xff] %v16641_v0  ;;  %v16643_v32 = vpop.permute.xlu0 %5171 }
 0x397   : > { %18896 = vst [vmem:[#allocation15_spill] sm:$0xff] %v16643_v32 }
 0x399   : > { %13463 = vmatmul.mubr.msk.f32.gmra.mrb[36].mxu1 %vm822_vm1, %v4556_v34  ;;  %v16645_v34 = vpop.permute.xlu1 %5183 }
 0x39a   : > { %13465 = vmatprep.mubr.msk.f32.mxu1 %vm822_vm1, %v4557_v62  ;;  %18897 = vst [vmem:[#allocation14_spill] sm:$0xff] %v16645_v34 }
 0x39d   : > { %13466 = vmatmul.mubr.msk.f32.gmra.mrb[38].mxu1 %vm822_vm1, %v4558_v6  ;;  %v16650_v6 = vld [vmem:[%s18691_s1 + $0x298] ss:$0 sm:$0xff] }
 0x39e   : > { %13468 = vmatprep.mubr.msk.f32.mxu1 %vm822_vm1, %v4559_v4  ;;  %v16652_v4 = vpop.permute.xlu0 %5179 }
 0x39f   : > { %18898 = vst [vmem:[#allocation17_spill] sm:$0xff] %v16652_v4 }
 0x3a1   : > { %13469 = vmatmul.mubr.msk.f32.gmra.mrb[40].mxu1 %vm822_vm1, %v4560_v12  ;;  %v18899_v12 = vld [vmem:[#allocation22_spill] sm:$0xff] }
 0x3a2   : > { %13471 = vmatprep.mubr.msk.f32.mxu1 %vm822_vm1, %v4561_v10 }
 0x3a5   : > { %13472 = vmatmul.mubr.msk.f32.gmra.mrb[0].mxu1 %vm822_vm1, %v4562_v18 }
 0x3a6   : > { %13474 = vmatprep.mubr.msk.f32.mxu1 %vm822_vm1, %v4563_v16  ;;  %v18900_v16 = vld [vmem:[#allocation23_spill] sm:$0xff] }
 0x3a9   : > { %13475 = vmatmul.mubr.msk.f32.gmra.mrb[2].mxu1 %vm822_vm1, %v4564_v24 }
 0x3aa   : > { %13477 = vmatprep.mubr.msk.f32.mxu1 %vm822_vm1, %v4565_v22 }
 0x3ad   : > { %13478 = vmatmul.mubr.msk.f32.gmra.mrb[4].mxu1 %vm822_vm1, %v4566_v33 }
 0x3ae   : > { %13480 = vmatprep.mubr.msk.f32.mxu1 %vm822_vm1, %v4567_v31 }
 0x3b1   : > { %13481 = vmatmul.mubr.msk.f32.gmra.mrb[6].mxu1 %vm822_vm1, %v4568_v39 }
 0x3b2   : > { %13483 = vmatprep.mubr.msk.f32.mxu1 %vm822_vm1, %v4569_v38  ;;  %v18901_v38 = vld [vmem:[#allocation24_spill] sm:$0xff] }
 0x3b5   : > { %13484 = vmatmul.mubr.msk.f32.gmra.mrb[8].mxu1 %vm822_vm1, %v4570_v40 }
 0x3b6   : > { %13486 = vmatprep.mubr.msk.f32.mxu1 %vm822_vm1, %v4571_v41 }
 0x3b9   : > { %13487 = vmatmul.mubr.msk.f32.gmra.mrb[10].mxu1 %vm822_vm1, %v4572_v46  ;;  %v16659_v46 = vpop.permute.xlu1 %5191 }
 0x3ba   : > { %13489 = vmatprep.mubr.msk.f32.mxu1 %vm822_vm1, %v4573_v44  ;;  %18902 = vst [vmem:[#allocation16_spill] sm:$0xff] %v16659_v46 }
 0x3bd   : > { %13490 = vmatmul.mubr.msk.f32.gmra.mrb[12].mxu1 %vm822_vm1, %v4574_v47  ;;  %v18903_v47 = vld [vmem:[#allocation25_spill] sm:$0xff] }
 0x3be   : > { %13492 = vmatprep.mubr.msk.f32.mxu1 %vm822_vm1, %v4575_v51 }
 0x3c1   : > { %13493 = vmatmul.mubr.msk.f32.gmra.mrb[14].mxu1 %vm822_vm1, %v4576_v52  ;;  %v16662_v52 = vpop.permute.xlu0 %5187 }
 0x3c2   : > { %13495 = vmatprep.mubr.msk.f32.mxu1 %vm822_vm1, %v4577_v50  ;;  %18904 = vst [vmem:[#allocation19_spill] sm:$0xff] %v16662_v52 }
 0x3c5   : > { %13496 = vmatmul.mubr.msk.f32.gmra.mrb[16].mxu1 %vm822_vm1, %v4578_v58  ;;  %v16676_v30 = vpop.permute.xlu0 %5195 }
 0x3c6   : > { %13498 = vmatprep.mubr.msk.f32.mxu1 %vm822_vm1, %v4579_v59  ;;  %18908 = vst [vmem:[#allocation21_spill] sm:$0xff] %v16676_v30 }
 0x3c9   : > { %13499 = vmatmul.mubr.msk.f32.gmra.mrb[18].mxu1 %vm822_vm1, %v4580_v60 }
 0x3ca   : > { %13501 = vmatprep.mubr.msk.f32.mxu1 %vm822_vm1, %v4581_v8 }
 0x3cd   : > { %13502 = vmatmul.mubr.msk.f32.gmra.mrb[20].mxu1 %vm822_vm1, %v4582_v9 }
 0x3ce   : > { %13504 = vmatprep.mubr.msk.f32.mxu1 %vm822_vm1, %v4583_v14  ;;  %v18905_v14 = vld [vmem:[#allocation26_spill] sm:$0xff] }
 0x3d1   : > { %13505 = vmatmul.mubr.msk.f32.gmra.mrb[22].mxu1 %vm822_vm1, %v4584_v26 }
 0x3d2   : > { %13507 = vmatprep.mubr.msk.f32.mxu1 %vm822_vm1, %v4585_v27 }
 0x3d5   : > { %13508 = vmatmul.mubr.msk.f32.gmra.mrb[24].mxu1 %vm822_vm1, %v4586_v28 }
 0x3d6   : > { %13510 = vmatprep.mubr.msk.f32.mxu1 %vm822_vm1, %v4587_v37  ;;  %v18906_v37 = vld [vmem:[#allocation27_spill] sm:$0xff] }
 0x3d9   : > { %13511 = vmatmul.mubr.msk.f32.gmra.mrb[26].mxu1 %vm822_vm1, %v4588_v42 }
 0x3da   : > { %13513 = vmatprep.mubr.msk.f32.mxu1 %vm822_vm1, %v4589_v43 }
 0x3dd   : > { %13514 = vmatmul.mubr.msk.f32.gmra.mrb[28].mxu1 %vm822_vm1, %v4590_v55 }
 0x3de   : > { %13516 = vmatprep.mubr.msk.f32.mxu1 %vm822_vm1, %v4591_v3  ;;  %v16672_v3 = vpop.permute.xlu1 %5199 }
 0x3df   : > { %18907 = vst [vmem:[#allocation18_spill] sm:$0xff] %v16672_v3 }
 0x3e1   : > { %13517 = vmatmul.mubr.msk.f32.gmra.mrb[30].mxu1 %vm822_vm1, %v4592_v20 }
 0x3e2   : > { %13519 = vmatprep.mubr.msk.f32.mxu1 %vm822_vm1, %v4593_v36 }
 0x3e5   : > { %13520 = vmatmul.mubr.msk.f32.gmra.mrb[32].mxu1 %vm822_vm1, %v4594_v54 }
 0x468   : > { %v13461_v62 = vpop.f32.mrb[34].mxu1 }
 0x469   : > { %v14623_v10 = vadd.f32 %v13461_v62, %v18899_v12  ;;  %v4790_v18 = vpop.f32.mrb[35].mxu1 }
 0x46a   : > { %v14624_v24 = vadd.f32 %v4790_v18, %v18900_v16  ;;  %v14276_v18 = vpack.c.bf16 %v5427_v2, %v5426_v29  ;;  %v5428_v16 = vld [vmem:[%s18691_s1 + $0x108] sm:$0xff] }
 0x46b   : > { %v5047_v22 = vadd.f32 %v14623_v10, %v16650_v6 }
 0x46c   : > { %v5046_v33 = vadd.f32 %v14624_v24, %v16650_v6  ;;  %v13464_v31 = vpop.f32.mrb[36].mxu1 }
 0x46d   : > { %v5089_v39 = vmax.f32 %v5047_v22, 0.0  ;;  %v14625_v40 = vadd.f32 %v13464_v31, %v18901_v38  ;;  %v4800_v41 = vpop.f32.mrb[37].mxu1  ;;  %v5429_v38 = vld [vmem:[%s18691_s1 + $0x110] sm:$0xff] }
 0x46e   : > { %v5088_v44 = vmax.f32 %v5046_v33, 0.0  ;;  %v14626_v51 = vadd.f32 %v4800_v41, %v18903_v47  ;;  %v16701_v47 = vpop.permute.xlu0 %5203 }
 0x46f   : > { %v5299_v50 = vmul.f32 %v16627_v11, %v5089_v39  ;;  %v5049_v58 = vadd.f32 %v14625_v40, %v16650_v6  ;;  %v16697_v40 = vpop.permute.xlu1 %5207  ;;  %18912 = vst [vmem:[#allocation22_spill] sm:$0xff] %v16701_v47  ;;  %v7307_v11 = vld [vmem:[%s18691_s1 + $0x1b8] sm:$0xff] }
 0x470   : > { %v5298_v59 = vmul.f32 %v16623_v5, %v5088_v44  ;;  %v5048_v60 = vadd.f32 %v14626_v51, %v16650_v6  ;;  %v13467_v8 = vpop.f32.mrb[38].mxu1  ;;  %18911 = vst [vmem:[#allocation20_spill] sm:$0xff] %v16697_v40 }
 0x471   : > { %5341 = vst [vmem:[#allocation2 + $0x18] sm:$0xff] %v5299_v50  ;;  %v5091_v9 = vmax.f32 %v5049_v58, 0.0  ;;  %v14627_v26 = vadd.f32 %v13467_v8, %v18905_v14  ;;  %v4810_v27 = vpop.f32.mrb[39].mxu1  ;;  %v14280_v8 = vpack.c.bf16 %v5429_v38, %v5428_v16 }
 0x472   : > { %5340 = vst [vmem:[#allocation2 + $0x10] sm:$0xff] %v5298_v59  ;;  %v5090_v28 = vmax.f32 %v5048_v60, 0.0  ;;  %v14628_v42 = vadd.f32 %v4810_v27, %v18906_v37 }
 0x473   : > { %v5301_v43 = vmul.f32 %v16625_v7, %v5091_v9  ;;  %v5051_v55 = vadd.f32 %v14627_v26, %v16650_v6 }
 0x474   : > { %v5300_v20 = vmul.f32 %v16621_v1, %v5090_v28  ;;  %v5050_v36 = vadd.f32 %v14628_v42, %v16650_v6  ;;  %v13470_v54 = vpop.f32.mrb[40].mxu1 }
 0x475   : > { %5343 = vst [vmem:[#allocation2 + $0x28] sm:$0xff] %v5301_v43  ;;  %v5093_v48 = vmax.f32 %v5051_v55, 0.0  ;;  %v14629_v53 = vadd.f32 %v13470_v54, %v18909_v35  ;;  %v4820_v49 = vpop.f32.mrb[41].mxu1  ;;  %v6323_v43 = vld [vmem:[%s18691_s1 + $0x148] sm:$0xff]  ;;  %v6324_v55 = vld [vmem:[%s18691_s1 + $0x150] sm:$0xff]  ;;  %v16723_v35 = vpop.permute.xlu0 %5211 }
 0x476   : > { %5342 = vst [vmem:[#allocation2 + $0x20] sm:$0xff] %v5300_v20  ;;  %v5092_v15 = vmax.f32 %v5050_v36, 0.0  ;;  %v14630_v45 = vadd.f32 %v4820_v49, %v18910_v61  ;;  %v16719_v20 = vpop.permute.xlu1 %5215  ;;  %18914 = vst [vmem:[#allocation24_spill] sm:$0xff] %v16723_v35 }
 0x477   : > { %v5303_v21 = vmul.f32 %v16629_v13, %v5093_v48  ;;  %v5053_v57 = vadd.f32 %v14629_v53, %v16650_v6  ;;  %18913 = vst [vmem:[#allocation23_spill] sm:$0xff] %v16719_v20  ;;  %v16721_v48 = vpack.c.bf16 %v6324_v55, %v6323_v43 }
 0x478   : > { %v5302_v62 = vmul.f32 %v16631_v56, %v5092_v15  ;;  %v5052_v12 = vadd.f32 %v14630_v45, %v16650_v6  ;;  %v13473_v10 = vpop.f32.mrb[0].mxu1 }
 0x479   : > { %5345 = vst [vmem:[#allocation2 + $0x38] sm:$0xff] %v5303_v21  ;;  %v5095_v24 = vmax.f32 %v5053_v57, 0.0  ;;  %v5055_v22 = vadd.f32 %v13473_v10, %v16650_v6  ;;  %v4830_v33 = vpop.f32.mrb[1].mxu1  ;;  %v5431_v31 = vld [vmem:[#allocation2 + $0xe] sm:$0xff]  ;;  %v5432_v39 = vld [vmem:[#allocation2 + $0x16] sm:$0xff] }
 0x47a   : > { %5344 = vst [vmem:[#allocation2 + $0x30] sm:$0xff] %v5302_v62  ;;  %v5094_v41 = vmax.f32 %v5052_v12, 0.0  ;;  %v5054_v44 = vadd.f32 %v16650_v6, %v4830_v33  ;;  %13535 = vmatmul.mubr.msk.f32.vlgmr.msra.gmra.mrb[50].mxu0 %vm5478_vm2, %v5431_v31 }
 0x47b   : > { %v5305_v51 = vmul.f32 %v16633_v17, %v5095_v24  ;;  %v5097_v50 = vmax.f32 %v5055_v22, 0.0  ;;  %13537 = vmatprep.mubr.msk.f32.mxu0 %vm5478_vm2, %v5432_v39  ;;  %14275 = vmatpush3.bf16.msra.mxu0 %v16618_v63  ;;  %v16734_v22 = vpop.permute.xlu1 %5223  ;;  %v16739_v39 = vpop.permute.xlu0 %5219 }
 0x47c   : > { %v5304_v58 = vmul.f32 %v16635_v19, %v5094_v41  ;;  %v5096_v59 = vmax.f32 %v5054_v44, 0.0  ;;  %v13476_v60 = vpop.f32.mrb[2].mxu1  ;;  %14277 = vmatprep.subr.bf16.mxu0 %v14276_v18  ;;  %18915 = vst [vmem:[#allocation25_spill] sm:$0xff] %v16734_v22  ;;  %18916 = vst [vmem:[#allocation26_spill] sm:$0xff] %v16739_v39 }
 0x47d   : > { %5347 = vst [vmem:[#allocation2 + $0x48] sm:$0xff] %v5305_v51  ;;  %v5307_v9 = vmul.f32 %v16637_v23, %v5097_v50  ;;  %v5057_v14 = vadd.f32 %v13476_v60, %v16650_v6  ;;  %v4840_v26 = vpop.f32.mrb[3].mxu1  ;;  %v5433_v27 = vld [vmem:[#allocation2 + $0x1e] sm:$0xff]  ;;  %v5434_v28 = vld [vmem:[#allocation2 + $0x26] sm:$0xff] }
 0x47e   : > { %5346 = vst [vmem:[#allocation2 + $0x40] sm:$0xff] %v5304_v58  ;;  %v5306_v37 = vmul.f32 %v16639_v25, %v5096_v59  ;;  %v5056_v42 = vadd.f32 %v16650_v6, %v4840_v26  ;;  %13538 = vmatmul.mubr.msk.f32.gmra.mrb[52].mxu0 %vm5478_vm2, %v5433_v27 }
 0x47f   : > { %5349 = vst [vmem:[#allocation2 + $0x58] sm:$0xff] %v5307_v9  ;;  %v5099_v63 = vmax.f32 %v5057_v14, 0.0  ;;  %13540 = vmatprep.mubr.msk.f32.mxu0 %vm5478_vm2, %v5434_v28  ;;  %14279 = vmatpush3.bf16.msra.mxu0 %v14276_v18  ;;  %v16748_v26 = vpop.permute.xlu1 %5231 }
 0x480   : > { %5348 = vst [vmem:[#allocation2 + $0x50] sm:$0xff] %v5306_v37  ;;  %v5098_v36 = vmax.f32 %v5056_v42, 0.0  ;;  %v13479_v54 = vpop.f32.mrb[4].mxu1  ;;  %14281 = vmatprep.subr.bf16.mxu0 %v14280_v8  ;;  %18917 = vst [vmem:[#allocation27_spill] sm:$0xff] %v16748_v26  ;;  %v16750_v37 = vpop.permute.xlu0 %5227 }
 0x481   : > { %v5309_v53 = vmul.f32 %v16641_v0, %v5099_v63  ;;  %v5059_v49 = vadd.f32 %v13479_v54, %v16650_v6  ;;  %v4850_v29 = vpop.f32.mrb[5].mxu1  ;;  %v5435_v2 = vld [vmem:[#allocation2 + $0x2e] sm:$0xff]  ;;  %v5436_v15 = vld [vmem:[#allocation2 + $0x36] sm:$0xff]  ;;  %18918 = vst [vmem:[#allocation28_spill] sm:$0xff] %v16750_v37 }
 0x482   : > { %v5308_v61 = vmul.f32 %v16643_v32, %v5098_v36  ;;  %v5058_v45 = vadd.f32 %v16650_v6, %v4850_v29  ;;  %13541 = vmatmul.mubr.msk.f32.gmra.mrb[54].mxu0 %vm5478_vm2, %v5435_v2 }
 0x483   : > { %5351 = vst [vmem:[#allocation2 + $0x68] sm:$0xff] %v5309_v53  ;;  %v5101_v21 = vmax.f32 %v5059_v49, 0.0  ;;  %13543 = vmatprep.mubr.msk.f32.mxu0 %vm5478_vm2, %v5436_v15  ;;  %14283 = vmatpush3.bf16.msra.mxu0 %v14280_v8 }
 0x484   : > { %5350 = vst [vmem:[#allocation2 + $0x60] sm:$0xff] %v5308_v61  ;;  %v5100_v57 = vmax.f32 %v5058_v45, 0.0  ;;  %v13482_v62 = vpop.f32.mrb[6].mxu1  ;;  %14285 = vmatprep.subr.bf16.mxu0 %v16721_v48 }
 0x485   : > { %v5311_v12 = vmul.f32 %v16645_v34, %v5101_v21  ;;  %v5061_v10 = vadd.f32 %v13482_v62, %v16650_v6  ;;  %v4860_v18 = vpop.f32.mrb[7].mxu1  ;;  %v5437_v16 = vld [vmem:[#allocation2 + $0x3e] sm:$0xff]  ;;  %v5438_v24 = vld [vmem:[#allocation2 + $0x46] sm:$0xff] }
 0x486   : > { %v5310_v33 = vmul.f32 %v16652_v4, %v5100_v57  ;;  %v5060_v31 = vadd.f32 %v16650_v6, %v4860_v18  ;;  %13544 = vmatmul.mubr.msk.f32.gmra.mrb[56].mxu0 %vm5478_vm2, %v5437_v16  ;;  %v16760_v57 = vpop.permute.xlu1 %5239  ;;  %v16765_v18 = vpop.permute.xlu0 %5235 }
 0x487   : > { %5353 = vst [vmem:[#allocation2 + $0x78] sm:$0xff] %v5311_v12  ;;  %v5103_v38 = vmax.f32 %v5061_v10, 0.0  ;;  %13546 = vmatprep.mubr.msk.f32.mxu0 %vm5478_vm2, %v5438_v24  ;;  %v5439_v59 = vld [vmem:[#allocation2 + $0x4e] sm:$0xff]  ;;  %v5440_v9 = vld [vmem:[#allocation2 + $0x56] sm:$0xff]  ;;  %18919 = vst [vmem:[#allocation29_spill] sm:$0xff] %v16760_v57 }
 0x488   : > { %5352 = vst [vmem:[#allocation2 + $0x70] sm:$0xff] %v5310_v33  ;;  %v5102_v41 = vmax.f32 %v5060_v31, 0.0  ;;  %v13485_v44 = vpop.f32.mrb[8].mxu1  ;;  %18920 = vst [vmem:[#allocation30_spill] sm:$0xff] %v16765_v18 }
 0x489   : > { %v5313_v51 = vmul.f32 %v16659_v46, %v5103_v38  ;;  %v5063_v50 = vadd.f32 %v13485_v44, %v16650_v6  ;;  %v4870_v58 = vpop.f32.mrb[9].mxu1 }
 0x48a   : > { %v5312_v60 = vmul.f32 %v16662_v52, %v5102_v41  ;;  %v5062_v8 = vadd.f32 %v16650_v6, %v4870_v58  ;;  %13547 = vmatmul.mubr.msk.f32.gmra.mrb[58].mxu0 %vm5478_vm2, %v5439_v59 }
 0x48b   : > { %5355 = vst [vmem:[#allocation2 + $0x88] sm:$0xff] %v5313_v51  ;;  %v5105_v14 = vmax.f32 %v5063_v50, 0.0  ;;  %13549 = vmatprep.mubr.msk.f32.mxu0 %vm5478_vm2, %v5440_v9  ;;  %v5441_v55 = vld [vmem:[#allocation2 + $0x5e] sm:$0xff]  ;;  %v5442_v53 = vld [vmem:[#allocation2 + $0x66] sm:$0xff] }
 0x48c   : > { %5354 = vst [vmem:[#allocation2 + $0x80] sm:$0xff] %v5312_v60  ;;  %v5104_v27 = vmax.f32 %v5062_v8, 0.0  ;;  %v13488_v28 = vpop.f32.mrb[10].mxu1  ;;  %v16776_v60 = vpop.permute.xlu1 %5247 }
 0x48d   : > { %v5315_v42 = vmul.f32 %v16672_v3, %v5105_v14  ;;  %v5065_v63 = vadd.f32 %v13488_v28, %v16650_v6  ;;  %v4880_v43 = vpop.f32.mrb[11].mxu1  ;;  %18921 = vst [vmem:[#allocation31_spill] sm:$0xff] %v16776_v60  ;;  %v16779_v14 = vpop.permute.xlu0 %5243 }
 0x48e   : > { %v5314_v36 = vmul.f32 %v16676_v30, %v5104_v27  ;;  %v5064_v54 = vadd.f32 %v16650_v6, %v4880_v43  ;;  %13550 = vmatmul.mubr.msk.f32.gmra.mrb[60].mxu0 %vm5478_vm2, %v5441_v55  ;;  %18922 = vst [vmem:[#allocation32_spill] sm:$0xff] %v16779_v14 }
 0x48f   : > { %5357 = vst [vmem:[#allocation2 + $0x98] sm:$0xff] %v5315_v42  ;;  %v5107_v49 = vmax.f32 %v5065_v63, 0.0  ;;  %13552 = vmatprep.mubr.msk.f32.mxu0 %vm5478_vm2, %v5442_v53  ;;  %v5443_v21 = vld [vmem:[#allocation2 + $0x6e] sm:$0xff]  ;;  %v5444_v10 = vld [vmem:[#allocation2 + $0x76] sm:$0xff] }
 0x490   : > { %5356 = vst [vmem:[#allocation2 + $0x90] sm:$0xff] %v5314_v36  ;;  %v5106_v29 = vmax.f32 %v5064_v54, 0.0  ;;  %v13491_v2 = vpop.f32.mrb[12].mxu1 }
 0x491   : > { %v5317_v15 = vmul.f32 %v16697_v40, %v5107_v49  ;;  %v5067_v61 = vadd.f32 %v13491_v2, %v16650_v6  ;;  %v4890_v45 = vpop.f32.mrb[13].mxu1 }
 0x492   : > { %v5316_v62 = vmul.f32 %v16701_v47, %v5106_v29  ;;  %v5066_v12 = vadd.f32 %v16650_v6, %v4890_v45  ;;  %13553 = vmatmul.mubr.msk.f32.gmra.mrb[62].mxu0 %vm5478_vm2, %v5443_v21  ;;  %v16797_v45 = vpop.permute.xlu1 %5255 }
 0x493   : > { %5359 = vst [vmem:[#allocation2 + $0xa8] sm:$0xff] %v5317_v15  ;;  %v5109_v16 = vmax.f32 %v5067_v61, 0.0  ;;  %13555 = vmatprep.mubr.msk.f32.mxu0 %vm5478_vm2, %v5444_v10  ;;  %v5445_v44 = vld [vmem:[#allocation2 + $0x7e] sm:$0xff]  ;;  %v5446_v58 = vld [vmem:[#allocation2 + $0x86] sm:$0xff]  ;;  %18923 = vst [vmem:[#allocation33_spill] sm:$0xff] %v16797_v45  ;;  %v16804_v10 = vpop.permute.xlu0 %5251 }
 0x494   : > { %5358 = vst [vmem:[#allocation2 + $0xa0] sm:$0xff] %v5316_v62  ;;  %v5108_v24 = vmax.f32 %v5066_v12, 0.0  ;;  %v13494_v33 = vpop.f32.mrb[14].mxu1  ;;  %18924 = vst [vmem:[#allocation34_spill] sm:$0xff] %v16804_v10 }
 0x495   : > { %v5319_v31 = vmul.f32 %v16719_v20, %v5109_v16  ;;  %v5069_v38 = vadd.f32 %v13494_v33, %v16650_v6  ;;  %v4900_v41 = vpop.f32.mrb[15].mxu1 }
 0x496   : > { %v16771_v51 = vmul.f32 %v16723_v35, %v5108_v24  ;;  %v5068_v50 = vadd.f32 %v16650_v6, %v4900_v41  ;;  %13556 = vmatmul.mubr.msk.f32.gmra.mrb[64].mxu0 %vm5478_vm2, %v5445_v44 }
 0x497   : > { %5361 = vst [vmem:[#allocation2 + $0xb8] sm:$0xff] %v5319_v31  ;;  %v5111_v59 = vmax.f32 %v5069_v38, 0.0  ;;  %13558 = vmatprep.mubr.msk.f32.mxu0 %vm5478_vm2, %v5446_v58  ;;  %v5447_v63 = vld [vmem:[#allocation2 + $0x8e] sm:$0xff]  ;;  %v5448_v36 = vld [vmem:[#allocation2 + $0x96] sm:$0xff] }
 0x498   : > { %5360 = vst [vmem:[#allocation2 + $0xb0] sm:$0xff] %v16771_v51  ;;  %v5110_v8 = vmax.f32 %v5068_v50, 0.0  ;;  %v13497_v9 = vpop.f32.mrb[16].mxu1 }
 0x499   : > { %v16782_v27 = vmul.f32 %v16734_v22, %v5111_v59  ;;  %v5071_v28 = vadd.f32 %v13497_v9, %v16650_v6  ;;  %v4910_v42 = vpop.f32.mrb[17].mxu1  ;;  %v16820_v9 = vpop.permute.xlu1 %5263 }
 0x49a   : > { %v16786_v43 = vmul.f32 %v16739_v39, %v5110_v8  ;;  %v5070_v55 = vadd.f32 %v16650_v6, %v4910_v42  ;;  %13559 = vmatmul.mubr.msk.f32.gmra.mrb[66].mxu0 %vm5478_vm2, %v5447_v63  ;;  %18925 = vst [vmem:[#allocation35_spill] sm:$0xff] %v16820_v9  ;;  %v16823_v63 = vpop.permute.xlu0 %5259 }
 0x49b   : > { %5363 = vst [vmem:[#allocation2 + $0xc8] sm:$0xff] %v16782_v27  ;;  %v5113_v54 = vmax.f32 %v5071_v28, 0.0  ;;  %13561 = vmatprep.mubr.msk.f32.mxu0 %vm5478_vm2, %v5448_v36  ;;  %v5449_v61 = vld [vmem:[#allocation2 + $0x9e] sm:$0xff]  ;;  %v5450_v12 = vld [vmem:[#allocation2 + $0xa6] sm:$0xff]  ;;  %18926 = vst [vmem:[#allocation36_spill] sm:$0xff] %v16823_v63 }
 0x49c   : > { %5362 = vst [vmem:[#allocation2 + $0xc0] sm:$0xff] %v16786_v43  ;;  %v5112_v53 = vmax.f32 %v5070_v55, 0.0  ;;  %v13500_v49 = vpop.f32.mrb[18].mxu1  ;;  %v17087_v39 = vld [vmem:[#allocation2 + $0x9f] sm:$0xff]  ;;  %v17091_v22 = vld [vmem:[#allocation2 + $0xa7] sm:$0xff] }
 0x49d   : > { %v16794_v29 = vmul.f32 %v16748_v26, %v5113_v54  ;;  %v5073_v2 = vadd.f32 %v13500_v49, %v16650_v6  ;;  %v4920_v15 = vpop.f32.mrb[19].mxu1  ;;  %v17083_v26 = vld [vmem:[#allocation2 + $0x97] sm:$0xff] }
 0x49e   : > { %v16800_v21 = vmul.f32 %v16750_v37, %v5112_v53  ;;  %v5072_v62 = vadd.f32 %v16650_v6, %v4920_v15  ;;  %13562 = vmatmul.mubr.msk.f32.gmra.mrb[68].mxu0 %vm5478_vm2, %v5449_v61  ;;  %v17079_v37 = vld [vmem:[#allocation2 + $0x8f] sm:$0xff] }
 0x49f   : > { %5365 = vst [vmem:[#allocation2 + $0xd8] sm:$0xff] %v16794_v29  ;;  %v5115_v16 = vmax.f32 %v5073_v2, 0.0  ;;  %13564 = vmatprep.mubr.msk.f32.mxu0 %vm5478_vm2, %v5450_v12  ;;  %v5451_v44 = vld [vmem:[#allocation2 + $0xae] sm:$0xff]  ;;  %v5452_v59 = vld [vmem:[#allocation2 + $0xb6] sm:$0xff] }
 0x4a0   : > { %5364 = vst [vmem:[#allocation2 + $0xd0] sm:$0xff] %v16800_v21  ;;  %v5114_v24 = vmax.f32 %v5072_v62, 0.0  ;;  %v13503_v33 = vpop.f32.mrb[20].mxu1  ;;  %v17095_v35 = vld [vmem:[#allocation2 + $0xaf] sm:$0xff]  ;;  %v17099_v20 = vld [vmem:[#allocation2 + $0xb7] sm:$0xff] }
 0x4a1   : > { %v16810_v31 = vmul.f32 %v16760_v57, %v5115_v16  ;;  %v5075_v38 = vadd.f32 %v13503_v33, %v16650_v6  ;;  %v4930_v41 = vpop.f32.mrb[21].mxu1  ;;  %v17075_v57 = vld [vmem:[#allocation2 + $0x87] sm:$0xff] }
 0x4a2   : > { %v16814_v50 = vmul.f32 %v16765_v18, %v5114_v24  ;;  %v5074_v58 = vadd.f32 %v16650_v6, %v4930_v41  ;;  %13565 = vmatmul.mubr.msk.f32.gmra.mrb[70].mxu0 %vm5478_vm2, %v5451_v44  ;;  %v16841_v41 = vpop.permute.xlu1 %5271  ;;  %v17071_v18 = vld [vmem:[#allocation2 + $0x7f] sm:$0xff] }
 0x4a3   : > { %5367 = vst [vmem:[#allocation2 + $0xe8] sm:$0xff] %v16810_v31  ;;  %v5117_v8 = vmax.f32 %v5075_v38, 0.0  ;;  %13567 = vmatprep.mubr.msk.f32.mxu0 %vm5478_vm2, %v5452_v59  ;;  %v5453_v53 = vld [vmem:[#allocation2 + $0xbe] sm:$0xff]  ;;  %v5454_v15 = vld [vmem:[#allocation2 + $0xc6] sm:$0xff]  ;;  %18927 = vst [vmem:[#allocation37_spill] sm:$0xff] %v16841_v41 }
 0x4a4   : > { %5366 = vst [vmem:[#allocation2 + $0xe0] sm:$0xff] %v16814_v50  ;;  %v5116_v28 = vmax.f32 %v5074_v58, 0.0  ;;  %v13506_v42 = vpop.f32.mrb[22].mxu1  ;;  %v17103_v47 = vld [vmem:[#allocation2 + $0xbf] sm:$0xff]  ;;  %v17107_v40 = vld [vmem:[#allocation2 + $0xc7] sm:$0xff] }
 0x4a5   : > { %v16826_v55 = vmul.f32 %v16776_v60, %v5117_v8  ;;  %v5077_v36 = vadd.f32 %v13506_v42, %v16650_v6  ;;  %v4940_v54 = vpop.f32.mrb[23].mxu1  ;;  %v16848_v8 = vpop.permute.xlu0 %5267  ;;  %v17067_v60 = vld [vmem:[#allocation2 + $0x77] sm:$0xff] }
 0x4a6   : > { %v16830_v49 = vmul.f32 %v16779_v14, %v5116_v28  ;;  %v5076_v2 = vadd.f32 %v16650_v6, %v4940_v54  ;;  %13568 = vmatmul.mubr.msk.f32.gmra.mrb[72].mxu0 %vm5478_vm2, %v5453_v53  ;;  %18928 = vst [vmem:[#allocation38_spill] sm:$0xff] %v16848_v8  ;;  %v17063_v14 = vld [vmem:[#allocation2 + $0x6f] sm:$0xff] }
 0x4a7   : > { %5369 = vst [vmem:[#allocation2 + $0xf8] sm:$0xff] %v16826_v55  ;;  %v5119_v61 = vmax.f32 %v5077_v36, 0.0  ;;  %13570 = vmatprep.mubr.msk.f32.mxu0 %vm5478_vm2, %v5454_v15  ;;  %v5455_v38 = vld [vmem:[#allocation2 + $0xce] sm:$0xff]  ;;  %v5456_v59 = vld [vmem:[#allocation2 + $0xd6] sm:$0xff] }
 0x4a8   : > { %5368 = vst [vmem:[#allocation2 + $0xf0] sm:$0xff] %v16830_v49  ;;  %v5118_v62 = vmax.f32 %v5076_v2, 0.0  ;;  %v13509_v12 = vpop.f32.mrb[24].mxu1  ;;  %v17111_v30 = vld [vmem:[#allocation2 + $0xcf] sm:$0xff]  ;;  %v17115_v3 = vld [vmem:[#allocation2 + $0xd7] sm:$0xff] }
 0x4a9   : > { %v16838_v16 = vmul.f32 %v16797_v45, %v5119_v61  ;;  %v5079_v24 = vadd.f32 %v13509_v12, %v16650_v6  ;;  %v4950_v33 = vpop.f32.mrb[25].mxu1  ;;  %v17059_v45 = vld [vmem:[#allocation2 + $0x67] sm:$0xff] }
 0x4aa   : > { %v16844_v44 = vmul.f32 %v16804_v10, %v5118_v62  ;;  %v5078_v58 = vadd.f32 %v16650_v6, %v4950_v33  ;;  %13571 = vmatmul.mubr.msk.f32.gmra.mrb[74].mxu0 %vm5478_vm2, %v5455_v38  ;;  %v16864_v33 = vpop.permute.xlu1 %5279 }
 0x4ab   : > { %5371 = vst [vmem:[#allocation2 + $0x108] sm:$0xff] %v16838_v16  ;;  %v5121_v28 = vmax.f32 %v5079_v24, 0.0  ;;  %13573 = vmatprep.mubr.msk.f32.mxu0 %vm5478_vm2, %v5456_v59  ;;  %v5457_v15 = vld [vmem:[#allocation2 + $0xde] sm:$0xff]  ;;  %v5458_v12 = vld [vmem:[#allocation2 + $0xe6] sm:$0xff]  ;;  %18929 = vst [vmem:[#allocation39_spill] sm:$0xff] %v16864_v33  ;;  %v16867_v59 = vpop.permute.xlu0 %5275 }
 0x4ac   : > { %5370 = vst [vmem:[#allocation2 + $0x100] sm:$0xff] %v16844_v44  ;;  %v5120_v42 = vmax.f32 %v5078_v58, 0.0  ;;  %v13512_v36 = vpop.f32.mrb[26].mxu1  ;;  %18930 = vst [vmem:[#allocation40_spill] sm:$0xff] %v16867_v59  ;;  %v17119_v52 = vld [vmem:[#allocation2 + $0xdf] sm:$0xff]  ;;  %v17123_v46 = vld [vmem:[#allocation2 + $0xe7] sm:$0xff] }
 0x4ad   : > { %v16854_v54 = vmul.f32 %v16820_v9, %v5121_v28  ;;  %v5081_v53 = vadd.f32 %v13512_v36, %v16650_v6  ;;  %v4960_v2 = vpop.f32.mrb[27].mxu1 }
 0x4ae   : > { %v16858_v61 = vmul.f32 %v16823_v63, %v5120_v42  ;;  %v5080_v62 = vadd.f32 %v16650_v6, %v4960_v2  ;;  %13574 = vmatmul.mubr.msk.f32.gmra.mrb[76].mxu0 %vm5478_vm2, %v5457_v15 }
 0x4af   : > { %5373 = vst [vmem:[#allocation2 + $0x118] sm:$0xff] %v16854_v54  ;;  %v5123_v24 = vmax.f32 %v5081_v53, 0.0  ;;  %13576 = vmatprep.mubr.msk.f32.mxu0 %vm5478_vm2, %v5458_v12  ;;  %v5459_v2 = vld [vmem:[#allocation2 + $0xee] sm:$0xff]  ;;  %v5460_v12 = vld [vmem:[#allocation2 + $0xf6] sm:$0xff]  ;;  %v16892_v9 = vpop.permute.xlu0 %5283 }
 0x4b0   : > { %5372 = vst [vmem:[#allocation2 + $0x110] sm:$0xff] %v16858_v61  ;;  %v5122_v38 = vmax.f32 %v5080_v62, 0.0  ;;  %v13515_v58 = vpop.f32.mrb[28].mxu1  ;;  %18933 = vst [vmem:[#allocation43_spill] sm:$0xff] %v16892_v9  ;;  %v17127_v4 = vld [vmem:[#allocation2 + $0xef] sm:$0xff]  ;;  %v17131_v34 = vld [vmem:[#allocation2 + $0xf7] sm:$0xff] }
 0x4b1   : > { %v16870_v28 = vmul.f32 %v16841_v41, %v5123_v24  ;;  %v5083_v42 = vadd.f32 %v13515_v58, %v16650_v6  ;;  %v4970_v36 = vpop.f32.mrb[29].mxu1 }
 0x4b2   : > { %v16874_v15 = vmul.f32 %v16848_v8, %v5122_v38  ;;  %v5082_v53 = vadd.f32 %v16650_v6, %v4970_v36  ;;  %13577 = vmatmul.mubr.msk.f32.gmra.mrb[78].mxu0 %vm5478_vm2, %v5459_v2  ;;  %v16885_v36 = vpop.permute.xlu1 %5287 }
 0x4b3   : > { %5375 = vst [vmem:[#allocation2 + $0x128] sm:$0xff] %v16870_v28  ;;  %v5125_v62 = vmax.f32 %v5083_v42, 0.0  ;;  %13579 = vmatprep.mubr.msk.f32.mxu0 %vm5478_vm2, %v5460_v12  ;;  %v5461_v63 = vld [vmem:[#allocation2 + $0xfe] sm:$0xff]  ;;  %18932 = vst [vmem:[#allocation42_spill] sm:$0xff] %v16885_v36  ;;  %v5462_v12 = vld [vmem:[#allocation2 + $0x106] sm:$0xff] }
 0x4b4   : > { %5374 = vst [vmem:[#allocation2 + $0x120] sm:$0xff] %v16874_v15  ;;  %v5124_v24 = vmax.f32 %v5082_v53, 0.0  ;;  %v13518_v41 = vpop.f32.mrb[30].mxu1  ;;  %v17135_v32 = vld [vmem:[#allocation2 + $0xff] sm:$0xff]  ;;  %v17139_v0 = vld [vmem:[#allocation2 + $0x107] sm:$0xff] }
 0x4b5   : > { %v16882_v58 = vmul.f32 %v16864_v33, %v5125_v62  ;;  %v5085_v38 = vadd.f32 %v13518_v41, %v16650_v6  ;;  %v4980_v8 = vpop.f32.mrb[31].mxu1 }
 0x4b6   : > { %v16888_v2 = vmul.f32 %v16867_v59, %v5124_v24  ;;  %v5084_v42 = vadd.f32 %v16650_v6, %v4980_v8  ;;  %13580 = vmatmul.mubr.msk.f32.gmra.mrb[80].mxu0 %vm5478_vm2, %v5461_v63 }
 0x4b7   : > { %18931 = vst [vmem:[#allocation41_spill] sm:$0xff] %v16882_v58  ;;  %5377 = vst [vmem:[#allocation2 + $0x138] sm:$0xff] %v16882_v58  ;;  %v5127_v53 = vmax.f32 %v5085_v38, 0.0  ;;  %13582 = vmatprep.mubr.msk.f32.mxu0 %vm5478_vm2, %v5462_v12  ;;  %v5463_v59 = vld [vmem:[#allocation2 + $0x10e] sm:$0xff]  ;;  %v5464_v38 = vld [vmem:[#allocation2 + $0x116] sm:$0xff] }
 0x4b8   : > { %5376 = vst [vmem:[#allocation2 + $0x130] sm:$0xff] %v16888_v2  ;;  %v5126_v41 = vmax.f32 %v5084_v42, 0.0  ;;  %v13521_v62 = vpop.f32.mrb[32].mxu1  ;;  %v16908_v42 = vpop.permute.xlu1 %5295  ;;  %v17143_v25 = vld [vmem:[#allocation2 + $0x10f] sm:$0xff]  ;;  %v17147_v23 = vld [vmem:[#allocation2 + $0x117] sm:$0xff] }
 0x4b9   : > { %v16898_v33 = vmul.f32 %v16885_v36, %v5127_v53  ;;  %v5087_v24 = vadd.f32 %v13521_v62, %v16650_v6  ;;  %v4990_v8 = vpop.f32.mrb[33].mxu1  ;;  %18936 = vst [vmem:[#allocation46_spill] sm:$0xff] %v16908_v42  ;;  %v16911_v62 = vpop.permute.xlu0 %5291  ;;  %v17051_v36 = vld [vmem:[#allocation2 + $0x57] sm:$0xff] }
 0x4ba   : > { %v16902_v63 = vmul.f32 %v16892_v9, %v5126_v41  ;;  %v5086_v10 = vadd.f32 %v16650_v6, %v4990_v8  ;;  %13583 = vmatmul.mubr.msk.f32.gmra.mrb[82].mxu0 %vm5478_vm2, %v5463_v59  ;;  %18937 = vst [vmem:[#allocation47_spill] sm:$0xff] %v16911_v62 }
 0x4bb   : > { %18934 = vst [vmem:[#allocation44_spill] sm:$0xff] %v16898_v33  ;;  %5379 = vst [vmem:[#allocation2 + $0x148] sm:$0xff] %v16898_v33  ;;  %v5129_v12 = vmax.f32 %v5087_v24, 0.0  ;;  %13585 = vmatprep.mubr.msk.f32.mxu0 %vm5478_vm2, %v5464_v38  ;;  %v5465_v9 = vld [vmem:[#allocation2 + $0x11e] sm:$0xff]  ;;  %v5466_v59 = vld [vmem:[#allocation2 + $0x126] sm:$0xff] }
 0x4bc   : > { %18935 = vst [vmem:[#allocation45_spill] sm:$0xff] %v16902_v63  ;;  %5378 = vst [vmem:[#allocation2 + $0x140] sm:$0xff] %v16902_v63  ;;  %v5128_v53 = vmax.f32 %v5086_v10, 0.0  ;;  %v17151_v19 = vld [vmem:[#allocation2 + $0x11f] sm:$0xff]  ;;  %v6317_v17 = vld [vmem:[#allocation2 + $0x127] sm:$0xff] }
 0x4bd   : > { %v16914_v41 = vmul.f32 %v16908_v42, %v5129_v12  ;;  %v17034_v42 = vld [vmem:[#allocation2 + $0x37] sm:$0xff]  ;;  %v7309_v33 = vld [vmem:[%s18691_s1 + $0x1c8] sm:$0xff] }
 0x4be   : > { %v16917_v6 = vmul.f32 %v16911_v62, %v5128_v53  ;;  %13586 = vmatmul.mubr.msk.f32.gmra.mrb[84].mxu0 %vm5478_vm2, %v5465_v9  ;;  %v5382_v9 = vld [vmem:[#allocation2 + $0x5] sm:$0xff]  ;;  %v6325_v53 = vld [vmem:[%s18691_s1 + $0x158] sm:$0xff]  ;;  %v7310_v63 = vld [vmem:[%s18691_s1 + $0x1d0] sm:$0xff] }
 0x4bf   : > { %18938 = vst [vmem:[#allocation48_spill] sm:$0xff] %v16914_v41  ;;  %5381 = vst [vmem:[#allocation2 + $0x158] sm:$0xff] %v16914_v41  ;;  %13588 = vmatprep.mubr.msk.f32.mxu0 %vm5478_vm2, %v5466_v59  ;;  %v5467_v24 = vld [vmem:[#allocation2 + $0x12e] sm:$0xff]  ;;  %v5468_v10 = vld [vmem:[#allocation2 + $0x136] sm:$0xff]  ;;  %v14316_v58 = vpack.c.bf16 %v7310_v63, %v7309_v33 }
 0x4c0   : > { %18939 = vst [vmem:[#allocation49_spill] sm:$0xff] %v16917_v6  ;;  %5380 = vst [vmem:[#allocation2 + $0x150] sm:$0xff] %v16917_v6  ;;  %v6326_v59 = vld [vmem:[%s18691_s1 + $0x160] sm:$0xff]  ;;  %v5384_v62 = vld [vmem:[#allocation2 + $0x15] sm:$0xff] }
 0x4c1   : > { %v6318_v56 = vld [vmem:[#allocation2 + $0x12f] sm:$0xff]  ;;  %v6319_v13 = vld [vmem:[#allocation2 + $0x137] sm:$0xff]  ;;  %v7308_v41 = vld [vmem:[%s18691_s1 + $0x1c0] sm:$0xff] }
 0x4c2   : > { %13589 = vmatmul.mubr.msk.f32.gmra.mrb[86].mxu0 %vm5478_vm2, %v5467_v24  ;;  %v14288_v24 = vpack.c.bf16 %v6326_v59, %v6325_v53  ;;  %v5386_v53 = vld [vmem:[#allocation2 + $0x25] sm:$0xff]  ;;  %v6814_v59 = vld [vmem:[%s18691_s1 + $0x178] sm:$0xff]  ;;  %v14312_v6 = vpack.c.bf16 %v7308_v41, %v7307_v11 }
 0x4c3   : > { %13591 = vmatprep.mubr.msk.f32.mxu0 %vm5478_vm2, %v5468_v10  ;;  %v5469_v8 = vld [vmem:[#allocation2 + $0x13e] sm:$0xff]  ;;  %v5470_v38 = vld [vmem:[#allocation2 + $0x146] sm:$0xff] }
 0x4c4   : > { %v5383_v10 = vld [vmem:[#allocation2 + $0xd] sm:$0xff]  ;;  %v6320_v1 = vld [vmem:[#allocation2 + $0x13f] sm:$0xff] }
 0x4c5   : > { %v6321_v7 = vld [vmem:[#allocation2 + $0x147] sm:$0xff]  ;;  %v7796_v11 = vld [vmem:[%s18691_s1 + $0x1d8] sm:$0xff] }
 0x4c6   : > { %13592 = vmatmul.mubr.msk.f32.gmra.mrb[88].mxu0 %vm5478_vm2, %v5469_v8  ;;  %v6327_v8 = vld [vmem:[%s18691_s1 + $0x168] sm:$0xff]  ;;  %v7797_v41 = vld [vmem:[%s18691_s1 + $0x1e0] sm:$0xff]  ;;  %v7284_v33 = vld [vmem:[#allocation2 + $0xb8] sm:$0xff] }
 0x4c7   : > { %13594 = vmatprep.mubr.msk.f32.mxu0 %vm5478_vm2, %v5470_v38  ;;  %v5471_v12 = vld [vmem:[#allocation2 + $0x14e] sm:$0xff] }
 0x4c8   : > { %v6328_v38 = vld [vmem:[%s18691_s1 + $0x170] sm:$0xff] }
 0x4c9   : > { %v6322_v5 = vld [vmem:[#allocation2 + $0x14f] sm:$0xff] }
 0x4ca   : > { %13595 = vmatmul.mubr.msk.f32.gmra.mrb[90].mxu0 %vm5478_vm2, %v5471_v12  ;;  %v14292_v12 = vpack.c.bf16 %v6328_v38, %v6327_v8  ;;  %v5388_v8 = vld [vmem:[#allocation2 + $0x35] sm:$0xff]  ;;  %v5390_v38 = vld [vmem:[#allocation2 + $0x45] sm:$0xff] }
 0x4cb   : > { %13609 = vmatprep.mubr.msk.f32.mxu0 %vm5478_vm2, %v5382_v9  ;;  %v5385_v9 = vld [vmem:[#allocation2 + $0x1d] sm:$0xff] }
 0x4ce   : > { %13610 = vmatmul.mubr.msk.f32.vlgmr.msra.gmra.mrb[50].mxu0 %vm5478_vm2, %v5383_v10  ;;  %v6815_v10 = vld [vmem:[%s18691_s1 + $0x180] sm:$0xff] }
 0x4cf   : > { %13612 = vmatprep.mubr.msk.f32.mxu0 %vm5478_vm2, %v5384_v62  ;;  %14287 = vmatpush3.bf16.msra.mxu0 %v16721_v48  ;;  %v16952_v62 = vpack.c.bf16 %v6815_v10, %v6814_v59  ;;  %v5387_v48 = vld [vmem:[#allocation2 + $0x2d] sm:$0xff]  ;;  %v5393_v59 = vld [vmem:[#allocation2 + $0x5d] sm:$0xff]  ;;  %v5394_v10 = vld [vmem:[#allocation2 + $0x65] sm:$0xff] }
 0x4d0   : > { %14289 = vmatprep.subr.bf16.mxu0 %v14288_v24 }
 0x4d2   : > { %13613 = vmatmul.mubr.msk.f32.gmra.mrb[52].mxu0 %vm5478_vm2, %v5385_v9  ;;  %v5391_v9 = vld [vmem:[#allocation2 + $0x4d] sm:$0xff] }
 0x4d3   : > { %13615 = vmatprep.mubr.msk.f32.mxu0 %vm5478_vm2, %v5386_v53  ;;  %14291 = vmatpush3.bf16.msra.mxu0 %v14288_v24  ;;  %v5389_v24 = vld [vmem:[#allocation2 + $0x3d] sm:$0xff]  ;;  %v5392_v53 = vld [vmem:[#allocation2 + $0x55] sm:$0xff] }
 0x4d4   : > { %14293 = vmatprep.subr.bf16.mxu0 %v14292_v12 }
 0x4d6   : > { %13616 = vmatmul.mubr.msk.f32.gmra.mrb[54].mxu0 %vm5478_vm2, %v5387_v48  ;;  %v5396_v48 = vld [vmem:[#allocation2 + $0x75] sm:$0xff] }
 0x4d7   : > { %13618 = vmatprep.mubr.msk.f32.mxu0 %vm5478_vm2, %v5388_v8  ;;  %14295 = vmatpush3.bf16.msra.mxu0 %v14292_v12  ;;  %v5395_v12 = vld [vmem:[#allocation2 + $0x6d] sm:$0xff]  ;;  %v5397_v8 = vld [vmem:[#allocation2 + $0x7d] sm:$0xff] }
 0x4d8   : > { %14297 = vmatprep.subr.bf16.mxu0 %v16952_v62 }
 0x4da   : > { %13619 = vmatmul.mubr.msk.f32.gmra.mrb[56].mxu0 %vm5478_vm2, %v5389_v24  ;;  %v5398_v24 = vld [vmem:[#allocation2 + $0x85] sm:$0xff] }
 0x4db   : > { %13621 = vmatprep.mubr.msk.f32.mxu0 %vm5478_vm2, %v5390_v38  ;;  %v5399_v38 = vld [vmem:[#allocation2 + $0x8d] sm:$0xff] }
 0x4de   : > { %13622 = vmatmul.mubr.msk.f32.gmra.mrb[58].mxu0 %vm5478_vm2, %v5391_v9  ;;  %v5400_v9 = vld [vmem:[#allocation2 + $0x95] sm:$0xff] }
 0x4df   : > { %13624 = vmatprep.mubr.msk.f32.mxu0 %vm5478_vm2, %v5392_v53  ;;  %v5401_v53 = vld [vmem:[#allocation2 + $0x9d] sm:$0xff] }
 0x4e2   : > { %13625 = vmatmul.mubr.msk.f32.gmra.mrb[60].mxu0 %vm5478_vm2, %v5393_v59  ;;  %v5402_v59 = vld [vmem:[#allocation2 + $0xa5] sm:$0xff] }
 0x4e3   : > { %13627 = vmatprep.mubr.msk.f32.mxu0 %vm5478_vm2, %v5394_v10  ;;  %v5403_v10 = vld [vmem:[#allocation2 + $0xad] sm:$0xff] }
 0x4e6   : > { %13628 = vmatmul.mubr.msk.f32.gmra.mrb[62].mxu0 %vm5478_vm2, %v5395_v12  ;;  %v5404_v12 = vld [vmem:[#allocation2 + $0xb5] sm:$0xff] }
 0x4e7   : > { %13630 = vmatprep.mubr.msk.f32.mxu0 %vm5478_vm2, %v5396_v48  ;;  %v5405_v48 = vld [vmem:[#allocation2 + $0xbd] sm:$0xff] }
 0x4ea   : > { %13631 = vmatmul.mubr.msk.f32.gmra.mrb[64].mxu0 %vm5478_vm2, %v5397_v8  ;;  %v5406_v8 = vld [vmem:[#allocation2 + $0xc5] sm:$0xff] }
 0x4eb   : > { %13633 = vmatprep.mubr.msk.f32.mxu0 %vm5478_vm2, %v5398_v24  ;;  %v5407_v24 = vld [vmem:[#allocation2 + $0xcd] sm:$0xff] }
 0x4ee   : > { %13634 = vmatmul.mubr.msk.f32.gmra.mrb[66].mxu0 %vm5478_vm2, %v5399_v38  ;;  %v5408_v38 = vld [vmem:[#allocation2 + $0xd5] sm:$0xff] }
 0x4ef   : > { %13636 = vmatprep.mubr.msk.f32.mxu0 %vm5478_vm2, %v5400_v9  ;;  %v5409_v9 = vld [vmem:[#allocation2 + $0xdd] sm:$0xff] }
 0x4f2   : > { %13637 = vmatmul.mubr.msk.f32.gmra.mrb[68].mxu0 %vm5478_vm2, %v5401_v53  ;;  %v5410_v53 = vld [vmem:[#allocation2 + $0xe5] sm:$0xff] }
 0x4f3   : > { %13639 = vmatprep.mubr.msk.f32.mxu0 %vm5478_vm2, %v5402_v59  ;;  %v5411_v59 = vld [vmem:[#allocation2 + $0xed] sm:$0xff] }
 0x4f6   : > { %13640 = vmatmul.mubr.msk.f32.gmra.mrb[70].mxu0 %vm5478_vm2, %v5403_v10  ;;  %v5412_v10 = vld [vmem:[#allocation2 + $0xf5] sm:$0xff] }
 0x4f7   : > { %13642 = vmatprep.mubr.msk.f32.mxu0 %vm5478_vm2, %v5404_v12  ;;  %v5413_v12 = vld [vmem:[#allocation2 + $0xfd] sm:$0xff] }
 0x4fa   : > { %13643 = vmatmul.mubr.msk.f32.gmra.mrb[72].mxu0 %vm5478_vm2, %v5405_v48  ;;  %v5414_v48 = vld [vmem:[#allocation2 + $0x105] sm:$0xff] }
 0x4fb   : > { %13645 = vmatprep.mubr.msk.f32.mxu0 %vm5478_vm2, %v5406_v8  ;;  %v5415_v8 = vld [vmem:[#allocation2 + $0x10d] sm:$0xff] }
 0x4fe   : > { %13646 = vmatmul.mubr.msk.f32.gmra.mrb[74].mxu0 %vm5478_vm2, %v5407_v24  ;;  %v5416_v24 = vld [vmem:[#allocation2 + $0x115] sm:$0xff] }
 0x4ff   : > { %13648 = vmatprep.mubr.msk.f32.mxu0 %vm5478_vm2, %v5408_v38  ;;  %v5417_v38 = vld [vmem:[#allocation2 + $0x11d] sm:$0xff] }
 0x502   : > { %13649 = vmatmul.mubr.msk.f32.gmra.mrb[76].mxu0 %vm5478_vm2, %v5409_v9  ;;  %v5418_v9 = vld [vmem:[#allocation2 + $0x125] sm:$0xff] }
 0x503   : > { %13651 = vmatprep.mubr.msk.f32.mxu0 %vm5478_vm2, %v5410_v53  ;;  %v5419_v53 = vld [vmem:[#allocation2 + $0x12d] sm:$0xff] }
 0x506   : > { %13652 = vmatmul.mubr.msk.f32.gmra.mrb[78].mxu0 %vm5478_vm2, %v5411_v59  ;;  %v5420_v59 = vld [vmem:[#allocation2 + $0x135] sm:$0xff] }
 0x507   : > { %13654 = vmatprep.mubr.msk.f32.mxu0 %vm5478_vm2, %v5412_v10  ;;  %v5421_v10 = vld [vmem:[#allocation2 + $0x13d] sm:$0xff] }
 0x50a   : > { %13655 = vmatmul.mubr.msk.f32.gmra.mrb[80].mxu0 %vm5478_vm2, %v5413_v12  ;;  %v5422_v12 = vld [vmem:[#allocation2 + $0x145] sm:$0xff] }
 0x50b   : > { %13657 = vmatprep.mubr.msk.f32.mxu0 %vm5478_vm2, %v5414_v48  ;;  %v6281_v48 = vld [vmem:[#allocation2 + $0x7] sm:$0xff] }
 0x50e   : > { %13658 = vmatmul.mubr.msk.f32.gmra.mrb[82].mxu0 %vm5478_vm2, %v5415_v8  ;;  %v5423_v8 = vld [vmem:[#allocation2 + $0x14d] sm:$0xff] }
 0x50f   : > { %13660 = vmatprep.mubr.msk.f32.mxu0 %vm5478_vm2, %v5416_v24  ;;  %v6816_v24 = vld [vmem:[%s18691_s1 + $0x188] sm:$0xff] }
 0x512   : > { %13661 = vmatmul.mubr.msk.f32.gmra.mrb[84].mxu0 %vm5478_vm2, %v5417_v38  ;;  %v6817_v38 = vld [vmem:[%s18691_s1 + $0x190] sm:$0xff] }
 0x513   : > { %13663 = vmatprep.mubr.msk.f32.mxu0 %vm5478_vm2, %v5418_v9  ;;  %v14300_v9 = vpack.c.bf16 %v6817_v38, %v6816_v24  ;;  %v17018_v24 = vld [vmem:[#allocation2 + $0x27] sm:$0xff] }
 0x514   : > { %v7305_v38 = vld [vmem:[%s18691_s1 + $0x1a8] sm:$0xff] }
 0x516   : > { %13664 = vmatmul.mubr.msk.f32.gmra.mrb[86].mxu0 %vm5478_vm2, %v5419_v53  ;;  %v16999_v53 = vld [vmem:[#allocation2 + $0xf] sm:$0xff] }
 0x517   : > { %13666 = vmatprep.mubr.msk.f32.mxu0 %vm5478_vm2, %v5420_v59  ;;  %v6818_v59 = vld [vmem:[%s18691_s1 + $0x198] sm:$0xff] }
 0x51a   : > { %13667 = vmatmul.mubr.msk.f32.gmra.mrb[88].mxu0 %vm5478_vm2, %v5421_v10  ;;  %v6819_v10 = vld [vmem:[%s18691_s1 + $0x1a0] sm:$0xff] }
 0x51b   : > { %13669 = vmatprep.mubr.msk.f32.mxu0 %vm5478_vm2, %v5422_v12  ;;  %v17009_v12 = vld [vmem:[#allocation2 + $0x17] sm:$0xff] }
 0x51e   : > { %13670 = vmatmul.mubr.msk.f32.gmra.mrb[90].mxu0 %vm5478_vm2, %v5423_v8  ;;  %v17014_v8 = vld [vmem:[#allocation2 + $0x1f] sm:$0xff] }
 0x51f   : > { %13684 = vmatprep.mubr.msk.f32.mxu0 %vm5478_vm2, %v6281_v48  ;;  %v14304_v48 = vpack.c.bf16 %v6819_v10, %v6818_v59  ;;  %v17030_v10 = vld [vmem:[#allocation2 + $0x2f] sm:$0xff] }
 0x522   : > { %13685 = vmatmul.mubr.msk.f32.vlgmr.msra.gmra.mrb[50].mxu0 %vm5478_vm2, %v16999_v53 }
 0x523   : > { %13687 = vmatprep.mubr.msk.f32.mxu0 %vm5478_vm2, %v17009_v12  ;;  %14299 = vmatpush3.bf16.msra.mxu0 %v16952_v62  ;;  %v7306_v62 = vld [vmem:[%s18691_s1 + $0x1b0] sm:$0xff] }
 0x524   : > { %14301 = vmatprep.subr.bf16.mxu0 %v14300_v9  ;;  %v17028_v59 = vpack.c.bf16 %v7306_v62, %v7305_v38  ;;  %v17043_v38 = vld [vmem:[#allocation2 + $0x47] sm:$0xff]  ;;  %v17047_v62 = vld [vmem:[#allocation2 + $0x4f] sm:$0xff] }
 0x526   : > { %13688 = vmatmul.mubr.msk.f32.gmra.mrb[52].mxu0 %vm5478_vm2, %v17014_v8 }
 0x527   : > { %13690 = vmatprep.mubr.msk.f32.mxu0 %vm5478_vm2, %v17018_v24  ;;  %14303 = vmatpush3.bf16.msra.mxu0 %v14300_v9  ;;  %v17039_v9 = vld [vmem:[#allocation2 + $0x3f] sm:$0xff] }
 0x528   : > { %14305 = vmatprep.subr.bf16.mxu0 %v14304_v48 }
 0x52a   : > { %13691 = vmatmul.mubr.msk.f32.gmra.mrb[54].mxu0 %vm5478_vm2, %v17030_v10 }
 0x52b   : > { %13693 = vmatprep.mubr.msk.f32.mxu0 %vm5478_vm2, %v17034_v42  ;;  %14307 = vmatpush3.bf16.msra.mxu0 %v14304_v48  ;;  %v17055_v48 = vld [vmem:[#allocation2 + $0x5f] sm:$0xff] }
 0x52c   : > { %14309 = vmatprep.subr.bf16.mxu0 %v17028_v59 }
 0x52e   : > { %13694 = vmatmul.mubr.msk.f32.gmra.mrb[56].mxu0 %vm5478_vm2, %v17039_v9 }
 0x52f   : > { %13696 = vmatprep.mubr.msk.f32.mxu0 %vm5478_vm2, %v17043_v38 }
 0x532   : > { %13697 = vmatmul.mubr.msk.f32.gmra.mrb[58].mxu0 %vm5478_vm2, %v17047_v62 }
 0x533   : > { %13699 = vmatprep.mubr.msk.f32.mxu0 %vm5478_vm2, %v17051_v36 }
 0x536   : > { %13700 = vmatmul.mubr.msk.f32.gmra.mrb[60].mxu0 %vm5478_vm2, %v17055_v48 }
 0x537   : > { %13702 = vmatprep.mubr.msk.f32.mxu0 %vm5478_vm2, %v17059_v45 }
 0x53a   : > { %13703 = vmatmul.mubr.msk.f32.gmra.mrb[62].mxu0 %vm5478_vm2, %v17063_v14 }
 0x53b   : > { %13705 = vmatprep.mubr.msk.f32.mxu0 %vm5478_vm2, %v17067_v60 }
 0x53e   : > { %13706 = vmatmul.mubr.msk.f32.gmra.mrb[64].mxu0 %vm5478_vm2, %v17071_v18 }
 0x53f   : > { %13708 = vmatprep.mubr.msk.f32.mxu0 %vm5478_vm2, %v17075_v57 }
 0x542   : > { %13709 = vmatmul.mubr.msk.f32.gmra.mrb[66].mxu0 %vm5478_vm2, %v17079_v37 }
 0x543   : > { %13711 = vmatprep.mubr.msk.f32.mxu0 %vm5478_vm2, %v17083_v26 }
 0x546   : > { %13712 = vmatmul.mubr.msk.f32.gmra.mrb[68].mxu0 %vm5478_vm2, %v17087_v39 }
 0x547   : > { %13714 = vmatprep.mubr.msk.f32.mxu0 %vm5478_vm2, %v17091_v22 }
 0x54a   : > { %13715 = vmatmul.mubr.msk.f32.gmra.mrb[70].mxu0 %vm5478_vm2, %v17095_v35 }
 0x54b   : > { %13717 = vmatprep.mubr.msk.f32.mxu0 %vm5478_vm2, %v17099_v20 }
 0x54e   : > { %13718 = vmatmul.mubr.msk.f32.gmra.mrb[72].mxu0 %vm5478_vm2, %v17103_v47 }
 0x54f   : > { %13720 = vmatprep.mubr.msk.f32.mxu0 %vm5478_vm2, %v17107_v40 }
 0x552   : > { %13721 = vmatmul.mubr.msk.f32.gmra.mrb[74].mxu0 %vm5478_vm2, %v17111_v30 }
 0x553   : > { %13723 = vmatprep.mubr.msk.f32.mxu0 %vm5478_vm2, %v17115_v3 }
 0x556   : > { %13724 = vmatmul.mubr.msk.f32.gmra.mrb[76].mxu0 %vm5478_vm2, %v17119_v52 }
 0x557   : > { %13726 = vmatprep.mubr.msk.f32.mxu0 %vm5478_vm2, %v17123_v46 }
 0x55a   : > { %13727 = vmatmul.mubr.msk.f32.gmra.mrb[78].mxu0 %vm5478_vm2, %v17127_v4 }
 0x55b   : > { %13729 = vmatprep.mubr.msk.f32.mxu0 %vm5478_vm2, %v17131_v34 }
 0x55e   : > { %13730 = vmatmul.mubr.msk.f32.gmra.mrb[80].mxu0 %vm5478_vm2, %v17135_v32 }
 0x55f   : > { %13732 = vmatprep.mubr.msk.f32.mxu0 %vm5478_vm2, %v17139_v0 }
 0x562   : > { %13733 = vmatmul.mubr.msk.f32.gmra.mrb[82].mxu0 %vm5478_vm2, %v17143_v25 }
 0x563   : > { %13735 = vmatprep.mubr.msk.f32.mxu0 %vm5478_vm2, %v17147_v23 }
 0x566   : > { %13736 = vmatmul.mubr.msk.f32.gmra.mrb[84].mxu0 %vm5478_vm2, %v17151_v19 }
 0x567   : > { %13738 = vmatprep.mubr.msk.f32.mxu0 %vm5478_vm2, %v6317_v17 }
 0x56a   : > { %13739 = vmatmul.mubr.msk.f32.gmra.mrb[86].mxu0 %vm5478_vm2, %v6318_v56 }
 0x56b   : > { %13741 = vmatprep.mubr.msk.f32.mxu0 %vm5478_vm2, %v6319_v13 }
 0x56e   : > { %13742 = vmatmul.mubr.msk.f32.gmra.mrb[88].mxu0 %vm5478_vm2, %v6320_v1 }
 0x56f   : > { %13744 = vmatprep.mubr.msk.f32.mxu0 %vm5478_vm2, %v6321_v7 }
 0x572   : > { %13745 = vmatmul.mubr.msk.f32.gmra.mrb[90].mxu0 %vm5478_vm2, %v6322_v5 }
 0x573   : > { %13759 = vmatprep.mubr.msk.f32.mxu0 %vm5478_vm2, %v16999_v53  ;;  %v14320_v53 = vpack.c.bf16 %v7797_v41, %v7796_v11  ;;  %v17424_v11 = vld [vmem:[#allocation2 + $0x91] sm:$0xff]  ;;  %v17428_v41 = vld [vmem:[#allocation2 + $0x99] sm:$0xff] }
 0x576   : > { %13760 = vmatmul.mubr.msk.f32.vlgmr.msra.gmra.mrb[50].mxu0 %vm5478_vm2, %v17009_v12  ;;  %v17388_v12 = vld [vmem:[#allocation2 + $0x49] sm:$0xff] }
 0x577   : > { %13762 = vmatprep.mubr.msk.f32.mxu0 %vm5478_vm2, %v17014_v8  ;;  %14311 = vmatpush3.bf16.msra.mxu0 %v17028_v59  ;;  %v17392_v8 = vld [vmem:[#allocation2 + $0x51] sm:$0xff]  ;;  %v17400_v59 = vld [vmem:[#allocation2 + $0x61] sm:$0xff] }
 0x578   : > { %14313 = vmatprep.subr.bf16.mxu0 %v14312_v6 }
 0x57a   : > { %13763 = vmatmul.mubr.msk.f32.gmra.mrb[52].mxu0 %vm5478_vm2, %v17018_v24  ;;  %v17396_v24 = vld [vmem:[#allocation2 + $0x59] sm:$0xff] }
 0x57b   : > { %13765 = vmatprep.mubr.msk.f32.mxu0 %vm5478_vm2, %v17030_v10  ;;  %14315 = vmatpush3.bf16.msra.mxu0 %v14312_v6  ;;  %v17383_v6 = vld [vmem:[#allocation2 + $0x41] sm:$0xff]  ;;  %v17404_v10 = vld [vmem:[#allocation2 + $0x69] sm:$0xff] }
 0x57c   : > { %14317 = vmatprep.subr.bf16.mxu0 %v14316_v58 }
 0x57e   : > { %13766 = vmatmul.mubr.msk.f32.gmra.mrb[54].mxu0 %vm5478_vm2, %v17034_v42  ;;  %v17379_v42 = vld [vmem:[#allocation2 + $0x39] sm:$0xff] }
 0x57f   : > { %13768 = vmatprep.mubr.msk.f32.mxu0 %vm5478_vm2, %v17039_v9  ;;  %14319 = vmatpush3.bf16.msra.mxu0 %v14316_v58  ;;  %v17367_v58 = vld [vmem:[#allocation2 + $0x31] sm:$0xff] }
 0x580   : > { %14321 = vmatprep.subr.bf16.mxu0 %v14320_v53  ;;  %v17408_v9 = vld [vmem:[#allocation2 + $0x71] sm:$0xff] }
 0x582   : > { %13769 = vmatmul.mubr.msk.f32.gmra.mrb[56].mxu0 %vm5478_vm2, %v17043_v38  ;;  %v17412_v38 = vld [vmem:[#allocation2 + $0x79] sm:$0xff] }
 0x583   : > { %13771 = vmatprep.mubr.msk.f32.mxu0 %vm5478_vm2, %v17047_v62  ;;  %v17416_v62 = vld [vmem:[#allocation2 + $0x81] sm:$0xff] }
 0x586   : > { %13772 = vmatmul.mubr.msk.f32.gmra.mrb[58].mxu0 %vm5478_vm2, %v17051_v36  ;;  %v8778_v36 = vld [vmem:[%s18691_s1 + $0x238] sm:$0xff] }
 0x587   : > { %13774 = vmatprep.mubr.msk.f32.mxu0 %vm5478_vm2, %v17055_v48  ;;  %v17420_v48 = vld [vmem:[#allocation2 + $0x89] sm:$0xff] }
 0x58a   : > { %13775 = vmatmul.mubr.msk.f32.gmra.mrb[60].mxu0 %vm5478_vm2, %v17059_v45  ;;  %v7282_v45 = vld [vmem:[#allocation2 + $0xa8] sm:$0xff] }
 0x58b   : > { %13777 = vmatprep.mubr.msk.f32.mxu0 %vm5478_vm2, %v17063_v14  ;;  %v7281_v14 = vld [vmem:[#allocation2 + $0xa0] sm:$0xff] }
 0x58e   : > { %13778 = vmatmul.mubr.msk.f32.gmra.mrb[62].mxu0 %vm5478_vm2, %v17067_v60  ;;  %v7280_v60 = vld [vmem:[#allocation2 + $0x98] sm:$0xff] }
 0x58f   : > { %13780 = vmatprep.mubr.msk.f32.mxu0 %vm5478_vm2, %v17071_v18  ;;  %v7279_v18 = vld [vmem:[#allocation2 + $0x90] sm:$0xff] }
 0x592   : > { %13781 = vmatmul.mubr.msk.f32.gmra.mrb[64].mxu0 %vm5478_vm2, %v17075_v57  ;;  %v7278_v57 = vld [vmem:[#allocation2 + $0x88] sm:$0xff] }
 0x593   : > { %13783 = vmatprep.mubr.msk.f32.mxu0 %vm5478_vm2, %v17079_v37  ;;  %v7277_v37 = vld [vmem:[#allocation2 + $0x80] sm:$0xff] }
 0x596   : > { %13784 = vmatmul.mubr.msk.f32.gmra.mrb[66].mxu0 %vm5478_vm2, %v17083_v26  ;;  %v7276_v26 = vld [vmem:[#allocation2 + $0x78] sm:$0xff] }
 0x597   : > { %13786 = vmatprep.mubr.msk.f32.mxu0 %vm5478_vm2, %v17087_v39  ;;  %v7275_v39 = vld [vmem:[#allocation2 + $0x70] sm:$0xff] }
 0x59a   : > { %13787 = vmatmul.mubr.msk.f32.gmra.mrb[68].mxu0 %vm5478_vm2, %v17091_v22  ;;  %v7274_v22 = vld [vmem:[#allocation2 + $0x68] sm:$0xff] }
 0x59b   : > { %13789 = vmatprep.mubr.msk.f32.mxu0 %vm5478_vm2, %v17095_v35  ;;  %v7273_v35 = vld [vmem:[#allocation2 + $0x60] sm:$0xff] }
 0x59e   : > { %13790 = vmatmul.mubr.msk.f32.gmra.mrb[70].mxu0 %vm5478_vm2, %v17099_v20  ;;  %v7272_v20 = vld [vmem:[#allocation2 + $0x58] sm:$0xff] }
 0x59f   : > { %13792 = vmatprep.mubr.msk.f32.mxu0 %vm5478_vm2, %v17103_v47  ;;  %v7271_v47 = vld [vmem:[#allocation2 + $0x50] sm:$0xff] }
 0x5a2   : > { %13793 = vmatmul.mubr.msk.f32.gmra.mrb[72].mxu0 %vm5478_vm2, %v17107_v40  ;;  %v7270_v40 = vld [vmem:[#allocation2 + $0x48] sm:$0xff] }
 0x5a3   : > { %13795 = vmatprep.mubr.msk.f32.mxu0 %vm5478_vm2, %v17111_v30  ;;  %v7269_v30 = vld [vmem:[#allocation2 + $0x40] sm:$0xff] }
 0x5a6   : > { %13796 = vmatmul.mubr.msk.f32.gmra.mrb[74].mxu0 %vm5478_vm2, %v17115_v3  ;;  %v7268_v3 = vld [vmem:[#allocation2 + $0x38] sm:$0xff] }
 0x5a7   : > { %13798 = vmatprep.mubr.msk.f32.mxu0 %vm5478_vm2, %v17119_v52 }
 0x5aa   : > { %13799 = vmatmul.mubr.msk.f32.gmra.mrb[76].mxu0 %vm5478_vm2, %v17123_v46  ;;  %v8288_v46 = vld [vmem:[%s18691_s1 + $0x210] sm:$0xff] }
 0x5ab   : > { %13801 = vmatprep.mubr.msk.f32.mxu0 %vm5478_vm2, %v17127_v4  ;;  %v8287_v4 = vld [vmem:[%s18691_s1 + $0x208] sm:$0xff] }
 0x5ac   : > { %v17280_v52 = vpack.c.bf16 %v8288_v46, %v8287_v4  ;;  %v17484_v4 = vld [vmem:[#allocation2 + $0x109] sm:$0xff]  ;;  %v17488_v46 = vld [vmem:[#allocation2 + $0x111] sm:$0xff] }
 0x5ae   : > { %13802 = vmatmul.mubr.msk.f32.gmra.mrb[78].mxu0 %vm5478_vm2, %v17131_v34  ;;  %v7267_v34 = vld [vmem:[#allocation2 + $0x30] sm:$0xff] }
 0x5af   : > { %13804 = vmatprep.mubr.msk.f32.mxu0 %vm5478_vm2, %v17135_v32  ;;  %v7266_v32 = vld [vmem:[#allocation2 + $0x28] sm:$0xff] }
 0x5b2   : > { %13805 = vmatmul.mubr.msk.f32.gmra.mrb[80].mxu0 %vm5478_vm2, %v17139_v0  ;;  %v6813_v0 = vld [vmem:[#allocation2 + $0x157] sm:$0xff] }
 0x5b3   : > { %13807 = vmatprep.mubr.msk.f32.mxu0 %vm5478_vm2, %v17143_v25 }
 0x5b6   : > { %13808 = vmatmul.mubr.msk.f32.gmra.mrb[82].mxu0 %vm5478_vm2, %v17147_v23  ;;  %v7798_v23 = vld [vmem:[%s18691_s1 + $0x1e8] sm:$0xff] }
 0x5b7   : > { %13810 = vmatprep.mubr.msk.f32.mxu0 %vm5478_vm2, %v17151_v19  ;;  %v7799_v19 = vld [vmem:[%s18691_s1 + $0x1f0] sm:$0xff] }
 0x5ba   : > { %13811 = vmatmul.mubr.msk.f32.gmra.mrb[84].mxu0 %vm5478_vm2, %v6317_v17  ;;  %v7265_v17 = vld [vmem:[#allocation2 + $0x20] sm:$0xff] }
 0x5bb   : > { %13813 = vmatprep.mubr.msk.f32.mxu0 %vm5478_vm2, %v6318_v56  ;;  %v7263_v56 = vld [vmem:[#allocation2 + $0x10] sm:$0xff] }
 0x5be   : > { %13814 = vmatmul.mubr.msk.f32.gmra.mrb[86].mxu0 %vm5478_vm2, %v6319_v13  ;;  %v14324_v13 = vpack.c.bf16 %v7799_v19, %v7798_v23  ;;  %v17440_v23 = vld [vmem:[#allocation2 + $0xb1] sm:$0xff]  ;;  %v17444_v19 = vld [vmem:[#allocation2 + $0xb9] sm:$0xff] }
 0x5bf   : > { %13816 = vmatprep.mubr.msk.f32.mxu0 %vm5478_vm2, %v6320_v1  ;;  %v7264_v1 = vld [vmem:[#allocation2 + $0x18] sm:$0xff] }
 0x5c2   : > { %13817 = vmatmul.mubr.msk.f32.gmra.mrb[88].mxu0 %vm5478_vm2, %v6321_v7  ;;  %v7801_v7 = vld [vmem:[%s18691_s1 + $0x200] sm:$0xff] }
 0x5c3   : > { %13819 = vmatprep.mubr.msk.f32.mxu0 %vm5478_vm2, %v6322_v5  ;;  %v7800_v5 = vld [vmem:[%s18691_s1 + $0x1f8] sm:$0xff] }
 0x5c4   : > { %v14328_v25 = vpack.c.bf16 %v7801_v7, %v7800_v5  ;;  %v17460_v5 = vld [vmem:[#allocation2 + $0xd9] sm:$0xff]  ;;  %v17464_v7 = vld [vmem:[#allocation2 + $0xe1] sm:$0xff] }
 0x5c6   : > { %13820 = vmatmul.mubr.msk.f32.gmra.mrb[90].mxu0 %vm5478_vm2, %v6813_v0  ;;  %v17436_v0 = vld [vmem:[#allocation2 + $0xa9] sm:$0xff] }
 0x5c7   : > { %13834 = vmatprep.mubr.msk.f32.mxu0 %vm5478_vm2, %v7263_v56  ;;  %v17448_v56 = vld [vmem:[#allocation2 + $0xc1] sm:$0xff] }
 0x5ca   : > { %13835 = vmatmul.mubr.msk.f32.vlgmr.msra.gmra.mrb[50].mxu0 %vm5478_vm2, %v7264_v1  ;;  %v17456_v1 = vld [vmem:[#allocation2 + $0xd1] sm:$0xff] }
 0x5cb   : > { %13837 = vmatprep.mubr.msk.f32.mxu0 %vm5478_vm2, %v7265_v17  ;;  %14323 = vmatpush3.bf16.msra.mxu0 %v14320_v53  ;;  %v17432_v53 = vld [vmem:[#allocation2 + $0xa1] sm:$0xff]  ;;  %v17468_v17 = vld [vmem:[#allocation2 + $0xe9] sm:$0xff] }
 0x5cc   : > { %14325 = vmatprep.subr.bf16.mxu0 %v14324_v13 }
 0x5ce   : > { %13838 = vmatmul.mubr.msk.f32.gmra.mrb[52].mxu0 %vm5478_vm2, %v7266_v32  ;;  %v17476_v32 = vld [vmem:[#allocation2 + $0xf9] sm:$0xff] }
 0x5cf   : > { %13840 = vmatprep.mubr.msk.f32.mxu0 %vm5478_vm2, %v7267_v34  ;;  %14327 = vmatpush3.bf16.msra.mxu0 %v14324_v13  ;;  %v17452_v13 = vld [vmem:[#allocation2 + $0xc9] sm:$0xff]  ;;  %v17480_v34 = vld [vmem:[#allocation2 + $0x101] sm:$0xff] }
 0x5d0   : > { %14329 = vmatprep.subr.bf16.mxu0 %v14328_v25 }
 0x5d2   : > { %13841 = vmatmul.mubr.msk.f32.gmra.mrb[54].mxu0 %vm5478_vm2, %v7268_v3  ;;  %v17496_v3 = vld [vmem:[#allocation2 + $0x121] sm:$0xff] }
 0x5d3   : > { %13843 = vmatprep.mubr.msk.f32.mxu0 %vm5478_vm2, %v7269_v30  ;;  %14331 = vmatpush3.bf16.msra.mxu0 %v14328_v25  ;;  %v17472_v25 = vld [vmem:[#allocation2 + $0xf1] sm:$0xff]  ;;  %v17500_v30 = vld [vmem:[#allocation2 + $0x129] sm:$0xff] }
 0x5d4   : > { %14333 = vmatprep.subr.bf16.mxu0 %v17280_v52 }
 0x5d6   : > { %13844 = vmatmul.mubr.msk.f32.gmra.mrb[56].mxu0 %vm5478_vm2, %v7270_v40  ;;  %v7790_v40 = vld [vmem:[#allocation2 + $0x131] sm:$0xff] }
 0x5d7   : > { %13846 = vmatprep.mubr.msk.f32.mxu0 %vm5478_vm2, %v7271_v47  ;;  %v7791_v47 = vld [vmem:[#allocation2 + $0x139] sm:$0xff] }
 0x5da   : > { %13847 = vmatmul.mubr.msk.f32.gmra.mrb[58].mxu0 %vm5478_vm2, %v7272_v20  ;;  %v7792_v20 = vld [vmem:[#allocation2 + $0x141] sm:$0xff] }
 0x5db   : > { %13849 = vmatprep.mubr.msk.f32.mxu0 %vm5478_vm2, %v7273_v35  ;;  %v7793_v35 = vld [vmem:[#allocation2 + $0x149] sm:$0xff] }
 0x5de   : > { %13850 = vmatmul.mubr.msk.f32.gmra.mrb[60].mxu0 %vm5478_vm2, %v7274_v22  ;;  %v7794_v22 = vld [vmem:[#allocation2 + $0x151] sm:$0xff] }
 0x5df   : > { %13852 = vmatprep.mubr.msk.f32.mxu0 %vm5478_vm2, %v7275_v39  ;;  %v7795_v39 = vld [vmem:[#allocation2 + $0x159] sm:$0xff] }
 0x5e2   : > { %13853 = vmatmul.mubr.msk.f32.gmra.mrb[62].mxu0 %vm5478_vm2, %v7276_v26  ;;  %v8780_v26 = vld [vmem:[%s18691_s1 + $0x248] sm:$0xff] }
 0x5e3   : > { %13855 = vmatprep.mubr.msk.f32.mxu0 %vm5478_vm2, %v7277_v37  ;;  %v8781_v37 = vld [vmem:[%s18691_s1 + $0x250] sm:$0xff] }
 0x5e6   : > { %13856 = vmatmul.mubr.msk.f32.gmra.mrb[64].mxu0 %vm5478_vm2, %v7278_v57  ;;  %v14348_v57 = vpack.c.bf16 %v8781_v37, %v8780_v26  ;;  %v9233_v26 = vld [vmem:[#allocation2 + $0x4b] sm:$0xff]  ;;  %v9234_v37 = vld [vmem:[#allocation2 + $0x53] sm:$0xff] }
 0x5e7   : > { %13858 = vmatprep.mubr.msk.f32.mxu0 %vm5478_vm2, %v7279_v18  ;;  %v8782_v18 = vld [vmem:[%s18691_s1 + $0x258] sm:$0xff] }
 0x5ea   : > { %13859 = vmatmul.mubr.msk.f32.gmra.mrb[66].mxu0 %vm5478_vm2, %v7280_v60  ;;  %v8783_v60 = vld [vmem:[%s18691_s1 + $0x260] sm:$0xff] }
 0x5eb   : > { %13861 = vmatprep.mubr.msk.f32.mxu0 %vm5478_vm2, %v7281_v14  ;;  %v14352_v14 = vpack.c.bf16 %v8783_v60, %v8782_v18  ;;  %v9236_v18 = vld [vmem:[#allocation2 + $0x63] sm:$0xff]  ;;  %v9237_v60 = vld [vmem:[#allocation2 + $0x6b] sm:$0xff] }
 0x5ee   : > { %13862 = vmatmul.mubr.msk.f32.gmra.mrb[68].mxu0 %vm5478_vm2, %v7282_v45  ;;  %v9269_v45 = vld [vmem:[%s18691_s1 + $0x268] sm:$0xff] }
 0x5ef   : > { %13864 = vmatprep.mubr.msk.f32.mxu0 %vm5478_vm2, %v16771_v51  ;;  %v18940_v51 = vld [vmem:[#allocation41_spill] sm:$0xff] }
 0x5f2   : > { %13865 = vmatmul.mubr.msk.f32.gmra.mrb[70].mxu0 %vm5478_vm2, %v7284_v33  ;;  %v9270_v33 = vld [vmem:[%s18691_s1 + $0x270] sm:$0xff] }
 0x5f3   : > { %13867 = vmatprep.mubr.msk.f32.mxu0 %vm5478_vm2, %v16786_v43  ;;  %v18942_v43 = vld [vmem:[#allocation44_spill] sm:$0xff] }
 0x5f6   : > { %13868 = vmatmul.mubr.msk.f32.gmra.mrb[72].mxu0 %vm5478_vm2, %v16782_v27  ;;  %v18941_v27 = vld [vmem:[#allocation45_spill] sm:$0xff] }
 0x5f7   : > { %13870 = vmatprep.mubr.msk.f32.mxu0 %vm5478_vm2, %v16800_v21  ;;  %v8289_v21 = vld [vmem:[%s18691_s1 + $0x218] sm:$0xff] }
 0x5fa   : > { %13871 = vmatmul.mubr.msk.f32.gmra.mrb[74].mxu0 %vm5478_vm2, %v16794_v29  ;;  %v18943_v29 = vld [vmem:[#allocation49_spill] sm:$0xff] }
 0x5fb   : > { %13873 = vmatprep.mubr.msk.f32.mxu0 %vm5478_vm2, %v16814_v50  ;;  %v18944_v50 = vld [vmem:[#allocation48_spill] sm:$0xff] }
 0x5fe   : > { %13874 = vmatmul.mubr.msk.f32.gmra.mrb[76].mxu0 %vm5478_vm2, %v16810_v31  ;;  %v8290_v31 = vld [vmem:[%s18691_s1 + $0x220] sm:$0xff] }
 0x5ff   : > { %13876 = vmatprep.mubr.msk.f32.mxu0 %vm5478_vm2, %v16830_v49  ;;  %v14336_v49 = vpack.c.bf16 %v8290_v31, %v8289_v21  ;;  %v8736_v21 = vld [vmem:[#allocation2 + $0x1a] sm:$0xff] }
 0x602   : > { %13877 = vmatmul.mubr.msk.f32.gmra.mrb[78].mxu0 %vm5478_vm2, %v16826_v55  ;;  %v7754_v55 = vld [vmem:[#allocation2 + $0x11] sm:$0xff] }
 0x603   : > { %13879 = vmatprep.mubr.msk.f32.mxu0 %vm5478_vm2, %v16844_v44  ;;  %v8291_v44 = vld [vmem:[%s18691_s1 + $0x228] sm:$0xff] }
 0x606   : > { %13880 = vmatmul.mubr.msk.f32.gmra.mrb[80].mxu0 %vm5478_vm2, %v16838_v16  ;;  %v17348_v16 = vld [vmem:[#allocation2 + $0x19] sm:$0xff] }
 0x607   : > { %13882 = vmatprep.mubr.msk.f32.mxu0 %vm5478_vm2, %v16858_v61  ;;  %v17358_v61 = vld [vmem:[#allocation2 + $0x21] sm:$0xff] }
 0x60a   : > { %13883 = vmatmul.mubr.msk.f32.gmra.mrb[82].mxu0 %vm5478_vm2, %v16854_v54  ;;  %v8292_v54 = vld [vmem:[%s18691_s1 + $0x230] sm:$0xff] }
 0x60b   : > { %13885 = vmatprep.mubr.msk.f32.mxu0 %vm5478_vm2, %v16874_v15  ;;  %v17363_v15 = vld [vmem:[#allocation2 + $0x29] sm:$0xff] }
 0x60e   : > { %13886 = vmatmul.mubr.msk.f32.gmra.mrb[84].mxu0 %vm5478_vm2, %v16870_v28  ;;  %v14340_v28 = vpack.c.bf16 %v8292_v54, %v8291_v44  ;;  %v8739_v54 = vld [vmem:[#allocation2 + $0x32] sm:$0xff] }
 0x60f   : > { %13888 = vmatprep.mubr.msk.f32.mxu0 %vm5478_vm2, %v16888_v2  ;;  %v8779_v2 = vld [vmem:[%s18691_s1 + $0x240] sm:$0xff] }
 0x610   : > { %v17377_v63 = vpack.c.bf16 %v8779_v2, %v8778_v36  ;;  %v8744_v36 = vld [vmem:[#allocation2 + $0x5a] sm:$0xff]  ;;  %v8745_v2 = vld [vmem:[#allocation2 + $0x62] sm:$0xff] }
 0x612   : > { %13889 = vmatmul.mubr.msk.f32.gmra.mrb[86].mxu0 %vm5478_vm2, %v18940_v51  ;;  %v14356_v51 = vpack.c.bf16 %v9270_v33, %v9269_v45  ;;  %v9239_v45 = vld [vmem:[#allocation2 + $0x7b] sm:$0xff]  ;;  %v9240_v33 = vld [vmem:[#allocation2 + $0x83] sm:$0xff] }
 0x613   : > { %13891 = vmatprep.mubr.msk.f32.mxu0 %vm5478_vm2, %v18941_v27  ;;  %v8286_v27 = vld [vmem:[#allocation2 + $0x161] sm:$0xff] }
 0x616   : > { %13892 = vmatmul.mubr.msk.f32.gmra.mrb[88].mxu0 %vm5478_vm2, %v18942_v43  ;;  %v9271_v43 = vld [vmem:[%s18691_s1 + $0x278] sm:$0xff] }
 0x617   : > { %13894 = vmatprep.mubr.msk.f32.mxu0 %vm5478_vm2, %v18943_v29  ;;  %v9272_v29 = vld [vmem:[%s18691_s1 + $0x280] sm:$0xff] }
 0x618   : > { %v14360_v31 = vpack.c.bf16 %v9272_v29, %v9271_v43  ;;  %v9243_v43 = vld [vmem:[#allocation2 + $0x9b] sm:$0xff]  ;;  %v9244_v29 = vld [vmem:[#allocation2 + $0xa3] sm:$0xff] }
 0x61a   : > { %13895 = vmatmul.mubr.msk.f32.gmra.mrb[90].mxu0 %vm5478_vm2, %v18944_v50  ;;  %v8737_v50 = vld [vmem:[#allocation2 + $0x22] sm:$0xff] }
 0x61b   : > { %13909 = vmatprep.mubr.msk.f32.mxu0 %vm5478_vm2, %v7754_v55  ;;  %v9273_v55 = vld [vmem:[%s18691_s1 + $0x288] sm:$0xff] }
 0x61e   : > { %13910 = vmatmul.mubr.msk.f32.vlgmr.msra.gmra.mrb[50].mxu0 %vm5478_vm2, %v17348_v16 }
 0x61f   : > { %13912 = vmatprep.mubr.msk.f32.mxu0 %vm5478_vm2, %v17358_v61  ;;  %14335 = vmatpush3.bf16.msra.mxu0 %v17280_v52  ;;  %v17492_v52 = vld [vmem:[#allocation2 + $0x119] sm:$0xff] }
 0x620   : > { %14337 = vmatprep.subr.bf16.mxu0 %v14336_v49 }
 0x622   : > { %13913 = vmatmul.mubr.msk.f32.gmra.mrb[52].mxu0 %vm5478_vm2, %v17363_v15 }
 0x623   : > { %13915 = vmatprep.mubr.msk.f32.mxu0 %vm5478_vm2, %v17367_v58  ;;  %14339 = vmatpush3.bf16.msra.mxu0 %v14336_v49  ;;  %v9274_v49 = vld [vmem:[%s18691_s1 + $0x290] sm:$0xff] }
 0x624   : > { %14341 = vmatprep.subr.bf16.mxu0 %v14340_v28  ;;  %v14364_v44 = vpack.c.bf16 %v9274_v49, %v9273_v55  ;;  %v9248_v55 = vld [vmem:[#allocation2 + $0xc3] sm:$0xff]  ;;  %v9249_v49 = vld [vmem:[#allocation2 + $0xcb] sm:$0xff] }
 0x626   : > { %13916 = vmatmul.mubr.msk.f32.gmra.mrb[54].mxu0 %vm5478_vm2, %v17379_v42 }
 0x627   : > { %13918 = vmatprep.mubr.msk.f32.mxu0 %vm5478_vm2, %v17383_v6  ;;  %14343 = vmatpush3.bf16.msra.mxu0 %v14340_v28  ;;  %v8741_v28 = vld [vmem:[#allocation2 + $0x42] sm:$0xff] }
 0x628   : > { %14345 = vmatprep.subr.bf16.mxu0 %v17377_v63 }
 0x62a   : > { %13919 = vmatmul.mubr.msk.f32.gmra.mrb[56].mxu0 %vm5478_vm2, %v17388_v12 }
 0x62b   : > { %13921 = vmatprep.mubr.msk.f32.mxu0 %vm5478_vm2, %v17392_v8 }
 0x62e   : > { %13922 = vmatmul.mubr.msk.f32.gmra.mrb[58].mxu0 %vm5478_vm2, %v17396_v24 }
 0x62f   : > { %13924 = vmatprep.mubr.msk.f32.mxu0 %vm5478_vm2, %v17400_v59 }
 0x632   : > { %13925 = vmatmul.mubr.msk.f32.gmra.mrb[60].mxu0 %vm5478_vm2, %v17404_v10 }
 0x633   : > { %13927 = vmatprep.mubr.msk.f32.mxu0 %vm5478_vm2, %v17408_v9 }
 0x636   : > { %13928 = vmatmul.mubr.msk.f32.gmra.mrb[62].mxu0 %vm5478_vm2, %v17412_v38 }
 0x637   : > { %13930 = vmatprep.mubr.msk.f32.mxu0 %vm5478_vm2, %v17416_v62 }
 0x63a   : > { %13931 = vmatmul.mubr.msk.f32.gmra.mrb[64].mxu0 %vm5478_vm2, %v17420_v48 }
 0x63b   : > { %13933 = vmatprep.mubr.msk.f32.mxu0 %vm5478_vm2, %v17424_v11 }
 0x63e   : > { %13934 = vmatmul.mubr.msk.f32.gmra.mrb[66].mxu0 %vm5478_vm2, %v17428_v41 }
 0x63f   : > { %13936 = vmatprep.mubr.msk.f32.mxu0 %vm5478_vm2, %v17432_v53 }
 0x642   : > { %13937 = vmatmul.mubr.msk.f32.gmra.mrb[68].mxu0 %vm5478_vm2, %v17436_v0 }
 0x643   : > { %13939 = vmatprep.mubr.msk.f32.mxu0 %vm5478_vm2, %v17440_v23 }
 0x646   : > { %13940 = vmatmul.mubr.msk.f32.gmra.mrb[70].mxu0 %vm5478_vm2, %v17444_v19 }
 0x647   : > { %13942 = vmatprep.mubr.msk.f32.mxu0 %vm5478_vm2, %v17448_v56 }
 0x64a   : > { %13943 = vmatmul.mubr.msk.f32.gmra.mrb[72].mxu0 %vm5478_vm2, %v17452_v13 }
 0x64b   : > { %13945 = vmatprep.mubr.msk.f32.mxu0 %vm5478_vm2, %v17456_v1 }
 0x64e   : > { %13946 = vmatmul.mubr.msk.f32.gmra.mrb[74].mxu0 %vm5478_vm2, %v17460_v5 }
 0x64f   : > { %13948 = vmatprep.mubr.msk.f32.mxu0 %vm5478_vm2, %v17464_v7 }
 0x652   : > { %13949 = vmatmul.mubr.msk.f32.gmra.mrb[76].mxu0 %vm5478_vm2, %v17468_v17 }
 0x653   : > { %13951 = vmatprep.mubr.msk.f32.mxu0 %vm5478_vm2, %v17472_v25 }
 0x656   : > { %13952 = vmatmul.mubr.msk.f32.gmra.mrb[78].mxu0 %vm5478_vm2, %v17476_v32 }
 0x657   : > { %13954 = vmatprep.mubr.msk.f32.mxu0 %vm5478_vm2, %v17480_v34 }
 0x65a   : > { %13955 = vmatmul.mubr.msk.f32.gmra.mrb[80].mxu0 %vm5478_vm2, %v17484_v4 }
 0x65b   : > { %13957 = vmatprep.mubr.msk.f32.mxu0 %vm5478_vm2, %v17488_v46 }
 0x65e   : > { %13958 = vmatmul.mubr.msk.f32.gmra.mrb[82].mxu0 %vm5478_vm2, %v17492_v52 }
 0x65f   : > { %13960 = vmatprep.mubr.msk.f32.mxu0 %vm5478_vm2, %v17496_v3 }
 0x662   : > { %13961 = vmatmul.mubr.msk.f32.gmra.mrb[84].mxu0 %vm5478_vm2, %v17500_v30 }
 0x663   : > { %13963 = vmatprep.mubr.msk.f32.mxu0 %vm5478_vm2, %v7790_v40 }
 0x666   : > { %13964 = vmatmul.mubr.msk.f32.gmra.mrb[86].mxu0 %vm5478_vm2, %v7791_v47 }
 0x667   : > { %13966 = vmatprep.mubr.msk.f32.mxu0 %vm5478_vm2, %v7792_v20 }
 0x66a   : > { %13967 = vmatmul.mubr.msk.f32.gmra.mrb[88].mxu0 %vm5478_vm2, %v7793_v35 }
 0x66b   : > { %13969 = vmatprep.mubr.msk.f32.mxu0 %vm5478_vm2, %v7794_v22 }
 0x66e   : > { %13970 = vmatmul.mubr.msk.f32.gmra.mrb[90].mxu0 %vm5478_vm2, %v7795_v39 }
 0x66f   : > { %13984 = vmatprep.mubr.msk.f32.mxu0 %vm5478_vm2, %v17348_v16  ;;  %v8738_v16 = vld [vmem:[#allocation2 + $0x2a] sm:$0xff] }
 0x672   : > { %13985 = vmatmul.mubr.msk.f32.vlgmr.msra.gmra.mrb[50].mxu0 %vm5478_vm2, %v17358_v61  ;;  %v8740_v61 = vld [vmem:[#allocation2 + $0x3a] sm:$0xff] }
 0x673   : > { %13987 = vmatprep.mubr.msk.f32.mxu0 %vm5478_vm2, %v17363_v15  ;;  %14347 = vmatpush3.bf16.msra.mxu0 %v17377_v63  ;;  %v8742_v15 = vld [vmem:[#allocation2 + $0x4a] sm:$0xff] }
 0x674   : > { %14349 = vmatprep.subr.bf16.mxu0 %v14348_v57  ;;  %v8746_v63 = vld [vmem:[#allocation2 + $0x6a] sm:$0xff] }
 0x676   : > { %13988 = vmatmul.mubr.msk.f32.gmra.mrb[52].mxu0 %vm5478_vm2, %v17367_v58  ;;  %v8743_v58 = vld [vmem:[#allocation2 + $0x52] sm:$0xff] }
 0x677   : > { %13990 = vmatprep.mubr.msk.f32.mxu0 %vm5478_vm2, %v17379_v42  ;;  %14351 = vmatpush3.bf16.msra.mxu0 %v14348_v57  ;;  %v8747_v42 = vld [vmem:[#allocation2 + $0x72] sm:$0xff]  ;;  %v9235_v57 = vld [vmem:[#allocation2 + $0x5b] sm:$0xff] }
 0x678   : > { %14353 = vmatprep.subr.bf16.mxu0 %v14352_v14 }
 0x67a   : > { %13991 = vmatmul.mubr.msk.f32.gmra.mrb[54].mxu0 %vm5478_vm2, %v17383_v6  ;;  %v8748_v6 = vld [vmem:[#allocation2 + $0x7a] sm:$0xff] }
 0x67b   : > { %13993 = vmatprep.mubr.msk.f32.mxu0 %vm5478_vm2, %v17388_v12  ;;  %14355 = vmatpush3.bf16.msra.mxu0 %v14352_v14  ;;  %v8749_v12 = vld [vmem:[#allocation2 + $0x82] sm:$0xff]  ;;  %v9238_v14 = vld [vmem:[#allocation2 + $0x73] sm:$0xff] }
 0x67c   : > { %14357 = vmatprep.subr.bf16.mxu0 %v14356_v51 }
 0x67e   : > { %13994 = vmatmul.mubr.msk.f32.gmra.mrb[56].mxu0 %vm5478_vm2, %v17392_v8  ;;  %v8750_v8 = vld [vmem:[#allocation2 + $0x8a] sm:$0xff] }
 0x67f   : > { %13996 = vmatprep.mubr.msk.f32.mxu0 %vm5478_vm2, %v17396_v24  ;;  %v8751_v24 = vld [vmem:[#allocation2 + $0x92] sm:$0xff] }
 0x682   : > { %13997 = vmatmul.mubr.msk.f32.gmra.mrb[58].mxu0 %vm5478_vm2, %v17400_v59  ;;  %v8752_v59 = vld [vmem:[#allocation2 + $0x9a] sm:$0xff] }
 0x683   : > { %13999 = vmatprep.mubr.msk.f32.mxu0 %vm5478_vm2, %v17404_v10  ;;  %v8753_v10 = vld [vmem:[#allocation2 + $0xa2] sm:$0xff] }
 0x686   : > { %14000 = vmatmul.mubr.msk.f32.gmra.mrb[60].mxu0 %vm5478_vm2, %v17408_v9  ;;  %v8754_v9 = vld [vmem:[#allocation2 + $0xaa] sm:$0xff] }
 0x687   : > { %14002 = vmatprep.mubr.msk.f32.mxu0 %vm5478_vm2, %v17412_v38  ;;  %v8755_v38 = vld [vmem:[#allocation2 + $0xb2] sm:$0xff] }
 0x68a   : > { %14003 = vmatmul.mubr.msk.f32.gmra.mrb[62].mxu0 %vm5478_vm2, %v17416_v62  ;;  %v8756_v62 = vld [vmem:[#allocation2 + $0xba] sm:$0xff] }
 0x68b   : > { %14005 = vmatprep.mubr.msk.f32.mxu0 %vm5478_vm2, %v17420_v48  ;;  %v8757_v48 = vld [vmem:[#allocation2 + $0xc2] sm:$0xff] }
 0x68e   : > { %14006 = vmatmul.mubr.msk.f32.gmra.mrb[64].mxu0 %vm5478_vm2, %v17424_v11  ;;  %v8758_v11 = vld [vmem:[#allocation2 + $0xca] sm:$0xff] }
 0x68f   : > { %14008 = vmatprep.mubr.msk.f32.mxu0 %vm5478_vm2, %v17428_v41  ;;  %v8759_v41 = vld [vmem:[#allocation2 + $0xd2] sm:$0xff] }
 0x692   : > { %14009 = vmatmul.mubr.msk.f32.gmra.mrb[66].mxu0 %vm5478_vm2, %v17432_v53  ;;  %v8760_v53 = vld [vmem:[#allocation2 + $0xda] sm:$0xff] }
 0x693   : > { %14011 = vmatprep.mubr.msk.f32.mxu0 %vm5478_vm2, %v17436_v0  ;;  %v8761_v0 = vld [vmem:[#allocation2 + $0xe2] sm:$0xff] }
 0x696   : > { %14012 = vmatmul.mubr.msk.f32.gmra.mrb[68].mxu0 %vm5478_vm2, %v17440_v23  ;;  %v8762_v23 = vld [vmem:[#allocation2 + $0xea] sm:$0xff] }
 0x697   : > { %14014 = vmatprep.mubr.msk.f32.mxu0 %vm5478_vm2, %v17444_v19  ;;  %v8763_v19 = vld [vmem:[#allocation2 + $0xf2] sm:$0xff] }
 0x69a   : > { %14015 = vmatmul.mubr.msk.f32.gmra.mrb[70].mxu0 %vm5478_vm2, %v17448_v56  ;;  %v8764_v56 = vld [vmem:[#allocation2 + $0xfa] sm:$0xff] }
 0x69b   : > { %14017 = vmatprep.mubr.msk.f32.mxu0 %vm5478_vm2, %v17452_v13  ;;  %v8765_v13 = vld [vmem:[#allocation2 + $0x102] sm:$0xff] }
 0x69e   : > { %14018 = vmatmul.mubr.msk.f32.gmra.mrb[72].mxu0 %vm5478_vm2, %v17456_v1  ;;  %v8766_v1 = vld [vmem:[#allocation2 + $0x10a] sm:$0xff] }
 0x69f   : > { %14020 = vmatprep.mubr.msk.f32.mxu0 %vm5478_vm2, %v17460_v5  ;;  %v8767_v5 = vld [vmem:[#allocation2 + $0x112] sm:$0xff] }
 0x6a2   : > { %14021 = vmatmul.mubr.msk.f32.gmra.mrb[74].mxu0 %vm5478_vm2, %v17464_v7  ;;  %v8768_v7 = vld [vmem:[#allocation2 + $0x11a] sm:$0xff] }
 0x6a3   : > { %14023 = vmatprep.mubr.msk.f32.mxu0 %vm5478_vm2, %v17468_v17  ;;  %v8769_v17 = vld [vmem:[#allocation2 + $0x122] sm:$0xff] }
 0x6a6   : > { %14024 = vmatmul.mubr.msk.f32.gmra.mrb[76].mxu0 %vm5478_vm2, %v17472_v25  ;;  %v8770_v25 = vld [vmem:[#allocation2 + $0x12a] sm:$0xff] }
 0x6a7   : > { %14026 = vmatprep.mubr.msk.f32.mxu0 %vm5478_vm2, %v17476_v32  ;;  %v8771_v32 = vld [vmem:[#allocation2 + $0x132] sm:$0xff] }
 0x6aa   : > { %14027 = vmatmul.mubr.msk.f32.gmra.mrb[78].mxu0 %vm5478_vm2, %v17480_v34  ;;  %v8772_v34 = vld [vmem:[#allocation2 + $0x13a] sm:$0xff] }
 0x6ab   : > { %14029 = vmatprep.mubr.msk.f32.mxu0 %vm5478_vm2, %v17484_v4  ;;  %v8773_v4 = vld [vmem:[#allocation2 + $0x142] sm:$0xff] }
 0x6ae   : > { %14030 = vmatmul.mubr.msk.f32.gmra.mrb[80].mxu0 %vm5478_vm2, %v17488_v46  ;;  %v8774_v46 = vld [vmem:[#allocation2 + $0x14a] sm:$0xff] }
 0x6af   : > { %14032 = vmatprep.mubr.msk.f32.mxu0 %vm5478_vm2, %v17492_v52  ;;  %v8775_v52 = vld [vmem:[#allocation2 + $0x152] sm:$0xff] }
 0x6b2   : > { %14033 = vmatmul.mubr.msk.f32.gmra.mrb[82].mxu0 %vm5478_vm2, %v17496_v3  ;;  %v8776_v3 = vld [vmem:[#allocation2 + $0x15a] sm:$0xff] }
 0x6b3   : > { %14035 = vmatprep.mubr.msk.f32.mxu0 %vm5478_vm2, %v17500_v30  ;;  %v8777_v30 = vld [vmem:[#allocation2 + $0x162] sm:$0xff] }
 0x6b6   : > { %14036 = vmatmul.mubr.msk.f32.gmra.mrb[84].mxu0 %vm5478_vm2, %v7790_v40  ;;  %v9227_v40 = vld [vmem:[#allocation2 + $0x1b] sm:$0xff] }
 0x6b7   : > { %14038 = vmatprep.mubr.msk.f32.mxu0 %vm5478_vm2, %v7791_v47  ;;  %v9228_v47 = vld [vmem:[#allocation2 + $0x23] sm:$0xff] }
 0x6ba   : > { %14039 = vmatmul.mubr.msk.f32.gmra.mrb[86].mxu0 %vm5478_vm2, %v7792_v20  ;;  %v9229_v20 = vld [vmem:[#allocation2 + $0x2b] sm:$0xff] }
 0x6bb   : > { %14041 = vmatprep.mubr.msk.f32.mxu0 %vm5478_vm2, %v7793_v35  ;;  %v9230_v35 = vld [vmem:[#allocation2 + $0x33] sm:$0xff] }
 0x6be   : > { %14042 = vmatmul.mubr.msk.f32.gmra.mrb[88].mxu0 %vm5478_vm2, %v7794_v22  ;;  %v9231_v22 = vld [vmem:[#allocation2 + $0x3b] sm:$0xff] }
 0x6bf   : > { %14044 = vmatprep.mubr.msk.f32.mxu0 %vm5478_vm2, %v7795_v39  ;;  %v9232_v39 = vld [vmem:[#allocation2 + $0x43] sm:$0xff] }
 0x6c2   : > { %14045 = vmatmul.mubr.msk.f32.gmra.mrb[90].mxu0 %vm5478_vm2, %v8286_v27  ;;  %v9242_v27 = vld [vmem:[#allocation2 + $0x93] sm:$0xff] }
 0x6c3   : > { %14059 = vmatprep.mubr.msk.f32.mxu0 %vm5478_vm2, %v8736_v21  ;;  %v9245_v21 = vld [vmem:[#allocation2 + $0xab] sm:$0xff] }
 0x6c6   : > { %14060 = vmatmul.mubr.msk.f32.vlgmr.msra.gmra.mrb[50].mxu0 %vm5478_vm2, %v8737_v50  ;;  %v9247_v50 = vld [vmem:[#allocation2 + $0xbb] sm:$0xff] }
 0x6c7   : > { %14062 = vmatprep.mubr.msk.f32.mxu0 %vm5478_vm2, %v8738_v16  ;;  %14359 = vmatpush3.bf16.msra.mxu0 %v14356_v51  ;;  %v9241_v51 = vld [vmem:[#allocation2 + $0x8b] sm:$0xff]  ;;  %v9250_v16 = vld [vmem:[#allocation2 + $0xd3] sm:$0xff] }
 0x6c8   : > { %14361 = vmatprep.subr.bf16.mxu0 %v14360_v31 }
 0x6ca   : > { %14063 = vmatmul.mubr.msk.f32.gmra.mrb[52].mxu0 %vm5478_vm2, %v8739_v54  ;;  %v9252_v54 = vld [vmem:[#allocation2 + $0xe3] sm:$0xff] }
 0x6cb   : > { %14065 = vmatprep.mubr.msk.f32.mxu0 %vm5478_vm2, %v8740_v61  ;;  %14363 = vmatpush3.bf16.msra.mxu0 %v14360_v31  ;;  %v9246_v31 = vld [vmem:[#allocation2 + $0xb3] sm:$0xff]  ;;  %v9253_v61 = vld [vmem:[#allocation2 + $0xeb] sm:$0xff] }
 0x6cc   : > { %14365 = vmatprep.subr.bf16.mxu0 %v14364_v44 }
 0x6ce   : > { %14066 = vmatmul.mubr.msk.f32.gmra.mrb[54].mxu0 %vm5478_vm2, %v8741_v28  ;;  %v9254_v28 = vld [vmem:[#allocation2 + $0xf3] sm:$0xff] }
 0x6cf   : > { %14068 = vmatprep.mubr.msk.f32.mxu0 %vm5478_vm2, %v8742_v15  ;;  %14367 = vmatpush3.bf16.msra.mxu0 %v14364_v44  ;;  %v9251_v44 = vld [vmem:[#allocation2 + $0xdb] sm:$0xff] }
 0x6d0   : > { %v9255_v15 = vld [vmem:[#allocation2 + $0xfb] sm:$0xff] }
 0x6d2   : > { %14069 = vmatmul.mubr.msk.f32.gmra.mrb[56].mxu0 %vm5478_vm2, %v8743_v58  ;;  %v9256_v58 = vld [vmem:[#allocation2 + $0x103] sm:$0xff] }
 0x6d3   : > { %14071 = vmatprep.mubr.msk.f32.mxu0 %vm5478_vm2, %v8744_v36  ;;  %v9257_v36 = vld [vmem:[#allocation2 + $0x10b] sm:$0xff] }
 0x6d6   : > { %14072 = vmatmul.mubr.msk.f32.gmra.mrb[58].mxu0 %vm5478_vm2, %v8745_v2  ;;  %v9258_v2 = vld [vmem:[#allocation2 + $0x113] sm:$0xff] }
 0x6d7   : > { %14074 = vmatprep.mubr.msk.f32.mxu0 %vm5478_vm2, %v8746_v63  ;;  %v9259_v63 = vld [vmem:[#allocation2 + $0x11b] sm:$0xff] }
 0x6da   : > { %14075 = vmatmul.mubr.msk.f32.gmra.mrb[60].mxu0 %vm5478_vm2, %v8747_v42  ;;  %v9260_v42 = vld [vmem:[#allocation2 + $0x123] sm:$0xff] }
 0x6db   : > { %14077 = vmatprep.mubr.msk.f32.mxu0 %vm5478_vm2, %v8748_v6  ;;  %v9261_v6 = vld [vmem:[#allocation2 + $0x12b] sm:$0xff] }
 0x6de   : > { %14078 = vmatmul.mubr.msk.f32.gmra.mrb[62].mxu0 %vm5478_vm2, %v8749_v12  ;;  %v9262_v12 = vld [vmem:[#allocation2 + $0x133] sm:$0xff] }
 0x6df   : > { %14080 = vmatprep.mubr.msk.f32.mxu0 %vm5478_vm2, %v8750_v8  ;;  %v9263_v8 = vld [vmem:[#allocation2 + $0x13b] sm:$0xff] }
 0x6e2   : > { %14081 = vmatmul.mubr.msk.f32.gmra.mrb[64].mxu0 %vm5478_vm2, %v8751_v24  ;;  %v9264_v24 = vld [vmem:[#allocation2 + $0x143] sm:$0xff] }
 0x6e3   : > { %14083 = vmatprep.mubr.msk.f32.mxu0 %vm5478_vm2, %v8752_v59  ;;  %v9265_v59 = vld [vmem:[#allocation2 + $0x14b] sm:$0xff] }
 0x6e6   : > { %14084 = vmatmul.mubr.msk.f32.gmra.mrb[66].mxu0 %vm5478_vm2, %v8753_v10  ;;  %v9266_v10 = vld [vmem:[#allocation2 + $0x153] sm:$0xff] }
 0x6e7   : > { %14086 = vmatprep.mubr.msk.f32.mxu0 %vm5478_vm2, %v8754_v9  ;;  %v9267_v9 = vld [vmem:[#allocation2 + $0x15b] sm:$0xff] }
 0x6ea   : > { %14087 = vmatmul.mubr.msk.f32.gmra.mrb[68].mxu0 %vm5478_vm2, %v8755_v38  ;;  %v9268_v38 = vld [vmem:[#allocation2 + $0x163] sm:$0xff] }
 0x6eb   : > { %14089 = vmatprep.mubr.msk.f32.mxu0 %vm5478_vm2, %v8756_v62  ;;  %v10186_v62 = vld [vmem:[%s18692_s2 + $0x8] sm:$0xff] }
 0x6ec   : > { %10256 = vmatprep.mubr.f32.mxu1 %v10186_v62  ;;  %v18954_v62 = vld [vmem:[#allocation13_spill] sm:$0xff] }
 0x6ee   : > { %14090 = vmatmul.mubr.msk.f32.gmra.mrb[70].mxu0 %vm5478_vm2, %v8757_v48  ;;  %v17708_v48 = vld [vmem:[%s18691_s1 + $0x2a0] ss:$0 sm:$0xff] }
 0x6ef   : > { %14092 = vmatprep.mubr.msk.f32.mxu0 %vm5478_vm2, %v8758_v11 }
 0x6f2   : > { %14093 = vmatmul.mubr.msk.f32.gmra.mrb[72].mxu0 %vm5478_vm2, %v8759_v41 }
 0x6f3   : > { %14095 = vmatprep.mubr.msk.f32.mxu0 %vm5478_vm2, %v8760_v53 }
 0x6f6   : > { %14096 = vmatmul.mubr.msk.f32.gmra.mrb[74].mxu0 %vm5478_vm2, %v8761_v0 }
 0x6f7   : > { %14098 = vmatprep.mubr.msk.f32.mxu0 %vm5478_vm2, %v8762_v23 }
 0x6fa   : > { %14099 = vmatmul.mubr.msk.f32.gmra.mrb[76].mxu0 %vm5478_vm2, %v8763_v19 }
 0x6fb   : > { %14101 = vmatprep.mubr.msk.f32.mxu0 %vm5478_vm2, %v8764_v56 }
 0x6fe   : > { %14102 = vmatmul.mubr.msk.f32.gmra.mrb[78].mxu0 %vm5478_vm2, %v8765_v13  ;;  %v18945_v13 = vld [vmem:[#allocation7_spill] sm:$0xff] }
 0x6ff   : > { %14104 = vmatprep.mubr.msk.f32.mxu0 %vm5478_vm2, %v8766_v1 }
 0x702   : > { %14105 = vmatmul.mubr.msk.f32.gmra.mrb[80].mxu0 %vm5478_vm2, %v8767_v5 }
 0x703   : > { %14107 = vmatprep.mubr.msk.f32.mxu0 %vm5478_vm2, %v8768_v7 }
 0x706   : > { %14108 = vmatmul.mubr.msk.f32.gmra.mrb[82].mxu0 %vm5478_vm2, %v8769_v17  ;;  %v18946_v17 = vld [vmem:[#allocation5_spill] sm:$0xff] }
 0x707   : > { %14110 = vmatprep.mubr.msk.f32.mxu0 %vm5478_vm2, %v8770_v25 }
 0x70a   : > { %14111 = vmatmul.mubr.msk.f32.gmra.mrb[84].mxu0 %vm5478_vm2, %v8771_v32 }
 0x70b   : > { %14113 = vmatprep.mubr.msk.f32.mxu0 %vm5478_vm2, %v8772_v34 }
 0x70e   : > { %14114 = vmatmul.mubr.msk.f32.gmra.mrb[86].mxu0 %vm5478_vm2, %v8773_v4 }
 0x70f   : > { %14116 = vmatprep.mubr.msk.f32.mxu0 %vm5478_vm2, %v8774_v46 }
 0x712   : > { %14117 = vmatmul.mubr.msk.f32.gmra.mrb[88].mxu0 %vm5478_vm2, %v8775_v52  ;;  %v18947_v52 = vld [vmem:[#allocation4_spill] sm:$0xff] }
 0x713   : > { %14119 = vmatprep.mubr.msk.f32.mxu0 %vm5478_vm2, %v8776_v3 }
 0x716   : > { %14120 = vmatmul.mubr.msk.f32.gmra.mrb[90].mxu0 %vm5478_vm2, %v8777_v30 }
 0x717   : > { %14134 = vmatprep.mubr.msk.f32.mxu0 %vm5478_vm2, %v9227_v40 }
 0x71a   : > { %14135 = vmatmul.mubr.msk.f32.vlgmr.msra.gmra.mrb[50].mxu0 %vm5478_vm2, %v9228_v47  ;;  %v18948_v47 = vld [vmem:[#allocation3_spill] sm:$0xff] }
 0x71b   : > { %14137 = vmatprep.mubr.msk.f32.mxu0 %vm5478_vm2, %v9229_v20 }
 0x71e   : > { %14138 = vmatmul.mubr.msk.f32.gmra.mrb[52].mxu0 %vm5478_vm2, %v9230_v35 }
 0x71f   : > { %14140 = vmatprep.mubr.msk.f32.mxu0 %vm5478_vm2, %v9231_v22 }
 0x722   : > { %14141 = vmatmul.mubr.msk.f32.gmra.mrb[54].mxu0 %vm5478_vm2, %v9232_v39 }
 0x723   : > { %14143 = vmatprep.mubr.msk.f32.mxu0 %vm5478_vm2, %v9233_v26 }
 0x726   : > { %14144 = vmatmul.mubr.msk.f32.gmra.mrb[56].mxu0 %vm5478_vm2, %v9234_v37  ;;  %v18949_v37 = vld [vmem:[#allocation6_spill] sm:$0xff] }
 0x727   : > { %14146 = vmatprep.mubr.msk.f32.mxu0 %vm5478_vm2, %v9235_v57 }
 0x72a   : > { %14147 = vmatmul.mubr.msk.f32.gmra.mrb[58].mxu0 %vm5478_vm2, %v9236_v18 }
 0x72b   : > { %14149 = vmatprep.mubr.msk.f32.mxu0 %vm5478_vm2, %v9237_v60 }
 0x72e   : > { %14150 = vmatmul.mubr.msk.f32.gmra.mrb[60].mxu0 %vm5478_vm2, %v9238_v14  ;;  %v18950_v14 = vld [vmem:[#allocation9_spill] sm:$0xff] }
 0x72f   : > { %14152 = vmatprep.mubr.msk.f32.mxu0 %vm5478_vm2, %v9239_v45 }
 0x732   : > { %14153 = vmatmul.mubr.msk.f32.gmra.mrb[62].mxu0 %vm5478_vm2, %v9240_v33 }
 0x733   : > { %14155 = vmatprep.mubr.msk.f32.mxu0 %vm5478_vm2, %v9241_v51 }
 0x736   : > { %14156 = vmatmul.mubr.msk.f32.gmra.mrb[64].mxu0 %vm5478_vm2, %v9242_v27 }
 0x737   : > { %14158 = vmatprep.mubr.msk.f32.mxu0 %vm5478_vm2, %v9243_v43 }
 0x73a   : > { %14159 = vmatmul.mubr.msk.f32.gmra.mrb[66].mxu0 %vm5478_vm2, %v9244_v29  ;;  %v18951_v29 = vld [vmem:[#allocation8_spill] sm:$0xff] }
 0x73b   : > { %14161 = vmatprep.mubr.msk.f32.mxu0 %vm5478_vm2, %v9245_v21 }
 0x73e   : > { %14162 = vmatmul.mubr.msk.f32.gmra.mrb[68].mxu0 %vm5478_vm2, %v9246_v31 }
 0x73f   : > { %14164 = vmatprep.mubr.msk.f32.mxu0 %vm5478_vm2, %v9247_v50 }
 0x742   : > { %14165 = vmatmul.mubr.msk.f32.gmra.mrb[70].mxu0 %vm5478_vm2, %v9248_v55 }
 0x743   : > { %14167 = vmatprep.mubr.msk.f32.mxu0 %vm5478_vm2, %v9249_v49  ;;  %v18952_v49 = vld [vmem:[#allocation11_spill] sm:$0xff] }
 0x746   : > { %14168 = vmatmul.mubr.msk.f32.gmra.mrb[72].mxu0 %vm5478_vm2, %v9250_v16 }
 0x747   : > { %14170 = vmatprep.mubr.msk.f32.mxu0 %vm5478_vm2, %v9251_v44 }
 0x74a   : > { %14171 = vmatmul.mubr.msk.f32.gmra.mrb[74].mxu0 %vm5478_vm2, %v9252_v54 }
 0x74b   : > { %14173 = vmatprep.mubr.msk.f32.mxu0 %vm5478_vm2, %v9253_v61 }
 0x74e   : > { %14174 = vmatmul.mubr.msk.f32.gmra.mrb[76].mxu0 %vm5478_vm2, %v9254_v28 }
 0x74f   : > { %14176 = vmatprep.mubr.msk.f32.mxu0 %vm5478_vm2, %v9255_v15 }
 0x752   : > { %14177 = vmatmul.mubr.msk.f32.gmra.mrb[78].mxu0 %vm5478_vm2, %v9256_v58 }
 0x753   : > { %14179 = vmatprep.mubr.msk.f32.mxu0 %vm5478_vm2, %v9257_v36 }
 0x756   : > { %14180 = vmatmul.mubr.msk.f32.gmra.mrb[80].mxu0 %vm5478_vm2, %v9258_v2 }
 0x757   : > { %14182 = vmatprep.mubr.msk.f32.mxu0 %vm5478_vm2, %v9259_v63 }
 0x75a   : > { %14183 = vmatmul.mubr.msk.f32.gmra.mrb[82].mxu0 %vm5478_vm2, %v9260_v42 }
 0x75b   : > { %14185 = vmatprep.mubr.msk.f32.mxu0 %vm5478_vm2, %v9261_v6 }
 0x75e   : > { %14186 = vmatmul.mubr.msk.f32.gmra.mrb[84].mxu0 %vm5478_vm2, %v9262_v12  ;;  %v18953_v12 = vld [vmem:[#allocation10_spill] sm:$0xff] }
 0x75f   : > { %14188 = vmatprep.mubr.msk.f32.mxu0 %vm5478_vm2, %v9263_v8 }
 0x762   : > { %14189 = vmatmul.mubr.msk.f32.gmra.mrb[86].mxu0 %vm5478_vm2, %v9264_v24 }
 0x763   : > { %14191 = vmatprep.mubr.msk.f32.mxu0 %vm5478_vm2, %v9265_v59 }
 0x766   : > { %14192 = vmatmul.mubr.msk.f32.gmra.mrb[88].mxu0 %vm5478_vm2, %v9266_v10 }
 0x767   : > { %14194 = vmatprep.mubr.msk.f32.mxu0 %vm5478_vm2, %v9267_v9 }
 0x76a   : > { %14195 = vmatmul.mubr.msk.f32.gmra.mrb[90].mxu0 %vm5478_vm2, %v9268_v38 }
 0x7ed   : > { %v14136_v11 = vpop.f32.mrb[50].mxu0 }
 0x7ee   : > { %v9724_v41 = vadd.f32 %v14136_v11, %v17708_v48  ;;  %v9467_v53 = vpop.f32.mrb[51].mxu0 }
 0x7ef   : > { %v9723_v0 = vadd.f32 %v17708_v48, %v9467_v53 }
 0x7f0   : > { %v9766_v23 = vmax.f32 %v9724_v41, 0.0 }
 0x7f1   : > { %v9765_v19 = vmax.f32 %v9723_v0, 0.0  ;;  %v14139_v56 = vpop.f32.mrb[52].mxu0 }
 0x7f2   : > { %v9808_v1 = vmul.f32 %v9766_v23, %v18945_v13  ;;  %v9726_v5 = vadd.f32 %v14139_v56, %v17708_v48  ;;  %v9477_v7 = vpop.f32.mrb[53].mxu0 }
 0x7f3   : > { %v9807_v25 = vmul.f32 %v9765_v19, %v18946_v17  ;;  %v9725_v32 = vadd.f32 %v17708_v48, %v9477_v7 }
 0x7f4   : > { %9850 = vst [vmem:[#allocation2 + $0x18] sm:$0xff] %v9808_v1  ;;  %v9768_v34 = vmax.f32 %v9726_v5, 0.0 }
 0x7f5   : > { %9849 = vst [vmem:[#allocation2 + $0x10] sm:$0xff] %v9807_v25  ;;  %v9767_v4 = vmax.f32 %v9725_v32, 0.0  ;;  %v14142_v46 = vpop.f32.mrb[54].mxu0 }
 0x7f6   : > { %v17717_v3 = vmul.f32 %v9768_v34, %v18947_v52  ;;  %v9728_v30 = vadd.f32 %v14142_v46, %v17708_v48  ;;  %v9487_v40 = vpop.f32.mrb[55].mxu0  ;;  %v18955_v34 = vld [vmem:[#allocation12_spill] sm:$0xff] }
 0x7f7   : > { %v17721_v20 = vmul.f32 %v9767_v4, %v18948_v47  ;;  %v9727_v35 = vadd.f32 %v17708_v48, %v9487_v40 }
 0x7f8   : > { %9852 = vst [vmem:[#allocation2 + $0x28] sm:$0xff] %v17717_v3  ;;  %v9770_v22 = vmax.f32 %v9728_v30, 0.0 }
 0x7f9   : > { %9851 = vst [vmem:[#allocation2 + $0x20] sm:$0xff] %v17721_v20  ;;  %v9769_v39 = vmax.f32 %v9727_v35, 0.0  ;;  %v14145_v26 = vpop.f32.mrb[56].mxu0  ;;  %v18956_v35 = vld [vmem:[#allocation15_spill] sm:$0xff] }
 0x7fa   : > { %v17727_v57 = vmul.f32 %v9770_v22, %v18949_v37  ;;  %v9730_v18 = vadd.f32 %v14145_v26, %v17708_v48  ;;  %v9497_v60 = vpop.f32.mrb[57].mxu0 }
 0x7fb   : > { %v17731_v45 = vmul.f32 %v9769_v39, %v18950_v14  ;;  %v9729_v33 = vadd.f32 %v17708_v48, %v9497_v60 }
 0x7fc   : > { %9854 = vst [vmem:[#allocation2 + $0x38] sm:$0xff] %v17727_v57  ;;  %v9772_v51 = vmax.f32 %v9730_v18, 0.0  ;;  %v9933_v55 = vld [vmem:[#allocation2 + $0x11] sm:$0xff] }
 0x7fd   : > { %9853 = vst [vmem:[#allocation2 + $0x30] sm:$0xff] %v17731_v45  ;;  %v9771_v27 = vmax.f32 %v9729_v33, 0.0  ;;  %v14148_v43 = vpop.f32.mrb[58].mxu0  ;;  %v9975_v2 = vmax.f32 %v9807_v25, %v9933_v55 }
 0x7fe   : > { %v17737_v21 = vmul.f32 %v9772_v51, %v18951_v29  ;;  %v9732_v31 = vadd.f32 %v14148_v43, %v17708_v48  ;;  %v9507_v50 = vpop.f32.mrb[59].mxu0 }
 0x7ff   : > { %v17741_v16 = vmul.f32 %v9771_v27, %v18952_v49  ;;  %v9731_v44 = vadd.f32 %v17708_v48, %v9507_v50  ;;  %v18957_v50 = vld [vmem:[#allocation14_spill] sm:$0xff] }
 0x800   : > { %9856 = vst [vmem:[#allocation2 + $0x48] sm:$0xff] %v17737_v21  ;;  %v9774_v54 = vmax.f32 %v9732_v31, 0.0  ;;  %v9934_v61 = vld [vmem:[#allocation2 + $0x19] sm:$0xff]  ;;  %v10018_v15 = vld [vmem:[#allocation2 + $0x22] sm:$0xff] }
 0x801   : > { %v10017_v28 = vld [vmem:[#allocation2 + $0x1a] sm:$0xff]  ;;  %9855 = vst [vmem:[#allocation2 + $0x40] sm:$0xff] %v17741_v16  ;;  %v9773_v58 = vmax.f32 %v9731_v44, 0.0  ;;  %v14151_v36 = vpop.f32.mrb[60].mxu0  ;;  %v9976_v63 = vmax.f32 %v9808_v1, %v9934_v61  ;;  %v10060_v6 = vld [vmem:[#allocation2 + $0x23] sm:$0xff] }
 0x802   : > { %v10059_v42 = vld [vmem:[#allocation2 + $0x1b] sm:$0xff]  ;;  %v17747_v8 = vmul.f32 %v9774_v54, %v18953_v12  ;;  %v9734_v24 = vadd.f32 %v14151_v36, %v17708_v48  ;;  %v9517_v59 = vpop.f32.mrb[61].mxu0  ;;  %v10102_v9 = vmax.f32 %v10018_v15, %v10060_v6 }
 0x803   : > { %v10101_v10 = vmax.f32 %v10017_v28, %v10059_v42  ;;  %v9935_v38 = vld [vmem:[#allocation2 + $0x21] sm:$0xff]  ;;  %v17751_v11 = vmul.f32 %v9773_v58, %v18954_v62  ;;  %v9733_v41 = vadd.f32 %v17708_v48, %v9517_v59 }
 0x804   : > { %9858 = vst [vmem:[#allocation2 + $0x58] sm:$0xff] %v17747_v8  ;;  %v9776_v53 = vmax.f32 %v9734_v24, 0.0  ;;  %v17757_v23 = vmax.f32 %v9976_v63, %v10102_v9  ;;  %v9936_v19 = vld [vmem:[#allocation2 + $0x29] sm:$0xff]  ;;  %v10020_v13 = vld [vmem:[#allocation2 + $0x32] sm:$0xff]  ;;  %v9977_v7 = vmax.f32 %v17721_v20, %v9935_v38  ;;  %v18958_v15 = vld [vmem:[#allocation17_spill] sm:$0xff] }
 0x805   : > { %v17755_v0 = vmax.f32 %v9975_v2, %v10101_v10  ;;  %v10019_v56 = vld [vmem:[#allocation2 + $0x2a] sm:$0xff]  ;;  %9857 = vst [vmem:[#allocation2 + $0x50] sm:$0xff] %v17751_v11  ;;  %v9775_v1 = vmax.f32 %v9733_v41, 0.0  ;;  %v14154_v5 = vpop.f32.mrb[62].mxu0  ;;  %v9978_v17 = vmax.f32 %v17717_v3, %v9936_v19  ;;  %v10062_v32 = vld [vmem:[#allocation2 + $0x33] sm:$0xff] }
 0x806   : > { %v10061_v25 = vld [vmem:[#allocation2 + $0x2b] sm:$0xff]  ;;  %v17763_v4 = vmul.f32 %v9776_v53, %v18955_v34  ;;  %v9736_v46 = vadd.f32 %v14154_v5, %v17708_v48  ;;  %v9527_v52 = vpop.f32.mrb[63].mxu0  ;;  %v10104_v39 = vmax.f32 %v10020_v13, %v10062_v32  ;;  %v18959_v41 = vld [vmem:[#allocation16_spill] sm:$0xff] }
 0x807   : > { %v14370_v30 = vpack.c.bf16 %v17757_v23, %v17755_v0  ;;  %v10103_v40 = vmax.f32 %v10019_v56, %v10061_v25  ;;  %v9937_v47 = vld [vmem:[#allocation2 + $0x31] sm:$0xff]  ;;  %v17769_v22 = vmul.f32 %v9775_v1, %v18956_v35  ;;  %v9735_v20 = vadd.f32 %v17708_v48, %v9527_v52 }
 0x808   : > { %9860 = vst [vmem:[#allocation2 + $0x68] sm:$0xff] %v17763_v4  ;;  %v9778_v3 = vmax.f32 %v9736_v46, 0.0  ;;  %v9938_v37 = vld [vmem:[#allocation2 + $0x39] sm:$0xff]  ;;  %v10022_v60 = vld [vmem:[#allocation2 + $0x42] sm:$0xff]  ;;  %v17776_v51 = vmax.f32 %v9978_v17, %v10104_v39  ;;  %v9979_v27 = vmax.f32 %v17731_v45, %v9937_v47 }
 0x809   : > { %v17773_v26 = vmax.f32 %v9977_v7, %v10103_v40  ;;  %v10021_v18 = vld [vmem:[#allocation2 + $0x3a] sm:$0xff]  ;;  %9859 = vst [vmem:[#allocation2 + $0x60] sm:$0xff] %v17769_v22  ;;  %v9777_v14 = vmax.f32 %v9735_v20, 0.0  ;;  %v14157_v33 = vpop.f32.mrb[64].mxu0  ;;  %v9980_v43 = vmax.f32 %v17727_v57, %v9938_v37  ;;  %v10064_v31 = vld [vmem:[#allocation2 + $0x43] sm:$0xff]  ;;  %v18960_v7 = vld [vmem:[#allocation19_spill] sm:$0xff] }
 0x80a   : > { %v10063_v29 = vld [vmem:[#allocation2 + $0x3b] sm:$0xff]  ;;  %v17781_v55 = vmul.f32 %v9778_v3, %v18957_v50  ;;  %v9738_v49 = vadd.f32 %v14157_v33, %v17708_v48  ;;  %v9537_v44 = vpop.f32.mrb[65].mxu0  ;;  %v10106_v61 = vmax.f32 %v10022_v60, %v10064_v31 }
 0x80b   : > { %v10105_v54 = vmax.f32 %v10021_v18, %v10063_v29  ;;  %v9939_v28 = vld [vmem:[#allocation2 + $0x41] sm:$0xff]  ;;  %v17785_v58 = vmul.f32 %v9777_v14, %v18958_v15  ;;  %v9737_v36 = vadd.f32 %v17708_v48, %v9537_v44  ;;  %v14374_v45 = vpack.c.bf16 %v17776_v51, %v17773_v26 }
 0x80c   : > { %9862 = vst [vmem:[#allocation2 + $0x78] sm:$0xff] %v17781_v55  ;;  %v9780_v57 = vmax.f32 %v9738_v49, 0.0  ;;  %v17793_v63 = vmax.f32 %v9980_v43, %v10106_v61  ;;  %v9940_v42 = vld [vmem:[#allocation2 + $0x49] sm:$0xff]  ;;  %v10024_v12 = vld [vmem:[#allocation2 + $0x52] sm:$0xff]  ;;  %v9981_v10 = vmax.f32 %v17741_v16, %v9939_v28  ;;  %v18962_v31 = vld [vmem:[#allocation21_spill] sm:$0xff] }
 0x80d   : > { %v17791_v2 = vmax.f32 %v9979_v27, %v10105_v54  ;;  %v10023_v6 = vld [vmem:[#allocation2 + $0x4a] sm:$0xff]  ;;  %9861 = vst [vmem:[#allocation2 + $0x70] sm:$0xff] %v17785_v58  ;;  %v9779_v24 = vmax.f32 %v9737_v36, 0.0  ;;  %v14160_v59 = vpop.f32.mrb[66].mxu0  ;;  %v9982_v9 = vmax.f32 %v17737_v21, %v9940_v42  ;;  %v10066_v62 = vld [vmem:[#allocation2 + $0x53] sm:$0xff] }
 0x80e   : > { %v10065_v38 = vld [vmem:[#allocation2 + $0x4b] sm:$0xff]  ;;  %v17799_v53 = vmul.f32 %v9780_v57, %v18959_v41  ;;  %v9740_v19 = vadd.f32 %v14160_v59, %v17708_v48  ;;  %v9547_v56 = vpop.f32.mrb[67].mxu0  ;;  %v10108_v25 = vmax.f32 %v10024_v12, %v10066_v62  ;;  %v18963_v59 = vld [vmem:[#allocation20_spill] sm:$0xff] }
 0x80f   : > { %v14378_v13 = vpack.c.bf16 %v17793_v63, %v17791_v2  ;;  %v10107_v1 = vmax.f32 %v10023_v6, %v10065_v38  ;;  %v9941_v5 = vld [vmem:[#allocation2 + $0x51] sm:$0xff]  ;;  %v17805_v17 = vmul.f32 %v9779_v24, %v18960_v7  ;;  %v9739_v16 = vadd.f32 %v17708_v48, %v9547_v56  ;;  %v18961_v18 = vld [vmem:[#allocation18_spill] sm:$0xff] }
 0x810   : > { %9864 = vst [vmem:[#allocation2 + $0x88] sm:$0xff] %v17799_v53  ;;  %v9782_v21 = vmax.f32 %v9740_v19, 0.0  ;;  %v9942_v34 = vld [vmem:[#allocation2 + $0x59] sm:$0xff]  ;;  %v10026_v52 = vld [vmem:[#allocation2 + $0x62] sm:$0xff]  ;;  %v17812_v35 = vmax.f32 %v9982_v9, %v10108_v25  ;;  %v9983_v20 = vmax.f32 %v17751_v11, %v9941_v5 }
 0x811   : > { %v17809_v32 = vmax.f32 %v9981_v10, %v10107_v1  ;;  %v10025_v46 = vld [vmem:[#allocation2 + $0x5a] sm:$0xff]  ;;  %9863 = vst [vmem:[#allocation2 + $0x80] sm:$0xff] %v17805_v17  ;;  %v9781_v40 = vmax.f32 %v9739_v16, 0.0  ;;  %v14163_v47 = vpop.f32.mrb[68].mxu0  ;;  %v9984_v39 = vmax.f32 %v17747_v8, %v9942_v34  ;;  %v10068_v37 = vld [vmem:[#allocation2 + $0x63] sm:$0xff] }
 0x812   : > { %v10067_v3 = vld [vmem:[#allocation2 + $0x5b] sm:$0xff]  ;;  %v17817_v60 = vmul.f32 %v9782_v21, %v18961_v18  ;;  %v9742_v14 = vadd.f32 %v14163_v47, %v17708_v48  ;;  %v9557_v33 = vpop.f32.mrb[69].mxu0  ;;  %v10110_v43 = vmax.f32 %v10026_v52, %v10068_v37  ;;  %v18964_v56 = vld [vmem:[#allocation22_spill] sm:$0xff] }
 0x813   : > { %v10109_v27 = vmax.f32 %v10025_v46, %v10067_v3  ;;  %v9943_v29 = vld [vmem:[#allocation2 + $0x61] sm:$0xff]  ;;  %v17821_v50 = vmul.f32 %v9781_v40, %v18962_v31  ;;  %v9741_v49 = vadd.f32 %v17708_v48, %v9557_v33  ;;  %v14382_v11 = vpack.c.bf16 %v17812_v35, %v17809_v32  ;;  %v18965_v3 = vld [vmem:[#allocation23_spill] sm:$0xff] }
 0x814   : > { %9866 = vst [vmem:[#allocation2 + $0x98] sm:$0xff] %v17817_v60  ;;  %v9784_v8 = vmax.f32 %v9742_v14, 0.0  ;;  %v17829_v54 = vmax.f32 %v9984_v39, %v10110_v43  ;;  %v9944_v61 = vld [vmem:[#allocation2 + $0x69] sm:$0xff]  ;;  %v10028_v15 = vld [vmem:[#allocation2 + $0x72] sm:$0xff]  ;;  %v9985_v42 = vmax.f32 %v17769_v22, %v9943_v29 }
 0x815   : > { %v17827_v44 = vmax.f32 %v9983_v20, %v10109_v27  ;;  %v10027_v28 = vld [vmem:[#allocation2 + $0x6a] sm:$0xff]  ;;  %9865 = vst [vmem:[#allocation2 + $0x90] sm:$0xff] %v17821_v50  ;;  %v9783_v36 = vmax.f32 %v9741_v49, 0.0  ;;  %v14166_v57 = vpop.f32.mrb[70].mxu0  ;;  %v9986_v6 = vmax.f32 %v17763_v4, %v9944_v61  ;;  %v10070_v24 = vld [vmem:[#allocation2 + $0x73] sm:$0xff] }
 0x816   : > { %v10069_v12 = vld [vmem:[#allocation2 + $0x6b] sm:$0xff]  ;;  %v17835_v10 = vmul.f32 %v9784_v8, %v18963_v59  ;;  %v9744_v9 = vadd.f32 %v14166_v57, %v17708_v48  ;;  %v9567_v38 = vpop.f32.mrb[71].mxu0  ;;  %v10112_v5 = vmax.f32 %v10028_v15, %v10070_v24  ;;  %v18966_v29 = vld [vmem:[#allocation24_spill] sm:$0xff] }
 0x817   : > { %v14386_v62 = vpack.c.bf16 %v17829_v54, %v17827_v44  ;;  %v10111_v41 = vmax.f32 %v10027_v28, %v10069_v12  ;;  %v9945_v19 = vld [vmem:[#allocation2 + $0x71] sm:$0xff]  ;;  %v17841_v1 = vmul.f32 %v9783_v36, %v18964_v56  ;;  %v9743_v22 = vadd.f32 %v17708_v48, %v9567_v38 }
 0x818   : > { %9868 = vst [vmem:[#allocation2 + $0xa8] sm:$0xff] %v17835_v10  ;;  %v9786_v4 = vmax.f32 %v9744_v9, 0.0  ;;  %v9946_v16 = vld [vmem:[#allocation2 + $0x79] sm:$0xff]  ;;  %v10030_v21 = vld [vmem:[#allocation2 + $0x82] sm:$0xff]  ;;  %v17848_v52 = vmax.f32 %v9986_v6, %v10112_v5  ;;  %v9987_v40 = vmax.f32 %v17785_v58, %v9945_v19 }
 0x819   : > { %v17845_v7 = vmax.f32 %v9985_v42, %v10111_v41  ;;  %v10029_v25 = vld [vmem:[#allocation2 + $0x7a] sm:$0xff]  ;;  %9867 = vst [vmem:[#allocation2 + $0xa0] sm:$0xff] %v17841_v1  ;;  %v9785_v34 = vmax.f32 %v9743_v22, 0.0  ;;  %v14169_v46 = vpop.f32.mrb[72].mxu0  ;;  %v9988_v47 = vmax.f32 %v17781_v55, %v9946_v16  ;;  %v10072_v39 = vld [vmem:[#allocation2 + $0x83] sm:$0xff] }
 0x81a   : > { %v10071_v20 = vld [vmem:[#allocation2 + $0x7b] sm:$0xff]  ;;  %v17853_v37 = vmul.f32 %v9786_v4, %v18965_v3  ;;  %v9746_v18 = vadd.f32 %v14169_v46, %v17708_v48  ;;  %v9577_v14 = vpop.f32.mrb[73].mxu0  ;;  %v10114_v27 = vmax.f32 %v10030_v21, %v10072_v39  ;;  %v18968_v4 = vld [vmem:[#allocation26_spill] sm:$0xff] }
 0x81b   : > { %v10113_v33 = vmax.f32 %v10029_v25, %v10071_v20  ;;  %v9947_v43 = vld [vmem:[#allocation2 + $0x81] sm:$0xff]  ;;  %v17857_v31 = vmul.f32 %v9785_v34, %v18966_v29  ;;  %v9745_v49 = vadd.f32 %v17708_v48, %v9577_v14  ;;  %v14390_v58 = vpack.c.bf16 %v17848_v52, %v17845_v7 }
 0x81c   : > { %9870 = vst [vmem:[#allocation2 + $0xb8] sm:$0xff] %v17853_v37  ;;  %v9788_v55 = vmax.f32 %v9746_v18, 0.0  ;;  %v17865_v61 = vmax.f32 %v9988_v47, %v10114_v27  ;;  %v9948_v28 = vld [vmem:[#allocation2 + $0x89] sm:$0xff]  ;;  %v9989_v42 = vmax.f32 %v17805_v17, %v9947_v43  ;;  %v10032_v12 = vld [vmem:[#allocation2 + $0x92] sm:$0xff]  ;;  %v18967_v9 = vld [vmem:[#allocation25_spill] sm:$0xff] }
 0x81d   : > { %v17863_v8 = vmax.f32 %v9987_v40, %v10113_v33  ;;  %v10031_v15 = vld [vmem:[#allocation2 + $0x8a] sm:$0xff]  ;;  %9869 = vst [vmem:[#allocation2 + $0xb0] sm:$0xff] %v17857_v31  ;;  %v9787_v36 = vmax.f32 %v9745_v49, 0.0  ;;  %v14172_v57 = vpop.f32.mrb[74].mxu0  ;;  %v9990_v6 = vmax.f32 %v17799_v53, %v9948_v28  ;;  %v10074_v59 = vld [vmem:[#allocation2 + $0x93] sm:$0xff] }
 0x81e   : > { %v10073_v24 = vld [vmem:[#allocation2 + $0x8b] sm:$0xff]  ;;  %v17871_v38 = vmul.f32 %v9788_v55, %v18967_v9  ;;  %v9748_v41 = vadd.f32 %v14172_v57, %v17708_v48  ;;  %v9587_v19 = vpop.f32.mrb[75].mxu0  ;;  %v10116_v53 = vmax.f32 %v10032_v12, %v10074_v59 }
 0x81f   : > { %v9949_v56 = vld [vmem:[#allocation2 + $0x91] sm:$0xff]  ;;  %v14394_v22 = vpack.c.bf16 %v17865_v61, %v17863_v8  ;;  %v10115_v5 = vmax.f32 %v10031_v15, %v10073_v24  ;;  %v17877_v16 = vmul.f32 %v9787_v36, %v18968_v4  ;;  %v9747_v17 = vadd.f32 %v17708_v48, %v9587_v19 }
 0x820   : > { %9872 = vst [vmem:[#allocation2 + $0xc8] sm:$0xff] %v17871_v38  ;;  %v9790_v25 = vmax.f32 %v9748_v41, 0.0  ;;  %v9950_v21 = vld [vmem:[#allocation2 + $0x99] sm:$0xff]  ;;  %v10034_v46 = vld [vmem:[#allocation2 + $0xa2] sm:$0xff]  ;;  %v9991_v39 = vmax.f32 %v17821_v50, %v9949_v56  ;;  %v17886_v33 = vmax.f32 %v9990_v6, %v10116_v53  ;;  %v18969_v27 = vld [vmem:[#allocation27_spill] sm:$0xff] }
 0x821   : > { %v10033_v34 = vld [vmem:[#allocation2 + $0x9a] sm:$0xff]  ;;  %v17881_v40 = vmax.f32 %v9989_v42, %v10115_v5  ;;  %9871 = vst [vmem:[#allocation2 + $0xc0] sm:$0xff] %v17877_v16  ;;  %v9789_v47 = vmax.f32 %v9747_v17, 0.0  ;;  %v14175_v20 = vpop.f32.mrb[76].mxu0  ;;  %v9992_v3 = vmax.f32 %v17817_v60, %v9950_v21  ;;  %v10076_v14 = vld [vmem:[#allocation2 + $0xa3] sm:$0xff] }
 0x822   : > { %v10075_v18 = vld [vmem:[#allocation2 + $0x9b] sm:$0xff]  ;;  %v17889_v43 = vmul.f32 %v9790_v25, %v18969_v27  ;;  %v9750_v29 = vadd.f32 %v14175_v20, %v17708_v48  ;;  %v9597_v49 = vpop.f32.mrb[77].mxu0  ;;  %v10118_v28 = vmax.f32 %v10034_v46, %v10076_v14 }
 0x823   : > { %v10117_v55 = vmax.f32 %v10033_v34, %v10075_v18  ;;  %v9951_v15 = vld [vmem:[#allocation2 + $0xa1] sm:$0xff]  ;;  %v18970_v36 = vld [vmem:[#allocation28_spill] sm:$0xff]  ;;  %v9749_v50 = vadd.f32 %v17708_v48, %v9597_v49  ;;  %v14398_v60 = vpack.c.bf16 %v17886_v33, %v17881_v40 }
 0x824   : > { %v17893_v57 = vmul.f32 %v9789_v47, %v18970_v36  ;;  %9874 = vst [vmem:[#allocation2 + $0xd8] sm:$0xff] %v17889_v43  ;;  %v9792_v42 = vmax.f32 %v9750_v29, 0.0  ;;  %v10160_v12 = vmax.f32 %v9992_v3, %v10118_v28  ;;  %v9952_v24 = vld [vmem:[#allocation2 + $0xa9] sm:$0xff]  ;;  %v10036_v9 = vld [vmem:[#allocation2 + $0xb2] sm:$0xff]  ;;  %v9993_v56 = vmax.f32 %v17841_v1, %v9951_v15  ;;  %v18971_v53 = vld [vmem:[#allocation29_spill] sm:$0xff] }
 0x825   : > { %v10159_v6 = vmax.f32 %v9991_v39, %v10117_v55  ;;  %v10035_v59 = vld [vmem:[#allocation2 + $0xaa] sm:$0xff]  ;;  %v9791_v41 = vmax.f32 %v9749_v50, 0.0  ;;  %v14178_v19 = vpop.f32.mrb[78].mxu0  ;;  %v9994_v5 = vmax.f32 %v17835_v10, %v9952_v24  ;;  %v10078_v17 = vld [vmem:[#allocation2 + $0xb3] sm:$0xff] }
 0x826   : > { %9873 = vst [vmem:[#allocation2 + $0xd0] sm:$0xff] %v17893_v57  ;;  %v10077_v4 = vld [vmem:[#allocation2 + $0xab] sm:$0xff]  ;;  %v17903_v25 = vmul.f32 %v9792_v42, %v18971_v53  ;;  %v9752_v21 = vadd.f32 %v14178_v19, %v17708_v48  ;;  %v9607_v34 = vpop.f32.mrb[79].mxu0  ;;  %v10120_v14 = vmax.f32 %v10036_v9, %v10078_v17 }
 0x827   : > { %v14368_v46 = vpack.c.bf16 %v10160_v12, %v10159_v6  ;;  %v10119_v47 = vmax.f32 %v10035_v59, %v10077_v4  ;;  %v9953_v20 = vld [vmem:[#allocation2 + $0xb1] sm:$0xff]  ;;  %v18972_v39 = vld [vmem:[#allocation30_spill] sm:$0xff]  ;;  %v9751_v18 = vadd.f32 %v17708_v48, %v9607_v34 }
 0x828   : > { %v17907_v3 = vmul.f32 %v9791_v41, %v18972_v39  ;;  %9876 = vst [vmem:[#allocation2 + $0xe8] sm:$0xff] %v17903_v25  ;;  %v9794_v10 = vmax.f32 %v9752_v21, 0.0  ;;  %v9954_v27 = vld [vmem:[#allocation2 + $0xb9] sm:$0xff]  ;;  %v10038_v49 = vld [vmem:[#allocation2 + $0xc2] sm:$0xff]  ;;  %v10162_v15 = vmax.f32 %v9994_v5, %v10120_v14  ;;  %v9995_v36 = vmax.f32 %v17857_v31, %v9953_v20  ;;  %v18973_v12 = vld [vmem:[#allocation31_spill] sm:$0xff] }
 0x829   : > { %14369 = vmatprep.subr.bf16.mxu1 %v14368_v46  ;;  %v10161_v1 = vmax.f32 %v9993_v56, %v10119_v47  ;;  %v10037_v29 = vld [vmem:[#allocation2 + $0xba] sm:$0xff]  ;;  %v9793_v55 = vmax.f32 %v9751_v18, 0.0  ;;  %v14181_v28 = vpop.f32.mrb[80].mxu0  ;;  %v9996_v50 = vmax.f32 %v17853_v37, %v9954_v27  ;;  %v10080_v6 = vld [vmem:[#allocation2 + $0xc3] sm:$0xff] }
 0x82a   : > { %9875 = vst [vmem:[#allocation2 + $0xe0] sm:$0xff] %v17907_v3  ;;  %14371 = vmatpush3.bf16.msra.mxu1 %v14370_v30  ;;  %v10079_v42 = vld [vmem:[#allocation2 + $0xbb] sm:$0xff]  ;;  %v17918_v24 = vmul.f32 %v9794_v10, %v18973_v12  ;;  %v9754_v59 = vadd.f32 %v14181_v28, %v17708_v48  ;;  %v9617_v9 = vpop.f32.mrb[81].mxu0  ;;  %v10122_v19 = vmax.f32 %v10038_v49, %v10080_v6  ;;  %v18976_v28 = vld [vmem:[#allocation34_spill] sm:$0xff] }
 0x82b   : > { %v10121_v41 = vmax.f32 %v10037_v29, %v10079_v42  ;;  %v9955_v56 = vld [vmem:[#allocation2 + $0xc1] sm:$0xff]  ;;  %v18974_v4 = vld [vmem:[#allocation32_spill] sm:$0xff]  ;;  %v9753_v23 = vadd.f32 %v17708_v48, %v9617_v9  ;;  %v14372_v30 = vpack.c.bf16 %v10162_v15, %v10161_v1 }
 0x82c   : > { %v17922_v0 = vmul.f32 %v9793_v55, %v18974_v4  ;;  %9878 = vst [vmem:[#allocation2 + $0xf8] sm:$0xff] %v17918_v24  ;;  %v9796_v37 = vmax.f32 %v9754_v59, 0.0  ;;  %v10164_v5 = vmax.f32 %v9996_v50, %v10122_v19  ;;  %v9997_v47 = vmax.f32 %v17877_v16, %v9955_v56  ;;  %v18975_v14 = vld [vmem:[#allocation33_spill] sm:$0xff]  ;;  %v18977_v56 = vld [vmem:[#allocation35_spill] sm:$0xff] }
 0x82d   : > { %v10163_v31 = vmax.f32 %v9995_v36, %v10121_v41  ;;  %v9956_v17 = vld [vmem:[#allocation2 + $0xc9] sm:$0xff]  ;;  %v10040_v21 = vld [vmem:[#allocation2 + $0xd2] sm:$0xff]  ;;  %v9795_v34 = vmax.f32 %v9753_v23, 0.0  ;;  %14373 = vmatprep.subr.bf16.mxu1 %v14372_v30  ;;  %v14184_v46 = vpop.f32.mrb[82].mxu0 }
 0x82e   : > { %v10039_v53 = vld [vmem:[#allocation2 + $0xca] sm:$0xff]  ;;  %9877 = vst [vmem:[#allocation2 + $0xf0] sm:$0xff] %v17922_v0  ;;  %v9998_v20 = vmax.f32 %v17871_v38, %v9956_v17  ;;  %v10082_v18 = vld [vmem:[#allocation2 + $0xd3] sm:$0xff]  ;;  %v17930_v10 = vmul.f32 %v9796_v37, %v18975_v14  ;;  %14375 = vmatpush3.bf16.msra.mxu1 %v14374_v45  ;;  %v9756_v1 = vadd.f32 %v14184_v46, %v17708_v48  ;;  %v9627_v27 = vpop.f32.mrb[83].mxu0 }
 0x82f   : > { %v10081_v39 = vld [vmem:[#allocation2 + $0xcb] sm:$0xff]  ;;  %v14376_v29 = vpack.c.bf16 %v10164_v5, %v10163_v31  ;;  %v17937_v15 = vmul.f32 %v9795_v34, %v18976_v28  ;;  %v9755_v38 = vadd.f32 %v17708_v48, %v9627_v27  ;;  %v10124_v16 = vmax.f32 %v10040_v21, %v10082_v18  ;;  %v18978_v17 = vld [vmem:[#allocation36_spill] sm:$0xff]  ;;  %v18979_v27 = vld [vmem:[#allocation37_spill] sm:$0xff] }
 0x830   : > { %v10123_v49 = vmax.f32 %v10039_v53, %v10081_v39  ;;  %v9957_v55 = vld [vmem:[#allocation2 + $0xd1] sm:$0xff]  ;;  %9880 = vst [vmem:[#allocation2 + $0x108] sm:$0xff] %v17930_v10  ;;  %v9798_v36 = vmax.f32 %v9756_v1, 0.0 }
 0x831   : > { %14377 = vmatprep.subr.bf16.mxu1 %v14376_v29  ;;  %v9958_v42 = vld [vmem:[#allocation2 + $0xd9] sm:$0xff]  ;;  %v10042_v51 = vld [vmem:[#allocation2 + $0xe2] sm:$0xff]  ;;  %9879 = vst [vmem:[#allocation2 + $0x100] sm:$0xff] %v17937_v15  ;;  %v9797_v45 = vmax.f32 %v9755_v38, 0.0  ;;  %v14187_v6 = vpop.f32.mrb[84].mxu0  ;;  %v10166_v12 = vmax.f32 %v9998_v20, %v10124_v16  ;;  %v9999_v59 = vmax.f32 %v17893_v57, %v9957_v55 }
 0x832   : > { %v10165_v50 = vmax.f32 %v9997_v47, %v10123_v49  ;;  %v10041_v26 = vld [vmem:[#allocation2 + $0xda] sm:$0xff]  ;;  %v10000_v9 = vmax.f32 %v17889_v43, %v9958_v42  ;;  %v10084_v19 = vld [vmem:[#allocation2 + $0xe3] sm:$0xff]  ;;  %v17945_v4 = vmul.f32 %v9798_v36, %v18977_v56  ;;  %14379 = vmatpush3.bf16.msra.mxu1 %v14378_v13  ;;  %v9758_v23 = vadd.f32 %v14187_v6, %v17708_v48  ;;  %v9637_v30 = vpop.f32.mrb[85].mxu0 }
 0x833   : > { %v10083_v41 = vld [vmem:[#allocation2 + $0xdb] sm:$0xff]  ;;  %v10126_v31 = vmax.f32 %v10042_v51, %v10084_v19  ;;  %v17952_v53 = vmul.f32 %v9797_v45, %v18978_v17  ;;  %v9757_v43 = vadd.f32 %v17708_v48, %v9637_v30  ;;  %v18980_v36 = vld [vmem:[#allocation38_spill] sm:$0xff]  ;;  %v18981_v19 = vld [vmem:[#allocation39_spill] sm:$0xff] }
 0x834   : > { %v10125_v37 = vmax.f32 %v10041_v26, %v10083_v41  ;;  %v9959_v5 = vld [vmem:[#allocation2 + $0xe1] sm:$0xff]  ;;  %v14380_v57 = vpack.c.bf16 %v10166_v12, %v10165_v50  ;;  %9882 = vst [vmem:[#allocation2 + $0x118] sm:$0xff] %v17945_v4  ;;  %v9800_v21 = vmax.f32 %v9758_v23, 0.0  ;;  %v18982_v17 = vld [vmem:[#allocation40_spill] sm:$0xff] }
 0x835   : > { %v10168_v46 = vmax.f32 %v10000_v9, %v10126_v31  ;;  %v9960_v47 = vld [vmem:[#allocation2 + $0xe9] sm:$0xff]  ;;  %v10044_v63 = vld [vmem:[#allocation2 + $0xf2] sm:$0xff]  ;;  %9881 = vst [vmem:[#allocation2 + $0x110] sm:$0xff] %v17952_v53  ;;  %v9799_v13 = vmax.f32 %v9757_v43, 0.0  ;;  %v14190_v20 = vpop.f32.mrb[86].mxu0  ;;  %v10001_v39 = vmax.f32 %v17907_v3, %v9959_v5 }
 0x836   : > { %v10167_v34 = vmax.f32 %v9999_v59, %v10125_v37  ;;  %v10043_v2 = vld [vmem:[#allocation2 + $0xea] sm:$0xff]  ;;  %14381 = vmatprep.subr.bf16.mxu1 %v14380_v57  ;;  %v10002_v18 = vmax.f32 %v17903_v25, %v9960_v47  ;;  %v10086_v1 = vld [vmem:[#allocation2 + $0xf3] sm:$0xff]  ;;  %v17960_v29 = vmul.f32 %v9800_v21, %v18979_v27  ;;  %v9760_v49 = vadd.f32 %v14190_v20, %v17708_v48  ;;  %v9647_v55 = vpop.f32.mrb[87].mxu0 }
 0x837   : > { %v10085_v14 = vld [vmem:[#allocation2 + $0xeb] sm:$0xff]  ;;  %14383 = vmatpush3.bf16.msra.mxu1 %v14382_v11  ;;  %v17967_v50 = vmul.f32 %v9799_v13, %v18980_v36  ;;  %v9759_v25 = vadd.f32 %v17708_v48, %v9647_v55  ;;  %v10128_v3 = vmax.f32 %v10044_v63, %v10086_v1 }
 0x838   : > { %v14384_v28 = vpack.c.bf16 %v10168_v46, %v10167_v34  ;;  %v10127_v38 = vmax.f32 %v10043_v2, %v10085_v14  ;;  %v9961_v16 = vld [vmem:[#allocation2 + $0xf1] sm:$0xff]  ;;  %9884 = vst [vmem:[#allocation2 + $0x128] sm:$0xff] %v17960_v29  ;;  %v9802_v42 = vmax.f32 %v9760_v49, 0.0  ;;  %v9962_v51 = vld [vmem:[#allocation2 + $0xf9] sm:$0xff]  ;;  %v10046_v35 = vld [vmem:[#allocation2 + $0x102] sm:$0xff] }
 0x839   : > { %v10045_v32 = vld [vmem:[#allocation2 + $0xfa] sm:$0xff]  ;;  %9883 = vst [vmem:[#allocation2 + $0x120] sm:$0xff] %v17967_v50  ;;  %v9801_v11 = vmax.f32 %v9759_v25, 0.0  ;;  %v14193_v45 = vpop.f32.mrb[88].mxu0  ;;  %v10170_v6 = vmax.f32 %v10002_v18, %v10128_v3  ;;  %v10003_v12 = vmax.f32 %v17922_v0, %v9961_v16  ;;  %v10004_v59 = vmax.f32 %v17918_v24, %v9962_v51  ;;  %v10088_v41 = vld [vmem:[#allocation2 + $0x103] sm:$0xff]  ;;  %v18984_v55 = vld [vmem:[#allocation43_spill] sm:$0xff] }
 0x83a   : > { %14385 = vmatprep.subr.bf16.mxu1 %v14384_v28  ;;  %v10169_v26 = vmax.f32 %v10001_v39, %v10127_v38  ;;  %v10087_v9 = vld [vmem:[#allocation2 + $0xfb] sm:$0xff]  ;;  %v17975_v56 = vmul.f32 %v9802_v42, %v18981_v19  ;;  %v9762_v23 = vadd.f32 %v14193_v45, %v17708_v48  ;;  %v9657_v30 = vpop.f32.mrb[89].mxu0  ;;  %v10130_v31 = vmax.f32 %v10046_v35, %v10088_v41  ;;  %v18983_v39 = vld [vmem:[#allocation42_spill] sm:$0xff] }
 0x83b   : > { %14387 = vmatpush3.bf16.msra.mxu1 %v14386_v62  ;;  %v10129_v37 = vmax.f32 %v10045_v32, %v10087_v9  ;;  %v9963_v5 = vld [vmem:[#allocation2 + $0x101] sm:$0xff]  ;;  %v17982_v43 = vmul.f32 %v9801_v11, %v18982_v17  ;;  %v9761_v24 = vadd.f32 %v17708_v48, %v9657_v30 }
 0x83c   : > { %v14388_v0 = vpack.c.bf16 %v10170_v6, %v10169_v26  ;;  %9886 = vst [vmem:[#allocation2 + $0x138] sm:$0xff] %v17975_v56  ;;  %v9804_v57 = vmax.f32 %v9762_v23, 0.0  ;;  %v10172_v34 = vmax.f32 %v10004_v59, %v10130_v31  ;;  %v9964_v46 = vld [vmem:[#allocation2 + $0x109] sm:$0xff]  ;;  %v10048_v54 = vld [vmem:[#allocation2 + $0x112] sm:$0xff]  ;;  %v10005_v2 = vmax.f32 %v17937_v15, %v9963_v5 }
 0x83d   : > { %v10171_v21 = vmax.f32 %v10003_v12, %v10129_v37  ;;  %v10047_v44 = vld [vmem:[#allocation2 + $0x10a] sm:$0xff]  ;;  %9885 = vst [vmem:[#allocation2 + $0x130] sm:$0xff] %v17982_v43  ;;  %v9803_v62 = vmax.f32 %v9761_v24, 0.0  ;;  %v14196_v47 = vpop.f32.mrb[90].mxu0  ;;  %v10006_v63 = vmax.f32 %v17930_v10, %v9964_v46  ;;  %v10090_v20 = vld [vmem:[#allocation2 + $0x113] sm:$0xff]  ;;  %v15366_v24 = vmov 0.0|0.0  }
 0x83e   : > { %14389 = vmatprep.subr.bf16.mxu1 %v14388_v0  ;;  %v10089_v13 = vld [vmem:[#allocation2 + $0x10b] sm:$0xff]  ;;  %v17990_v18 = vmul.f32 %v9804_v57, %v18983_v39  ;;  %v9764_v14 = vadd.f32 %v14196_v47, %v17708_v48  ;;  %v9667_v1 = vpop.f32.mrb[91].mxu0  ;;  %v10132_v10 = vmax.f32 %v10048_v54, %v10090_v20  ;;  %v10058_v57 = vld [vmem:[#allocation2 + $0x162] sm:$0xff] }
 0x83f   : > { %14391 = vmatpush3.bf16.msra.mxu1 %v14390_v58  ;;  %v14392_v27 = vpack.c.bf16 %v10172_v34, %v10171_v21  ;;  %v10131_v49 = vmax.f32 %v10047_v44, %v10089_v13  ;;  %v17997_v28 = vmul.f32 %v9803_v62, %v18984_v55  ;;  %v9763_v15 = vadd.f32 %v17708_v48, %v9667_v1  ;;  %v9965_v38 = vld [vmem:[#allocation2 + $0x111] sm:$0xff]  ;;  %v18985_v32 = vld [vmem:[#allocation46_spill] sm:$0xff]  ;;  %v18025_v1 = vld [vmem:[#allocation2] sm:$0xff] }
 0x840   : > { %9888 = vst [vmem:[#allocation2 + $0x148] sm:$0xff] %v17990_v18  ;;  %v9806_v16 = vmax.f32 %v9764_v14, 0.0  ;;  %v9966_v25 = vld [vmem:[#allocation2 + $0x119] sm:$0xff]  ;;  %v10050_v52 = vld [vmem:[#allocation2 + $0x122] sm:$0xff]  ;;  %v10174_v3 = vmax.f32 %v10006_v63, %v10132_v10  ;;  %v10007_v35 = vmax.f32 %v17952_v53, %v9965_v38  ;;  %v18986_v6 = vld [vmem:[#allocation47_spill] sm:$0xff] }
 0x841   : > { %14393 = vmatprep.subr.bf16.mxu1 %v14392_v27  ;;  %v10173_v36 = vmax.f32 %v10005_v2, %v10131_v49  ;;  %v10049_v7 = vld [vmem:[#allocation2 + $0x11a] sm:$0xff]  ;;  %9887 = vst [vmem:[#allocation2 + $0x140] sm:$0xff] %v17997_v28  ;;  %v9805_v58 = vmax.f32 %v9763_v15, 0.0  ;;  %v10008_v42 = vmax.f32 %v17945_v4, %v9966_v25  ;;  %v10092_v51 = vld [vmem:[#allocation2 + $0x123] sm:$0xff] }
 0x842   : > { %v10091_v26 = vld [vmem:[#allocation2 + $0x11b] sm:$0xff]  ;;  %v18004_v48 = vmul.f32 %v9806_v16, %v18985_v32  ;;  %v10134_v45 = vmax.f32 %v10050_v52, %v10092_v51 }
 0x843   : > { %14395 = vmatpush3.bf16.msra.mxu1 %v14394_v22  ;;  %v10133_v11 = vmax.f32 %v10049_v7, %v10091_v26  ;;  %v18011_v12 = vmul.f32 %v9805_v58, %v18986_v6  ;;  %v14396_v59 = vpack.c.bf16 %v10174_v3, %v10173_v36  ;;  %v9967_v9 = vld [vmem:[#allocation2 + $0x121] sm:$0xff] }
 0x844   : > { %9890 = vst [vmem:[#allocation2 + $0x158] sm:$0xff] %v18004_v48  ;;  %v10176_v41 = vmax.f32 %v10008_v42, %v10134_v45  ;;  %v9968_v19 = vld [vmem:[#allocation2 + $0x129] sm:$0xff]  ;;  %v10052_v30 = vld [vmem:[#allocation2 + $0x132] sm:$0xff]  ;;  %v10185_v53 = vld [vmem:[%s18692_s2] sm:$0xff]  ;;  %v10009_v31 = vmax.f32 %v17967_v50, %v9967_v9 }
 0x845   : > { %v10175_v4 = vmax.f32 %v10007_v35, %v10133_v11  ;;  %v10051_v23 = vld [vmem:[#allocation2 + $0x12a] sm:$0xff]  ;;  %9889 = vst [vmem:[#allocation2 + $0x150] sm:$0xff] %v18011_v12  ;;  %14397 = vmatprep.subr.bf16.mxu1 %v14396_v59  ;;  %v10010_v8 = vmax.f32 %v17960_v29, %v9968_v19  ;;  %v10094_v22 = vld [vmem:[#allocation2 + $0x133] sm:$0xff]  ;;  %v10364_v6 = vld [vmem:[%s18693_s3 + $0x100] sm:$0xff] }
 0x846   : > { %v10093_v61 = vld [vmem:[#allocation2 + $0x12b] sm:$0xff]  ;;  %v10136_v17 = vmax.f32 %v10052_v30, %v10094_v22  ;;  %v10100_v29 = vld [vmem:[#allocation2 + $0x163] sm:$0xff]  ;;  %v10371_v9 = vld [vmem:[%s18693_s3 + $0x138] sm:$0xff] }
 0x847   : > { %14399 = vmatpush3.bf16.msra.mxu1 %v14398_v60  ;;  %v14401_v37 = vpack.c.bf16 %v10176_v41, %v10175_v4  ;;  %v10135_v5 = vmax.f32 %v10051_v23, %v10093_v61  ;;  %v9969_v0 = vld [vmem:[#allocation2 + $0x131] sm:$0xff]  ;;  %v10142_v14 = vmax.f32 %v10058_v57, %v10100_v29  ;;  %v10369_v59 = vld [vmem:[%s18693_s3 + $0x128] sm:$0xff]  ;;  %v10368_v23 = vld [vmem:[%s18693_s3 + $0x120] sm:$0xff] }
 0x848   : > { %14400 = vmatprep.subr.bf16.mxu1 %v15366_v24  ;;  %v10178_v34 = vmax.f32 %v10010_v8, %v10136_v17  ;;  %v9970_v46 = vld [vmem:[#allocation2 + $0x139] sm:$0xff]  ;;  %v10054_v40 = vld [vmem:[#allocation2 + $0x142] sm:$0xff]  ;;  %v10011_v50 = vmax.f32 %v17982_v43, %v9969_v0  ;;  %v10187_v4 = vld [vmem:[%s18692_s2 + $0x10] sm:$0xff]  ;;  %v14419_v19 = vpack.c.bf16 %v10371_v9, %v10369_v59 }
 0x849   : > { %v10177_v21 = vmax.f32 %v10009_v31, %v10135_v5  ;;  %v10053_v44 = vld [vmem:[#allocation2 + $0x13a] sm:$0xff]  ;;  %v10012_v33 = vmax.f32 %v17975_v56, %v9970_v46  ;;  %v10096_v54 = vld [vmem:[#allocation2 + $0x143] sm:$0xff]  ;;  %v10370_v30 = vld [vmem:[%s18693_s3 + $0x130] sm:$0xff] }
 0x84a   : > { %10257 = vmatmul.mubr.f32.vlgmr.msra.gmra.mrb[42].mxu1 %v10185_v53  ;;  %v10095_v60 = vld [vmem:[#allocation2 + $0x13b] sm:$0xff]  ;;  %v10138_v2 = vmax.f32 %v10054_v40, %v10096_v54  ;;  %v10373_v8 = vld [vmem:[%s18693_s3 + $0x148] sm:$0xff]  ;;  %v14421_v22 = vpack.c.bf16 %v10370_v30, %v10368_v23  ;;  %v10374_v31 = vld [vmem:[%s18693_s3 + $0x150] sm:$0xff] }
 0x84b   : > { %14402 = vmatpush3.bf16.msra.mxu1 %v14401_v37  ;;  %v14404_v62 = vpack.c.bf16 %v10178_v34, %v10177_v21  ;;  %v10137_v47 = vmax.f32 %v10053_v44, %v10095_v60  ;;  %v9971_v63 = vld [vmem:[#allocation2 + $0x141] sm:$0xff]  ;;  %v9974_v13 = vld [vmem:[#allocation2 + $0x159] sm:$0xff]  ;;  %14217 = vmatprep.mubr.msk.f32.mxu1 %vm15367_vm3, %v18025_v1  ;;  %v10378_v29 = vld [vmem:[%s18693_s3 + $0x170] sm:$0xff] }
 0x84c   : > { %14403 = vmatprep.subr.bf16.mxu1 %v15366_v24  ;;  %v10057_v20 = vld [vmem:[#allocation2 + $0x15a] sm:$0xff]  ;;  %v10180_v27 = vmax.f32 %v10012_v33, %v10138_v2  ;;  %v9972_v49 = vld [vmem:[#allocation2 + $0x149] sm:$0xff]  ;;  %v10056_v15 = vld [vmem:[#allocation2 + $0x152] sm:$0xff]  ;;  %v10016_v43 = vmax.f32 %v18004_v48, %v9974_v13  ;;  %v10013_v38 = vmax.f32 %v17997_v28, %v9971_v63 }
 0x84d   : > { %v10099_v39 = vld [vmem:[#allocation2 + $0x15b] sm:$0xff]  ;;  %v10179_v56 = vmax.f32 %v10011_v50, %v10137_v47  ;;  %v10055_v55 = vld [vmem:[#allocation2 + $0x14a] sm:$0xff]  ;;  %v10014_v16 = vmax.f32 %v17990_v18, %v9972_v49  ;;  %v10098_v25 = vld [vmem:[#allocation2 + $0x153] sm:$0xff] }
 0x84e   : > { %v10141_v10 = vmax.f32 %v10057_v20, %v10099_v39  ;;  %v10097_v36 = vld [vmem:[#allocation2 + $0x14b] sm:$0xff]  ;;  %v10140_v3 = vmax.f32 %v10056_v15, %v10098_v25  ;;  %v10184_v26 = vmax.f32 %v10016_v43, %v10142_v14  ;;  %v10367_v28 = vld [vmem:[%s18693_s3 + $0x118] sm:$0xff]  ;;  %v10372_v37 = vld [vmem:[%s18693_s3 + $0x140] sm:$0xff] }
 0x84f   : > { %v9973_v7 = vld [vmem:[#allocation2 + $0x151] sm:$0xff]  ;;  %14405 = vmatpush3.bf16.msra.mxu1 %v14404_v62  ;;  %v14407_v52 = vpack.c.bf16 %v10180_v27, %v10179_v56  ;;  %v10139_v58 = vmax.f32 %v10055_v55, %v10097_v36  ;;  %v10365_v18 = vld [vmem:[%s18693_s3 + $0x108] sm:$0xff]  ;;  %v10376_v57 = vld [vmem:[%s18693_s3 + $0x160] sm:$0xff] }
 0x850   : > { %v10015_v42 = vmax.f32 %v18011_v12, %v9973_v7  ;;  %14406 = vmatprep.subr.bf16.mxu1 %v15366_v24  ;;  %v10182_v32 = vmax.f32 %v10014_v16, %v10140_v3  ;;  %v14415_v45 = vpack.c.bf16 %v10367_v28, %v10365_v18  ;;  %v10366_v12 = vld [vmem:[%s18693_s3 + $0x110] sm:$0xff]  ;;  %v10375_v61 = vld [vmem:[%s18693_s3 + $0x158] sm:$0xff]  ;;  %v10377_v5 = vld [vmem:[%s18693_s3 + $0x168] sm:$0xff]  ;;  %v14429_v46 = vpack.c.bf16 %v10378_v29, %v10376_v57 }
 0x851   : > { %v10181_v51 = vmax.f32 %v10013_v38, %v10139_v58  ;;  %v14417_v41 = vpack.c.bf16 %v10366_v12, %v10364_v6  ;;  %v14423_v53 = vpack.c.bf16 %v10375_v61, %v10373_v8  ;;  %v10379_v17 = vld [vmem:[%s18693_s3 + $0x178] sm:$0xff]  ;;  %v10381_v21 = vld [vmem:[%s18693_s3 + $0x188] sm:$0xff]  ;;  %v10380_v40 = vld [vmem:[%s18693_s3 + $0x180] sm:$0xff] }
 0x852   : > { %v10183_v35 = vmax.f32 %v10015_v42, %v10141_v10  ;;  %v14427_v0 = vpack.c.bf16 %v10379_v17, %v10377_v5  ;;  %v10383_v34 = vld [vmem:[%s18693_s3 + $0x198] sm:$0xff]  ;;  %v10382_v33 = vld [vmem:[%s18693_s3 + $0x190] sm:$0xff]  ;;  %v10385_v60 = vld [vmem:[%s18693_s3 + $0x1a8] sm:$0xff] }
 0x853   : > { %14408 = vmatpush3.bf16.msra.mxu1 %v14407_v52  ;;  %v14410_v48 = vpack.c.bf16 %v10182_v32, %v10181_v51  ;;  %v14431_v44 = vpack.c.bf16 %v10383_v34, %v10381_v21  ;;  %v10387_v54 = vld [vmem:[%s18693_s3 + $0x1b8] sm:$0xff]  ;;  %v14433_v62 = vpack.c.bf16 %v10382_v33, %v10380_v40  ;;  %v10384_v47 = vld [vmem:[%s18693_s3 + $0x1a0] sm:$0xff]  ;;  %v10386_v2 = vld [vmem:[%s18693_s3 + $0x1b0] sm:$0xff] }
 0x854   : > { %v14413_v11 = vpack.c.bf16 %v10184_v26, %v10183_v35  ;;  %14409 = vmatprep.subr.bf16.mxu1 %v15366_v24  ;;  %v14435_v50 = vpack.c.bf16 %v10387_v54, %v10385_v60  ;;  %v10389_v63 = vld [vmem:[%s18693_s3 + $0x1c8] sm:$0xff]  ;;  %v10391_v13 = vld [vmem:[%s18693_s3 + $0x1d8] sm:$0xff]  ;;  %v14437_v20 = vpack.c.bf16 %v10386_v2, %v10384_v47  ;;  %v10388_v14 = vld [vmem:[%s18693_s3 + $0x1c0] sm:$0xff] }
 0x855   : > { %v14439_v39 = vpack.c.bf16 %v10391_v13, %v10389_v63  ;;  %v10390_v56 = vld [vmem:[%s18693_s3 + $0x1d0] sm:$0xff]  ;;  %v10393_v49 = vld [vmem:[%s18693_s3 + $0x1e8] sm:$0xff]  ;;  %v10395_v55 = vld [vmem:[%s18693_s3 + $0x1f8] sm:$0xff] }
 0x856   : > { %v14441_v27 = vpack.c.bf16 %v10390_v56, %v10388_v14  ;;  %v10392_v15 = vld [vmem:[%s18693_s3 + $0x1e0] sm:$0xff]  ;;  %v14443_v43 = vpack.c.bf16 %v10395_v55, %v10393_v49  ;;  %v10394_v10 = vld [vmem:[%s18693_s3 + $0x1f0] sm:$0xff]  ;;  %v10333_v38 = vld [vmem:[%s18693_s3 + $0x8] sm:$0xff] }
 0x857   : > { %14411 = vmatpush3.bf16.msra.mxu1 %v14410_v48  ;;  %v10335_v16 = vld [vmem:[%s18693_s3 + $0x18] sm:$0xff]  ;;  %v14445_v36 = vpack.c.bf16 %v10394_v10, %v10392_v15  ;;  %v10666_v7 = vld [vmem:[%s18693_s3 + $0x308] sm:$0xff]  ;;  %v10665_v58 = vld [vmem:[%s18693_s3 + $0x300] sm:$0xff] }
 0x858   : > { %14412 = vmatprep.subr.bf16.mxu1 %v15366_v24  ;;  %v14425_v24 = vpack.c.bf16 %v10374_v31, %v10372_v37  ;;  %v14447_v25 = vpack.c.bf16 %v10335_v16, %v10333_v38  ;;  %v10668_v52 = vld [vmem:[%s18693_s3 + $0x318] sm:$0xff]  ;;  %v10667_v42 = vld [vmem:[%s18693_s3 + $0x310] sm:$0xff]  ;;  %v10670_v26 = vld [vmem:[%s18693_s3 + $0x328] sm:$0xff] }
 0x859   : > { %v14511_v3 = vpack.c.bf16 %v10668_v52, %v10666_v7  ;;  %v10672_v51 = vld [vmem:[%s18693_s3 + $0x338] sm:$0xff]  ;;  %v14513_v32 = vpack.c.bf16 %v10667_v42, %v10665_v58  ;;  %v10669_v48 = vld [vmem:[%s18693_s3 + $0x320] sm:$0xff]  ;;  %v10674_v18 = vld [vmem:[%s18693_s3 + $0x348] sm:$0xff] }
 0x85a   : > { %v14515_v35 = vpack.c.bf16 %v10672_v51, %v10670_v26  ;;  %v10676_v28 = vld [vmem:[%s18693_s3 + $0x358] sm:$0xff]  ;;  %v10673_v12 = vld [vmem:[%s18693_s3 + $0x340] sm:$0xff]  ;;  %v10675_v59 = vld [vmem:[%s18693_s3 + $0x350] sm:$0xff] }
 0x85b   : > { %14414 = vmatpush3.bf16.msra.mxu1 %v14413_v11  ;;  %v10671_v11 = vld [vmem:[%s18693_s3 + $0x330] sm:$0xff]  ;;  %14512 = vmatprep.subr.bf16.mxu0 %v14511_v3  ;;  %v14519_v6 = vpack.c.bf16 %v10676_v28, %v10674_v18  ;;  %v10678_v9 = vld [vmem:[%s18693_s3 + $0x368] sm:$0xff]  ;;  %v10677_v23 = vld [vmem:[%s18693_s3 + $0x360] sm:$0xff] }
 0x85c   : > { %14416 = vmatprep.subr.bf16.mxu1 %v14415_v45  ;;  %14514 = vmatpush1.bf16.msra.mxu0 %v14513_v32  ;;  %v14517_v45 = vpack.c.bf16 %v10671_v11, %v10669_v48  ;;  %v10679_v30 = vld [vmem:[%s18693_s3 + $0x370] sm:$0xff]  ;;  %v10682_v8 = vld [vmem:[%s18693_s3 + $0x388] sm:$0xff]  ;;  %v10684_v61 = vld [vmem:[%s18693_s3 + $0x398] sm:$0xff] }
 0x85d   : > { %14516 = vmatprep.subr.bf16.mxu0 %v14515_v35  ;;  %v10681_v37 = vld [vmem:[%s18693_s3 + $0x380] sm:$0xff]  ;;  %v10683_v31 = vld [vmem:[%s18693_s3 + $0x390] sm:$0xff]  ;;  %v10686_v5 = vld [vmem:[%s18693_s3 + $0x3a8] sm:$0xff] }
 0x85e   : > { %14218 = vmatmul.mubr.msk.f32.vlgmr.msra.gmra.mrb[44].mxu1 %vm10188_vm4, %v10187_v4  ;;  %v10680_v4 = vld [vmem:[%s18693_s3 + $0x378] sm:$0xff]  ;;  %v10685_v57 = vld [vmem:[%s18693_s3 + $0x3a0] sm:$0xff]  ;;  %v10687_v29 = vld [vmem:[%s18693_s3 + $0x3b0] sm:$0xff] }
 0x85f   : > { %14418 = vmatpush1.bf16.msra.mxu1 %v14417_v41  ;;  %10463 = vmatprep.mubr.f32.mxu1 %v18025_v1  ;;  %v14521_v41 = vpack.c.bf16 %v10675_v59, %v10673_v12  ;;  %v10688_v17 = vld [vmem:[%s18693_s3 + $0x3b8] sm:$0xff]  ;;  %v10690_v21 = vld [vmem:[%s18693_s3 + $0x3c8] sm:$0xff]  ;;  %v10689_v40 = vld [vmem:[%s18693_s3 + $0x3c0] sm:$0xff] }
 0x860   : > { %14420 = vmatprep.subr.bf16.mxu1 %v14419_v19  ;;  %14518 = vmatpush1.bf16.msra.mxu0 %v14517_v45  ;;  %v14523_v19 = vpack.c.bf16 %v10680_v4, %v10678_v9  ;;  %v10692_v34 = vld [vmem:[%s18693_s3 + $0x3d8] sm:$0xff]  ;;  %v10691_v33 = vld [vmem:[%s18693_s3 + $0x3d0] sm:$0xff]  ;;  %v10694_v60 = vld [vmem:[%s18693_s3 + $0x3e8] sm:$0xff] }
 0x861   : > { %14520 = vmatprep.subr.bf16.mxu0 %v14519_v6  ;;  %v10696_v54 = vld [vmem:[%s18693_s3 + $0x3f8] sm:$0xff]  ;;  %v10332_v13 = vld [vmem:[%s18693_s3] sm:$0xff]  ;;  %v10337_v14 = vld [vmem:[%s18693_s3 + $0x28] sm:$0xff] }
 0x862   : > { %v10339_v56 = vld [vmem:[%s18693_s3 + $0x38] sm:$0xff]  ;;  %v10336_v10 = vld [vmem:[%s18693_s3 + $0x20] sm:$0xff]  ;;  %v10338_v38 = vld [vmem:[%s18693_s3 + $0x30] sm:$0xff] }
 0x863   : > { %14422 = vmatpush1.bf16.msra.mxu1 %v14421_v22  ;;  %v14525_v22 = vpack.c.bf16 %v10679_v30, %v10677_v23  ;;  %v10341_v16 = vld [vmem:[%s18693_s3 + $0x48] sm:$0xff]  ;;  %v10340_v52 = vld [vmem:[%s18693_s3 + $0x40] sm:$0xff]  ;;  %v10342_v58 = vld [vmem:[%s18693_s3 + $0x50] sm:$0xff] }
 0x864   : > { %14424 = vmatprep.subr.bf16.mxu1 %v14423_v53  ;;  %14522 = vmatpush1.bf16.msra.mxu0 %v14521_v41  ;;  %v14527_v53 = vpack.c.bf16 %v10684_v61, %v10682_v8  ;;  %v10345_v3 = vld [vmem:[%s18693_s3 + $0x68] sm:$0xff]  ;;  %v10347_v42 = vld [vmem:[%s18693_s3 + $0x78] sm:$0xff]  ;;  %v14457_v26 = vpack.c.bf16 %v10342_v58, %v10340_v52  ;;  %v10344_v32 = vld [vmem:[%s18693_s3 + $0x60] sm:$0xff] }
 0x865   : > { %14524 = vmatprep.subr.bf16.mxu0 %v14523_v19  ;;  %v14459_v51 = vpack.c.bf16 %v10347_v42, %v10345_v3  ;;  %v10346_v35 = vld [vmem:[%s18693_s3 + $0x70] sm:$0xff]  ;;  %v10349_v48 = vld [vmem:[%s18693_s3 + $0x88] sm:$0xff]  ;;  %v10351_v11 = vld [vmem:[%s18693_s3 + $0x98] sm:$0xff] }
 0x866   : > { %v14461_v18 = vpack.c.bf16 %v10346_v35, %v10344_v32  ;;  %v14463_v28 = vpack.c.bf16 %v10351_v11, %v10349_v48  ;;  %v10348_v45 = vld [vmem:[%s18693_s3 + $0x80] sm:$0xff]  ;;  %v10350_v6 = vld [vmem:[%s18693_s3 + $0x90] sm:$0xff]  ;;  %v10353_v12 = vld [vmem:[%s18693_s3 + $0xa8] sm:$0xff] }
 0x867   : > { %14426 = vmatpush1.bf16.msra.mxu1 %v14425_v24  ;;  %v14529_v24 = vpack.c.bf16 %v10683_v31, %v10681_v37  ;;  %v10355_v59 = vld [vmem:[%s18693_s3 + $0xb8] sm:$0xff]  ;;  %v14465_v9 = vpack.c.bf16 %v10350_v6, %v10348_v45  ;;  %v10352_v41 = vld [vmem:[%s18693_s3 + $0xa0] sm:$0xff]  ;;  %v10354_v19 = vld [vmem:[%s18693_s3 + $0xb0] sm:$0xff] }
 0x868   : > { %14428 = vmatprep.subr.bf16.mxu1 %v14427_v0  ;;  %14526 = vmatpush1.bf16.msra.mxu0 %v14525_v22  ;;  %v14531_v0 = vpack.c.bf16 %v10688_v17, %v10686_v5  ;;  %v14467_v4 = vpack.c.bf16 %v10355_v59, %v10353_v12  ;;  %v10357_v23 = vld [vmem:[%s18693_s3 + $0xc8] sm:$0xff]  ;;  %v10359_v30 = vld [vmem:[%s18693_s3 + $0xd8] sm:$0xff]  ;;  %v14469_v8 = vpack.c.bf16 %v10354_v19, %v10352_v41  ;;  %v10356_v22 = vld [vmem:[%s18693_s3 + $0xc0] sm:$0xff] }
 0x869   : > { %14528 = vmatprep.subr.bf16.mxu0 %v14527_v53  ;;  %v14471_v61 = vpack.c.bf16 %v10359_v30, %v10357_v23  ;;  %v10358_v53 = vld [vmem:[%s18693_s3 + $0xd0] sm:$0xff]  ;;  %v10361_v37 = vld [vmem:[%s18693_s3 + $0xe8] sm:$0xff]  ;;  %v10363_v31 = vld [vmem:[%s18693_s3 + $0xf8] sm:$0xff] }
 0x86a   : > { %v14473_v5 = vpack.c.bf16 %v10358_v53, %v10356_v22  ;;  %v14475_v17 = vpack.c.bf16 %v10363_v31, %v10361_v37  ;;  %v10564_v52 = vld [vmem:[%s18693_s3 + $0x2b8] sm:$0xff]  ;;  %v10561_v42 = vld [vmem:[%s18693_s3 + $0x2a0] sm:$0xff]  ;;  %v10695_v23 = vld [vmem:[%s18693_s3 + $0x3f0] sm:$0xff] }
 0x86b   : > { %14430 = vmatpush1.bf16.msra.mxu1 %v14429_v46  ;;  %v14533_v46 = vpack.c.bf16 %v10687_v29, %v10685_v57  ;;  %v10542_v57 = vld [vmem:[%s18693_s3 + $0x208] sm:$0xff]  ;;  %v10544_v29 = vld [vmem:[%s18693_s3 + $0x218] sm:$0xff]  ;;  %v10565_v11 = vld [vmem:[%s18693_s3 + $0x2c0] sm:$0xff] }
 0x86c   : > { %14432 = vmatprep.subr.bf16.mxu1 %v14431_v44  ;;  %14530 = vmatpush1.bf16.msra.mxu0 %v14529_v24  ;;  %v14535_v44 = vpack.c.bf16 %v10692_v34, %v10690_v21  ;;  %v10360_v24 = vld [vmem:[%s18693_s3 + $0xe0] sm:$0xff]  ;;  %v14479_v34 = vpack.c.bf16 %v10544_v29, %v10542_v57  ;;  %v10568_v32 = vld [vmem:[%s18693_s3 + $0x2d8] sm:$0xff]  ;;  %v10699_v53 = vld [vmem:[%s18693_s3 + $0x410] sm:$0xff] }
 0x86d   : > { %14532 = vmatprep.subr.bf16.mxu0 %v14531_v0  ;;  %v10362_v0 = vld [vmem:[%s18693_s3 + $0xf0] sm:$0xff]  ;;  %v10572_v45 = vld [vmem:[%s18693_s3 + $0x2f8] sm:$0xff]  ;;  %v10569_v59 = vld [vmem:[%s18693_s3 + $0x2e0] sm:$0xff] }
 0x86e   : > { %v14477_v21 = vpack.c.bf16 %v10362_v0, %v10360_v24  ;;  %v10693_v19 = vld [vmem:[%s18693_s3 + $0x3e0] sm:$0xff]  ;;  %v10791_v31 = vld [vmem:[%s18693_s3 + $0x428] sm:$0xff]  ;;  %v10651_v24 = vlaneseq }
 0x86f   : > { %14434 = vmatpush1.bf16.msra.mxu1 %v14433_v62  ;;  %v14537_v62 = vpack.c.bf16 %v10691_v33, %v10689_v40  ;;  %v10546_v40 = vld [vmem:[%s18693_s3 + $0x228] sm:$0xff]  ;;  %v10548_v33 = vld [vmem:[%s18693_s3 + $0x238] sm:$0xff]  ;;  %v14541_v30 = vpack.c.bf16 %v10695_v23, %v10693_v19 }
 0x870   : > { %14436 = vmatprep.subr.bf16.mxu1 %v14435_v50  ;;  %14534 = vmatpush1.bf16.msra.mxu0 %v14533_v46  ;;  %v14539_v50 = vpack.c.bf16 %v10696_v54, %v10694_v60  ;;  %v10541_v46 = vld [vmem:[%s18693_s3 + $0x200] sm:$0xff]  ;;  %v14483_v54 = vpack.c.bf16 %v10548_v33, %v10546_v40  ;;  %v10652_v0 = vshrl.u32 %v10651_v24, 7  ;;  %v10821_v19 = vld [vmem:[%s18693_s3 + $0x518] sm:$0xff]  ;;  %v10916_v24 = vld [vmem:[%s18693_s3 + $0x548] sm:$0xff] }
 0x871   : > { %14536 = vmatprep.subr.bf16.mxu0 %v14535_v44  ;;  %v10543_v44 = vld [vmem:[%s18693_s3 + $0x210] sm:$0xff]  ;;  %v11898_v29 = vld [vmem:[%s18693_s3 + $0x660] ss:$8 sm:$0x3] }
 0x872   : > { %v14481_v60 = vpack.c.bf16 %v10543_v44, %v10541_v46  ;;  %v18445_v57 = vsub.s32 0, %v10652_v0 }
 0x873   : > { %14438 = vmatpush1.bf16.msra.mxu1 %v14437_v20  ;;  %v10334_v20 = vld [vmem:[%s18693_s3 + $0x10] sm:$0xff] }
 0x874   : > { %14440 = vmatprep.subr.bf16.mxu1 %v14439_v39  ;;  %14538 = vmatpush1.bf16.msra.mxu0 %v14537_v62  ;;  %v14449_v55 = vpack.c.bf16 %v10334_v20, %v10332_v13  ;;  %v10545_v62 = vld [vmem:[%s18693_s3 + $0x220] sm:$0xff] }
 0x875   : > { %14540 = vmatprep.subr.bf16.mxu0 %v14539_v50  ;;  %v10547_v50 = vld [vmem:[%s18693_s3 + $0x230] sm:$0xff]  ;;  %v10549_v20 = vld [vmem:[%s18693_s3 + $0x240] sm:$0xff] }
 0x877   : > { %14442 = vmatpush1.bf16.msra.mxu1 %v14441_v27 }
 0x878   : > { %14444 = vmatprep.subr.bf16.mxu1 %v14443_v43  ;;  %v14451_v43 = vpack.c.bf16 %v10339_v56, %v10337_v14  ;;  %v10554_v14 = vld [vmem:[%s18693_s3 + $0x268] sm:$0xff]  ;;  %v10556_v56 = vld [vmem:[%s18693_s3 + $0x278] sm:$0xff]  ;;  %14542 = vmatpush1.bf16.msra.mxu0 %v14541_v30 }
 0x87b   : > { %14446 = vmatpush1.bf16.msra.mxu1 %v14445_v36  ;;  %v10343_v36 = vld [vmem:[%s18693_s3 + $0x58] sm:$0xff] }
 0x87c   : > { %14448 = vmatprep.subr.bf16.mxu1 %v14447_v25  ;;  %v14453_v25 = vpack.c.bf16 %v10338_v38, %v10336_v10  ;;  %v14455_v7 = vpack.c.bf16 %v10343_v36, %v10341_v16  ;;  %v10560_v10 = vld [vmem:[%s18693_s3 + $0x298] sm:$0xff]  ;;  %v10557_v36 = vld [vmem:[%s18693_s3 + $0x280] sm:$0xff] }
 0x91d   : > { %v12820_v47 = vpop.f32.mrb[42].mxu1 }
 0x91e   : > { %v12821_v2 = vpop.f32.mrb[43].mxu1 }
 0x91f   : > { %v12822_v63 = vadd.f32 %v12821_v2, %v12820_v47  ;;  %v10550_v47 = vld [vmem:[%s18693_s3 + $0x248] sm:$0xff]  ;;  %v10552_v2 = vld [vmem:[%s18693_s3 + $0x258] sm:$0xff] }
 0x920   : > { %v14487_v13 = vpack.c.bf16 %v10552_v2, %v10550_v47  ;;  %v10797_v47 = vld [vmem:[%s18693_s3 + $0x458] sm:$0xff] }
 0x931   : > { %v10328_v39 = vpop.f32.mrb[44].mxu1 }
 0x932   : > { %v18240_v27 = vadd.f32 %v12822_v63, %v10328_v39  ;;  %v14219_v49 = vpop.f32.mrb[45].mxu1  ;;  %v14485_v63 = vpack.c.bf16 %v10547_v50, %v10545_v62  ;;  %v10551_v39 = vld [vmem:[%s18693_s3 + $0x250] sm:$0xff]  ;;  %v10795_v50 = vld [vmem:[%s18693_s3 + $0x448] sm:$0xff] }
 0x933   : > { %v14491_v49 = vpack.c.bf16 %v10556_v56, %v10554_v14  ;;  %v10796_v14 = vld [vmem:[%s18693_s3 + $0x450] sm:$0xff]  ;;  %v10799_v56 = vld [vmem:[%s18693_s3 + $0x468] sm:$0xff] }
 0x934   : > { %v10397_v15 = vrot.slane %v18240_v27, 1  ;;  %v10573_v41 = vrot.slane %v18240_v27, 2 }
 0x936   : > { %10464 = vmatmul.mubr.f32.vlgmr.msra.gmra.mrb[46].mxu1 %v10397_v15  ;;  %v10555_v15 = vld [vmem:[%s18693_s3 + $0x270] sm:$0xff] }
 0x937   : > { %14450 = vmatpush1.bf16.msra.mxu1 %v14449_v55  ;;  %10534 = vmatprep.mubr.f32.mxu1 %v18025_v1  ;;  %v10553_v55 = vld [vmem:[%s18693_s3 + $0x260] sm:$0xff] }
 0x938   : > { %14452 = vmatprep.subr.bf16.mxu1 %v14451_v43  ;;  %v10558_v43 = vld [vmem:[%s18693_s3 + $0x288] sm:$0xff]  ;;  %v14493_v38 = vpack.c.bf16 %v10555_v15, %v10553_v55  ;;  %v10798_v15 = vld [vmem:[%s18693_s3 + $0x460] sm:$0xff] }
 0x939   : > { %v14495_v16 = vpack.c.bf16 %v10560_v10, %v10558_v43  ;;  %v10800_v43 = vld [vmem:[%s18693_s3 + $0x470] sm:$0xff]  ;;  %v10803_v10 = vld [vmem:[%s18693_s3 + $0x488] sm:$0xff] }
 0x93b   : > { %14454 = vmatpush1.bf16.msra.mxu1 %v14453_v25  ;;  %v10559_v25 = vld [vmem:[%s18693_s3 + $0x290] sm:$0xff] }
 0x93c   : > { %14456 = vmatprep.subr.bf16.mxu1 %v14455_v7  ;;  %v10562_v7 = vld [vmem:[%s18693_s3 + $0x2a8] sm:$0xff]  ;;  %v14497_v58 = vpack.c.bf16 %v10559_v25, %v10557_v36  ;;  %v10802_v25 = vld [vmem:[%s18693_s3 + $0x480] sm:$0xff] }
 0x93d   : > { %v14499_v3 = vpack.c.bf16 %v10564_v52, %v10562_v7  ;;  %v10804_v7 = vld [vmem:[%s18693_s3 + $0x490] sm:$0xff]  ;;  %v10807_v52 = vld [vmem:[%s18693_s3 + $0x4a8] sm:$0xff] }
 0x93f   : > { %14458 = vmatpush1.bf16.msra.mxu1 %v14457_v26  ;;  %v10563_v26 = vld [vmem:[%s18693_s3 + $0x2b0] sm:$0xff] }
 0x940   : > { %14460 = vmatprep.subr.bf16.mxu1 %v14459_v51  ;;  %v10566_v51 = vld [vmem:[%s18693_s3 + $0x2c8] sm:$0xff]  ;;  %v14501_v35 = vpack.c.bf16 %v10563_v26, %v10561_v42  ;;  %v10806_v26 = vld [vmem:[%s18693_s3 + $0x4a0] sm:$0xff] }
 0x941   : > { %v14503_v48 = vpack.c.bf16 %v10568_v32, %v10566_v51  ;;  %v10808_v51 = vld [vmem:[%s18693_s3 + $0x4b0] sm:$0xff]  ;;  %v10811_v32 = vld [vmem:[%s18693_s3 + $0x4c8] sm:$0xff] }
 0x943   : > { %14462 = vmatpush1.bf16.msra.mxu1 %v14461_v18  ;;  %v10567_v18 = vld [vmem:[%s18693_s3 + $0x2d0] sm:$0xff] }
 0x944   : > { %14464 = vmatprep.subr.bf16.mxu1 %v14463_v28  ;;  %v10570_v28 = vld [vmem:[%s18693_s3 + $0x2e8] sm:$0xff]  ;;  %v14505_v6 = vpack.c.bf16 %v10567_v18, %v10565_v11  ;;  %v10810_v18 = vld [vmem:[%s18693_s3 + $0x4c0] sm:$0xff] }
 0x945   : > { %v14507_v12 = vpack.c.bf16 %v10572_v45, %v10570_v28  ;;  %v10812_v28 = vld [vmem:[%s18693_s3 + $0x4d0] sm:$0xff]  ;;  %v10815_v45 = vld [vmem:[%s18693_s3 + $0x4e8] sm:$0xff] }
 0x947   : > { %14466 = vmatpush1.bf16.msra.mxu1 %v14465_v9  ;;  %v10571_v9 = vld [vmem:[%s18693_s3 + $0x2f0] sm:$0xff] }
 0x948   : > { %14468 = vmatprep.subr.bf16.mxu1 %v14467_v4  ;;  %v14509_v4 = vpack.c.bf16 %v10571_v9, %v10569_v59  ;;  %v10814_v9 = vld [vmem:[%s18693_s3 + $0x4e0] sm:$0xff] }
 0x94b   : > { %14470 = vmatpush1.bf16.msra.mxu1 %v14469_v8  ;;  %v10698_v8 = vld [vmem:[%s18693_s3 + $0x408] sm:$0xff] }
 0x94c   : > { %14472 = vmatprep.subr.bf16.mxu1 %v14471_v61  ;;  %v10700_v61 = vld [vmem:[%s18693_s3 + $0x418] sm:$0xff] }
 0x94d   : > { %v14543_v22 = vpack.c.bf16 %v10700_v61, %v10698_v8  ;;  %v10818_v8 = vld [vmem:[%s18693_s3 + $0x500] sm:$0xff]  ;;  %v10820_v61 = vld [vmem:[%s18693_s3 + $0x510] sm:$0xff] }
 0x94f   : > { %14474 = vmatpush1.bf16.msra.mxu1 %v14473_v5  ;;  %14544 = vmatprep.subr.bf16.mxu0 %v14543_v22  ;;  %v10793_v5 = vld [vmem:[%s18693_s3 + $0x438] sm:$0xff]  ;;  %v10823_v22 = vld [vmem:[%s18693_s3 + $0x528] sm:$0xff] }
 0x950   : > { %14476 = vmatprep.subr.bf16.mxu1 %v14475_v17  ;;  %v14547_v17 = vpack.c.bf16 %v10793_v5, %v10791_v31  ;;  %v10824_v5 = vld [vmem:[%s18693_s3 + $0x530] sm:$0xff] }
 0x953   : > { %14478 = vmatpush1.bf16.msra.mxu1 %v14477_v21  ;;  %v18450_v21 = vsub.s32 1, %v10652_v0  ;;  %v10918_v0 = vld [vmem:[%s18693_s3 + $0x558] sm:$0xff] }
 0x954   : > { %14480 = vmatprep.subr.bf16.mxu1 %v14479_v34  ;;  %v10654_v34 = vrot.slane %v11898_v29, %v18445_v57 }
 0x955   : > { %v10658_v46 = vrot.slane %v11898_v29, %v18450_v21  ;;  %v10915_v29 = vld [vmem:[%s18693_s3 + $0x540] sm:$0xff] }
 0x956   : > { %10535 = vmatmul.mubr.f32.vlgmr.msra.gmra.mrb[46].mxu1 %v18240_v27  ;;  %v10697_v27 = vld [vmem:[%s18693_s3 + $0x400] sm:$0xff] }
 0x957   : > { %14482 = vmatpush1.bf16.msra.mxu1 %v14481_v60  ;;  %10639 = vmatprep.mubr.f32.mxu1 %v18025_v1  ;;  %v14489_v1 = vpack.c.bf16 %v10551_v39, %v10549_v20  ;;  %v14545_v37 = vpack.c.bf16 %v10699_v53, %v10697_v27  ;;  %v10790_v60 = vld [vmem:[%s18693_s3 + $0x420] sm:$0xff]  ;;  %v14551_v20 = vpack.c.bf16 %v10797_v47, %v10795_v50  ;;  %v10825_v53 = vld [vmem:[%s18693_s3 + $0x538] sm:$0xff]  ;;  %v10924_v50 = vld [vmem:[%s18693_s3 + $0x588] sm:$0xff] }
 0x958   : > { %14484 = vmatprep.subr.bf16.mxu1 %v14483_v54  ;;  %v10792_v54 = vld [vmem:[%s18693_s3 + $0x430] sm:$0xff]  ;;  %v10794_v39 = vld [vmem:[%s18693_s3 + $0x440] sm:$0xff]  ;;  %v14577_v27 = vpack.c.bf16 %v10820_v61, %v10818_v8  ;;  %v14579_v31 = vpack.c.bf16 %v10825_v53, %v10823_v22  ;;  %v10926_v47 = vld [vmem:[%s18693_s3 + $0x598] sm:$0xff] }
 0x959   : > { %14546 = vmatpush1.bf16.msra.mxu0 %v14545_v37  ;;  %v10822_v37 = vld [vmem:[%s18693_s3 + $0x520] sm:$0xff]  ;;  %v10948_v53 = vld [vmem:[%s18693_s3 + $0x648] sm:$0xff] }
 0x95a   : > { %14548 = vmatprep.subr.bf16.mxu0 %v14547_v17  ;;  %v14581_v17 = vpack.c.bf16 %v10824_v5, %v10822_v37  ;;  %v10943_v61 = vld [vmem:[%s18693_s3 + $0x620] sm:$0xff]  ;;  %v10950_v37 = vld [vmem:[%s18693_s3 + $0x658] sm:$0xff] }
 0x95b   : > { %14486 = vmatpush1.bf16.msra.mxu1 %v14485_v63  ;;  %v14549_v63 = vpack.c.bf16 %v10792_v54, %v10790_v60  ;;  %v10919_v54 = vld [vmem:[%s18693_s3 + $0x560] sm:$0xff]  ;;  %v14615_v5 = vpack.c.bf16 %v10950_v37, %v10948_v53 }
 0x95c   : > { %14488 = vmatprep.subr.bf16.mxu1 %v14487_v13 }
 0x95f   : > { %14490 = vmatpush1.bf16.msra.mxu1 %v14489_v1  ;;  %v10801_v1 = vld [vmem:[%s18693_s3 + $0x478] sm:$0xff] }
 0x960   : > { %14492 = vmatprep.subr.bf16.mxu1 %v14491_v49  ;;  %v14553_v49 = vpack.c.bf16 %v10796_v14, %v10794_v39  ;;  %v14555_v55 = vpack.c.bf16 %v10801_v1, %v10799_v56  ;;  %v10928_v39 = vld [vmem:[%s18693_s3 + $0x5a8] sm:$0xff]  ;;  %v10930_v14 = vld [vmem:[%s18693_s3 + $0x5b8] sm:$0xff] }
 0x961   : > { %v14595_v1 = vpack.c.bf16 %v10930_v14, %v10928_v39 }
 0x963   : > { %14494 = vmatpush1.bf16.msra.mxu1 %v14493_v38  ;;  %v10805_v38 = vld [vmem:[%s18693_s3 + $0x498] sm:$0xff] }
 0x964   : > { %14496 = vmatprep.subr.bf16.mxu1 %v14495_v16  ;;  %v14557_v16 = vpack.c.bf16 %v10800_v43, %v10798_v15  ;;  %v14559_v36 = vpack.c.bf16 %v10805_v38, %v10803_v10  ;;  %v10932_v15 = vld [vmem:[%s18693_s3 + $0x5c8] sm:$0xff]  ;;  %v10934_v43 = vld [vmem:[%s18693_s3 + $0x5d8] sm:$0xff] }
 0x965   : > { %v14599_v38 = vpack.c.bf16 %v10934_v43, %v10932_v15 }
 0x967   : > { %14498 = vmatpush1.bf16.msra.mxu1 %v14497_v58  ;;  %v10809_v58 = vld [vmem:[%s18693_s3 + $0x4b8] sm:$0xff] }
 0x968   : > { %14500 = vmatprep.subr.bf16.mxu1 %v14499_v3  ;;  %v14561_v3 = vpack.c.bf16 %v10804_v7, %v10802_v25  ;;  %v14563_v42 = vpack.c.bf16 %v10809_v58, %v10807_v52  ;;  %v10936_v25 = vld [vmem:[%s18693_s3 + $0x5e8] sm:$0xff]  ;;  %v10938_v7 = vld [vmem:[%s18693_s3 + $0x5f8] sm:$0xff] }
 0x969   : > { %v14603_v58 = vpack.c.bf16 %v10938_v7, %v10936_v25 }
 0x96b   : > { %14502 = vmatpush1.bf16.msra.mxu1 %v14501_v35  ;;  %v10813_v35 = vld [vmem:[%s18693_s3 + $0x4d8] sm:$0xff] }
 0x96c   : > { %14504 = vmatprep.subr.bf16.mxu1 %v14503_v48  ;;  %v14565_v48 = vpack.c.bf16 %v10808_v51, %v10806_v26  ;;  %v14567_v11 = vpack.c.bf16 %v10813_v35, %v10811_v32  ;;  %v10940_v26 = vld [vmem:[%s18693_s3 + $0x608] sm:$0xff]  ;;  %v10942_v51 = vld [vmem:[%s18693_s3 + $0x618] sm:$0xff] }
 0x96d   : > { %v14607_v35 = vpack.c.bf16 %v10942_v51, %v10940_v26 }
 0x96f   : > { %14506 = vmatpush1.bf16.msra.mxu1 %v14505_v6  ;;  %v10817_v6 = vld [vmem:[%s18693_s3 + $0x4f8] sm:$0xff] }
 0x970   : > { %14508 = vmatprep.subr.bf16.mxu1 %v14507_v12  ;;  %v14569_v12 = vpack.c.bf16 %v10812_v28, %v10810_v18  ;;  %v14571_v59 = vpack.c.bf16 %v10817_v6, %v10815_v45  ;;  %v10944_v18 = vld [vmem:[%s18693_s3 + $0x628] sm:$0xff]  ;;  %v10946_v28 = vld [vmem:[%s18693_s3 + $0x638] sm:$0xff] }
 0x971   : > { %v14611_v6 = vpack.c.bf16 %v10946_v28, %v10944_v18 }
 0x973   : > { %14510 = vmatpush1.bf16.msra.mxu1 %v14509_v4  ;;  %v10816_v4 = vld [vmem:[%s18693_s3 + $0x4f0] sm:$0xff] }
 0x974   : > { %v14573_v23 = vpack.c.bf16 %v10816_v4, %v10814_v9 }
 0x976   : > { %10640 = vmatmul.mubr.f32.vlgmr.msra.gmra.mrb[46].mxu1 %v10573_v41  ;;  %v10819_v41 = vld [vmem:[%s18693_s3 + $0x508] sm:$0xff] }
 0x977   : > { %v14575_v30 = vpack.c.bf16 %v10821_v19, %v10819_v41 }
 0xa49   : > { %v10641_v44 = vpop.f32.mrb[46].mxu1 }
 0xa4a   : > { %v10661_v40 = vadd.f32 %v10654_v34, %v10641_v44  ;;  %v10643_v33 = vpop.f32.mrb[47].mxu1  ;;  %v14583_v34 = vpack.c.bf16 %v10918_v0, %v10916_v24  ;;  %v10920_v44 = vld [vmem:[%s18693_s3 + $0x568] sm:$0xff] }
 0xa4b   : > { %v10662_v62 = vadd.f32 %v10658_v46, %v10643_v33  ;;  %v10917_v46 = vld [vmem:[%s18693_s3 + $0x550] sm:$0xff]  ;;  %v11901_v0 = vld [vmem:[%s18693_s3 + $0x680] ss:$8 sm:$0x3] }
 0xa4c   : > { %v10663_v13 = vmax.f32 %v10661_v40, 0.0  ;;  %v10922_v40 = vld [vmem:[%s18693_s3 + $0x578] sm:$0xff]  ;;  %v14585_v33 = vpack.c.bf16 %v10917_v46, %v10915_v29  ;;  %14584 = vmatprep.subr.bf16.mxu1 %v14583_v34  ;;  %v10832_v29 = vrot.slane %v11901_v0, %v18445_v57  ;;  %v10836_v34 = vrot.slane %v11901_v0, %v18450_v21 }
 0xa4d   : > { %v10664_v2 = vmax.f32 %v10662_v62, 0.0  ;;  %v14587_v60 = vpack.c.bf16 %v10922_v40, %v10920_v44  ;;  %v10921_v62 = vld [vmem:[%s18693_s3 + $0x570] sm:$0xff] }
 0xa4e   : > { %14586 = vmatpush1.bf16.msra.mxu1 %v14585_v33 }
 0xa4f   : > { %11900 = vmatprep.mubr.msk.f32.mxu0 %vm246_vm0, %v10664_v2  ;;  %v14589_v2 = vpack.c.bf16 %v10921_v62, %v10919_v54  ;;  %14588 = vmatprep.subr.bf16.mxu1 %v14587_v60  ;;  %v11903_v62 = vld [vmem:[%s18693_s3 + $0x690] ss:$8 sm:$0x3] }
 0xa50   : > { %10782 = vmatmul.mubr.f32.vlgmr.msra.gmra.mrb[92].mxu0 %v10663_v13  ;;  %v10923_v13 = vld [vmem:[%s18693_s3 + $0x580] sm:$0xff] }
 0xa51   : > { %14550 = vmatpush1.bf16.msra.mxu0 %v14549_v63  ;;  %v14591_v63 = vpack.c.bf16 %v10926_v47, %v10924_v50  ;;  %v10957_v50 = vrot.slane %v11903_v62, %v18445_v57 }
 0xa52   : > { %14552 = vmatprep.subr.bf16.mxu0 %v14551_v20  ;;  %v10925_v20 = vld [vmem:[%s18693_s3 + $0x590] sm:$0xff]  ;;  %14590 = vmatpush1.bf16.msra.mxu1 %v14589_v2 }
 0xa53   : > { %v14593_v56 = vpack.c.bf16 %v10925_v20, %v10923_v13  ;;  %14592 = vmatprep.subr.bf16.mxu1 %v14591_v63 }
 0xa55   : > { %14554 = vmatpush1.bf16.msra.mxu0 %v14553_v49  ;;  %v10927_v49 = vld [vmem:[%s18693_s3 + $0x5a0] sm:$0xff] }
 0xa56   : > { %14556 = vmatprep.subr.bf16.mxu0 %v14555_v55  ;;  %v10929_v55 = vld [vmem:[%s18693_s3 + $0x5b0] sm:$0xff]  ;;  %14594 = vmatpush1.bf16.msra.mxu1 %v14593_v56 }
 0xa57   : > { %v14597_v10 = vpack.c.bf16 %v10929_v55, %v10927_v49  ;;  %14596 = vmatprep.subr.bf16.mxu1 %v14595_v1 }
 0xa59   : > { %14558 = vmatpush1.bf16.msra.mxu0 %v14557_v16  ;;  %v10931_v16 = vld [vmem:[%s18693_s3 + $0x5c0] sm:$0xff] }
 0xa5a   : > { %14560 = vmatprep.subr.bf16.mxu0 %v14559_v36  ;;  %v10933_v36 = vld [vmem:[%s18693_s3 + $0x5d0] sm:$0xff]  ;;  %14598 = vmatpush1.bf16.msra.mxu1 %v14597_v10 }
 0xa5b   : > { %v14601_v52 = vpack.c.bf16 %v10933_v36, %v10931_v16  ;;  %14600 = vmatprep.subr.bf16.mxu1 %v14599_v38 }
 0xa5d   : > { %14562 = vmatpush1.bf16.msra.mxu0 %v14561_v3  ;;  %v10935_v3 = vld [vmem:[%s18693_s3 + $0x5e0] sm:$0xff] }
 0xa5e   : > { %14564 = vmatprep.subr.bf16.mxu0 %v14563_v42  ;;  %v10937_v42 = vld [vmem:[%s18693_s3 + $0x5f0] sm:$0xff]  ;;  %14602 = vmatpush1.bf16.msra.mxu1 %v14601_v52 }
 0xa5f   : > { %v14605_v32 = vpack.c.bf16 %v10937_v42, %v10935_v3  ;;  %14604 = vmatprep.subr.bf16.mxu1 %v14603_v58 }
 0xa61   : > { %14566 = vmatpush1.bf16.msra.mxu0 %v14565_v48  ;;  %v10939_v48 = vld [vmem:[%s18693_s3 + $0x600] sm:$0xff] }
 0xa62   : > { %14568 = vmatprep.subr.bf16.mxu0 %v14567_v11  ;;  %v10941_v11 = vld [vmem:[%s18693_s3 + $0x610] sm:$0xff]  ;;  %14606 = vmatpush1.bf16.msra.mxu1 %v14605_v32 }
 0xa63   : > { %v14609_v45 = vpack.c.bf16 %v10941_v11, %v10939_v48  ;;  %14608 = vmatprep.subr.bf16.mxu1 %v14607_v35 }
 0xa65   : > { %14570 = vmatpush1.bf16.msra.mxu0 %v14569_v12  ;;  %v11899_v12 = vld [vmem:[%s18693_s3 + $0x670] ss:$8 sm:$0x3] }
 0xa66   : > { %14572 = vmatprep.subr.bf16.mxu0 %v14571_v59  ;;  %14610 = vmatpush1.bf16.msra.mxu1 %v14609_v45  ;;  %v10707_v59 = vrot.slane %v11899_v12, %v18445_v57  ;;  %v10711_v9 = vrot.slane %v11899_v12, %v18450_v21 }
 0xa67   : > { %14612 = vmatprep.subr.bf16.mxu1 %v14611_v6 }
 0xa69   : > { %14574 = vmatpush1.bf16.msra.mxu0 %v14573_v23 }
 0xa6a   : > { %14576 = vmatprep.subr.bf16.mxu0 %v14575_v30 }
 0xa6d   : > { %14578 = vmatpush1.bf16.msra.mxu0 %v14577_v27  ;;  %v10945_v27 = vld [vmem:[%s18693_s3 + $0x630] sm:$0xff] }
 0xa6e   : > { %14580 = vmatprep.subr.bf16.mxu0 %v14579_v31  ;;  %v14613_v22 = vpack.c.bf16 %v10945_v27, %v10943_v61  ;;  %v10947_v31 = vld [vmem:[%s18693_s3 + $0x640] sm:$0xff] }
 0xa70   : > { %14614 = vmatpush1.bf16.msra.mxu1 %v14613_v22 }
 0xa71   : > { %14582 = vmatpush1.bf16.msra.mxu0 %v14581_v17  ;;  %v10949_v17 = vld [vmem:[%s18693_s3 + $0x650] sm:$0xff]  ;;  %14616 = vmatprep.subr.bf16.mxu1 %v14615_v5 }
 0xa72   : > { %v14617_v24 = vpack.c.bf16 %v10949_v17, %v10947_v31 }
 0xa74   : > { %14618 = vmatpush1.bf16.msra.mxu1 %v14617_v24 }
 0xb23   : > { %v10783_v4 = vpop.f32.mrb[92].mxu0 }
 0xb24   : > { %v10784_v41 = vadd.f32 %v10783_v4, %v10707_v59  ;;  %v10785_v19 = vpop.f32.mrb[93].mxu0 }
 0xb25   : > { %v10786_v23 = vadd.f32 %v10785_v19, %v10711_v9 }
 0xb26   : > { %v10788_v8 = vmax.f32 %v10784_v41, 0.0 }
 0xb27   : > { %v10789_v30 = vmax.f32 %v10786_v23, 0.0 }
 0xb29   : > { %11902 = vmatprep.mubr.msk.f32.mxu0 %vm246_vm0, %v10789_v30 }
 0xb2a   : > { %10907 = vmatmul.mubr.f32.vlgmr.msra.gmra.mrb[94].mxu0 %v10788_v8 }
 0xbfd   : > { %v10908_v46 = vpop.f32.mrb[94].mxu0 }
 0xbfe   : > { %v10909_v44 = vadd.f32 %v10908_v46, %v10832_v29  ;;  %v10910_v40 = vpop.f32.mrb[95].mxu0 }
 0xbff   : > { %v10911_v33 = vadd.f32 %v10910_v40, %v10836_v34 }
 0xc00   : > { %v10913_v54 = vmax.f32 %v10909_v44, 0.0 }
 0xc01   : > { %v10914_v60 = vmax.f32 %v10911_v33, 0.0 }
 0xc03   : > { %11904 = vmatprep.mubr.msk.f32.mxu1 %vm246_vm0, %v10914_v60 }
 0xc04   : > { %11027 = vmatmul.mubr.f32.vlgmr.msra.gmra.mrb[48].mxu1 %v10913_v54 }
 0xcd7   : > { %v11028_v47 = vpop.f32.mrb[48].mxu1 }
 0xcd8   : > { %v11029_v21 = vadd.f32 %v11028_v47, %v10957_v50  ;;  %v11030_v2 = vpop.f32.mrb[49].mxu1 }
 0xcda   : > { %v11035_v63 = vrot.slane %v11029_v21, %v18445_v57 }
 0xcdc   : > { %11036 = vst [vmem:[%s197_s18] sm:$0xff] %v11035_v63 }
 0xcdd PF: > { %s14_s15 = sadd.s32 1, %s15362_s15  }
 0xcde   : > { %p11_p5 = scmp.ge.s32.totalorder %s14_s15, 4  }
 0xce0   :  { %13 = sbr.rel (!%p11_p5) target bundleno = 1 (0x1), region = 70 }

</bundles_post_ra>
